<compile_context>
chip_gen: v5e
topology: v5e:2x2
jax: 0.10.0
libtpu: 0.0.40
codegen_flags: <defaults>
</compile_context>

<pallas_src>
import jax
import jax.numpy as jnp
from jax.experimental import pallas as pl
from jax.experimental.pallas import tpu as pltpu

LANE = 128


def _round_up(n, m=LANE):
    return ((n + m - 1) // m) * m


def _hardswish(v):
    return v * jnp.clip(v + 3.0, 0.0, 6.0) * (1.0 / 6.0)


def _fold_bn(gamma, beta, mean, var, eps=1e-5):
    scale = gamma / jnp.sqrt(var + eps)
    bias = beta - mean * scale
    return scale.astype(jnp.float32), bias.astype(jnp.float32)


def _pad_to(a, shape):
    pads = [(0, t - s) for s, t in zip(a.shape, shape)]
    return jnp.pad(a, pads)


def _vmem_capacity_bytes():
    try:
        return int(pltpu.get_tpu_info().vmem_capacity_bytes)
    except Exception:
        return 64 << 20          # conservative fallback (v7x-sized)


def _estimate_vmem_bytes(tro, *, stride, W, Wo, Ho, Cp, Hp, Op):
    """Rough per-grid-step VMEM footprint for a given output-row tile."""
    tri = tro * stride
    halo = 2 if stride == 1 else 1
    R = tri + halo
    x_blocks = 2 * (tri + halo) * W * Cp * 2                       # double-buffered bf16 input
    weights = 2 * (Cp * Hp * 2 + Hp * 4 + 9 * Hp * 4 + Hp * 4
                   + Hp * Hp * 4 + Hp * Op * 2 + Op * 4)
    out_block = 2 * Ho * Wo * Op * 4                               # resident f32 output block
    h2_cache = Ho * Wo * Hp * 4                                    # persistent per-batch h2
    temps = 6 * R * W * Hp * 4 + 3 * tro * Wo * Hp * 4 + 2 * tro * Wo * Op * 4
    return x_blocks + weights + out_block + h2_cache + temps + (1 << 20)


# --------------------------------------------------------------------------------------
# fused kernel: 1x1 expand -> dw 3x3 -> (pool) ... finalize: ECA gate -> 1x1 project
# --------------------------------------------------------------------------------------
def _make_fused_kernel(*, W, Cp, Hp, Op, stride, TRo, Wo, nRT, n_pix, eca_b, use_res):
    TRi = TRo * stride
    R = TRi + (2 if stride == 1 else 1)     # input rows materialized per tile (incl. halo)
    inv_pool = 1.0 / float(n_pix)

    def kernel(*refs):
        if stride == 1:
            (x_top_ref, x_main_ref, x_bot_ref, w1_ref, b1_ref, wdw_ref, b2_ref,
             weca_ref, w3_ref, b3_ref, out_ref, h2_ref, psum_ref) = refs
            x_rows = jnp.concatenate(
                [x_top_ref[...], x_main_ref[...], x_bot_ref[...]], axis=0)   # (R, W, Cp)
        else:
            # stride 2: the bottom halo row is never read -> not DMA'd at all
            (x_top_ref, x_main_ref, w1_ref, b1_ref, wdw_ref, b2_ref,
             weca_ref, w3_ref, b3_ref, out_ref, h2_ref, psum_ref) = refs
            x_rows = jnp.concatenate([x_top_ref[...], x_main_ref[...]], axis=0)

        j = pl.program_id(1)
        nrt = pl.num_programs(1)

        # -- 1x1 expand conv (bf16 MXU, f32 accumulate); BN scale pre-folded into w1 --
        h = jnp.dot(x_rows.reshape(R * W, Cp), w1_ref[...],
                    preferred_element_type=jnp.float32)
        h = _hardswish(h + b1_ref[...]).reshape(R, W, Hp)

        # depthwise zero padding lives in h-space: out-of-image halo rows must be 0
        row_id = jax.lax.broadcasted_iota(jnp.int32, (R, 1, 1), 0)
        pad_row = (row_id == 0) & (j == 0)
        if stride == 1:
            pad_row = pad_row | ((row_id == R - 1) & (j == nrt - 1))
        h = jnp.where(pad_row, 0.0, h)

        # -- 3x3 depthwise conv (BN scale pre-folded into wdw) --
        # three column-shifted views built once instead of nine unaligned sublane slices
        wdw = wdw_ref[...]
        zc = jnp.zeros((R, 1, Hp), jnp.float32)
        acc = jnp.zeros((TRo, Wo, Hp), jnp.float32)
        if stride == 1:
            hL = jnp.concatenate([zc, h[:, :W - 1, :]], axis=1)    # input col c-1
            hC = h                                                 # input col c
            hR = jnp.concatenate([h[:, 1:, :], zc], axis=1)        # input col c+1
            for kh in range(3):
                acc = acc + (hL[kh:kh + TRo] * wdw[kh, 0]
                             + hC[kh:kh + TRo] * wdw[kh, 1]
                             + hR[kh:kh + TRo] * wdw[kh, 2])
        else:
            hC = h[:, 0::2, :]                                     # input col 2c
            hR = h[:, 1::2, :]                                     # input col 2c+1
            hL = jnp.concatenate([zc, hR[:, :Wo - 1, :]], axis=1)  # input col 2c-1
            for kh in range(3):
                acc = acc + (hL[kh:kh + TRi:2] * wdw[kh, 0]
                             + hC[kh:kh + TRi:2] * wdw[kh, 1]
                             + hR[kh:kh + TRi:2] * wdw[kh, 2])
        h2 = _hardswish(acc + b2_ref[...])                         # (TRo, Wo, Hp) f32

        # -- cache the tile in the per-batch VMEM scratch; accumulate pooled sum --
        @pl.when(j == 0)
        def _init():
            psum_ref[...] = jnp.zeros_like(psum_ref)

        psum_ref[...] += jnp.sum(h2, axis=(0, 1)).reshape(1, Hp)
        h2_ref[pl.ds(j * TRo, TRo), :, :] = h2

        if use_res:
            # stage residual rows into the resident output block (consumed in finalize)
            out_ref[pl.ds(j * TRo, TRo), :, :] = x_main_ref[...].astype(jnp.float32)

        # -- finalize once per batch: ECA gate -> 1x1 project -> BN (+ residual) --
        @pl.when(j == nrt - 1)
        def _finalize():
            mean = psum_ref[...] * inv_pool                        # (1, Hp)
            z = jnp.dot(mean, weca_ref[...], preferred_element_type=jnp.float32)
            gate = eca_b + jax.nn.sigmoid(z)                       # (1, Hp)
            for jj in range(nRT):                                  # static unroll (nRT small)
                lo, hi = jj * TRo, (jj + 1) * TRo
                h3 = h2_ref[lo:hi, :, :] * gate
                o = jnp.dot(h3.reshape(TRo * Wo, Hp).astype(jnp.bfloat16), w3_ref[...],
                            preferred_element_type=jnp.float32)
                o = (o + b3_ref[...]).reshape(TRo, Wo, Op)
                if use_res:
                    o = o + out_ref[lo:hi, :, :]
                out_ref[lo:hi, :, :] = o.astype(out_ref.dtype)

    return kernel


# --------------------------------------------------------------------------------------
# wrapper
# --------------------------------------------------------------------------------------
def inverted_residual_forward(x_nchw, params, *, inp, oup, stride, expand_ratio,
                              gamma=2, b=1, row_tile=None):
    assert stride in (1, 2)
    hidden = int(round(inp * expand_ratio))
    k = min(3, max(1, hidden // gamma))
    assert k % 2 == 1, "ECA Conv1d on a length-1 sequence requires an odd kernel size"
    use_res = (stride == 1) and (inp == oup)

    B, C, H, W = x_nchw.shape
    assert C == inp
    Ho = (H - 1) // stride + 1
    Wo = (W - 1) // stride + 1
    assert stride == 1 or (H % 2 == 0 and W % 2 == 0)

    Cp, Hp, Op = _round_up(inp), _round_up(hidden), _round_up(oup)
    eca_b = float(b)

    # ---- parameter plumbing: fold BN scales into the conv weights (bias stays) ----
    s1, b1 = _fold_bn(*params["bn1"])
    w1f = _pad_to(jnp.transpose(params["w1"][:, :, 0, 0], (1, 0)) * s1[None, :],
                  (Cp, Hp)).astype(jnp.bfloat16)
    b1p = _pad_to(b1.reshape(1, -1), (1, Hp))

    s2, b2 = _fold_bn(*params["bn2"])
    wdwf = _pad_to(jnp.transpose(params["wdw"][:, 0], (1, 2, 0)) * s2[None, None, :],
                   (3, 3, Hp)).astype(jnp.float32)
    b2p = _pad_to(b2.reshape(1, -1), (1, Hp))

    # Conv1d(C, C, k) over a length-1 sequence with pad (k-1)//2: only the center tap.
    weca = _pad_to(jnp.transpose(params["weca"][:, :, k // 2], (1, 0)),
                   (Hp, Hp)).astype(jnp.float32)

    s3, b3 = _fold_bn(*params["bn3"])
    w3f = _pad_to(jnp.transpose(params["w3"][:, :, 0, 0], (1, 0)) * s3[None, :],
                  (Hp, Op)).astype(jnp.bfloat16)
    b3p = _pad_to(b3.reshape(1, -1), (1, Op))

    # bf16 input stream (dominant HBM read), lane-dense channel padding
    xp = _pad_to(jnp.transpose(x_nchw, (0, 2, 3, 1)), (B, H, W, Cp)).astype(jnp.bfloat16)

    # ---- generation-aware tiling / VMEM budget ----
    vmem_cap = _vmem_capacity_bytes()
    vmem_limit = (40 << 20) if vmem_cap <= (64 << 20) else (100 << 20)
    vmem_limit = int(min(vmem_limit, int(vmem_cap * 0.8)))
    est = lambda t: _estimate_vmem_bytes(t, stride=stride, W=W, Wo=Wo, Ho=Ho,
                                         Cp=Cp, Hp=Hp, Op=Op)
    if row_tile is None:
        TRo = 1
        for t in range(1, Ho + 1):
            if Ho % t == 0 and est(t) <= int(0.6 * vmem_limit):
                TRo = t
    else:
        assert Ho % row_tile == 0
        TRo = int(row_tile)
    TRi = TRo * stride
    nRT = Ho // TRo

    kernel = _make_fused_kernel(W=W, Cp=Cp, Hp=Hp, Op=Op, stride=stride, TRo=TRo,
                                Wo=Wo, nRT=nRT, n_pix=Ho * Wo, eca_b=eca_b,
                                use_res=use_res)

    in_specs = [
        pl.BlockSpec((None, 1, W, Cp),
                     lambda bb, j: (bb, jnp.maximum(j * TRi - 1, 0), 0, 0)),
        pl.BlockSpec((None, TRi, W, Cp), lambda bb, j: (bb, j, 0, 0)),
    ]
    args = [xp, xp]
    if stride == 1:
        in_specs.append(pl.BlockSpec(
            (None, 1, W, Cp),
            lambda bb, j: (bb, jnp.minimum((j + 1) * TRi, H - 1), 0, 0)))
        args.append(xp)
    in_specs += [
        pl.BlockSpec((Cp, Hp), lambda bb, j: (0, 0)),
        pl.BlockSpec((1, Hp), lambda bb, j: (0, 0)),
        pl.BlockSpec((3, 3, Hp), lambda bb, j: (0, 0, 0)),
        pl.BlockSpec((1, Hp), lambda bb, j: (0, 0)),
        pl.BlockSpec((Hp, Hp), lambda bb, j: (0, 0)),
        pl.BlockSpec((Hp, Op), lambda bb, j: (0, 0)),
        pl.BlockSpec((1, Op), lambda bb, j: (0, 0)),
    ]
    args += [w1f, b1p, wdwf, b2p, weca, w3f, b3p]

    out_nhwc = pl.pallas_call(
        kernel,
        grid=(B, nRT),
        in_specs=in_specs,
        # output block resident across the row-tile axis: one HBM writeback per batch
        out_specs=pl.BlockSpec((None, Ho, Wo, Op), lambda bb, j: (bb, 0, 0, 0)),
        out_shape=jax.ShapeDtypeStruct((B, Ho, Wo, Op), jnp.float32),
        scratch_shapes=[pltpu.VMEM((Ho, Wo, Hp), jnp.float32),    # per-batch h2 cache
                        pltpu.VMEM((1, Hp), jnp.float32)],        # pooled-sum accumulator
        compiler_params=pltpu.CompilerParams(
            dimension_semantics=("parallel", "arbitrary"),
            vmem_limit_bytes=vmem_limit),
    )(*args)

    return jnp.transpose(out_nhwc[:, :, :, :oup], (0, 3, 1, 2))   # NHWC -> NCHW


# --------------------------------------------------------------------------------------
# pure-JAX reference (mirrors the kernel's bf16 matmul casts) and synthetic params
# --------------------------------------------------------------------------------------
def reference_forward(x_nchw, params, *, inp, oup, stride, expand_ratio, gamma=2, b=1):
    hidden = int(round(inp * expand_ratio))
    k = min(3, max(1, hidden // gamma))
    use_res = (stride == 1) and (inp == oup)
    x = jnp.transpose(x_nchw, (0, 2, 3, 1)).astype(jnp.float32)
    B, H, W, _ = x.shape
    Ho = (H - 1) // stride + 1
    Wo = (W - 1) // stride + 1

    w1 = jnp.transpose(params["w1"][:, :, 0, 0], (1, 0))
    s1, b1 = _fold_bn(*params["bn1"])
    h = jnp.dot(x.reshape(-1, inp).astype(jnp.bfloat16), w1.astype(jnp.bfloat16),
                preferred_element_type=jnp.float32)
    h = _hardswish(h * s1 + b1).reshape(B, H, W, hidden)

    wdw = jnp.transpose(params["wdw"][:, 0], (1, 2, 0))
    s2, b2 = _fold_bn(*params["bn2"])
    hp = jnp.pad(h, ((0, 0), (1, 1), (1, 1), (0, 0)))
    acc = jnp.zeros((B, Ho, Wo, hidden), jnp.float32)
    for kh in range(3):
        for kw in range(3):
            win = hp[:, kh:kh + (Ho - 1) * stride + 1:stride,
                     kw:kw + (Wo - 1) * stride + 1:stride, :]
            acc = acc + win * wdw[kh, kw]
    h2 = _hardswish(acc * s2 + b2)

    weca = jnp.transpose(params["weca"][:, :, k // 2], (1, 0))
    gate = float(b) + jax.nn.sigmoid(jnp.dot(jnp.mean(h2, axis=(1, 2)), weca))
    h3 = h2 * gate[:, None, None, :]

    w3 = jnp.transpose(params["w3"][:, :, 0, 0], (1, 0))
    s3, b3 = _fold_bn(*params["bn3"])
    o = jnp.dot(h3.reshape(-1, hidden).astype(jnp.bfloat16), w3.astype(jnp.bfloat16),
                preferred_element_type=jnp.float32)
    o = (o * s3 + b3).reshape(B, Ho, Wo, oup)
    if use_res:
        o = o + x
    return jnp.transpose(o, (0, 3, 1, 2))


def init_params(key, inp, oup, expand_ratio, gamma=2):
    """Deterministic synthetic parameters with PyTorch-native shapes."""
    hidden = int(round(inp * expand_ratio))
    k = min(3, max(1, hidden // gamma))   # ECA Conv1d kernel size
    ks = jax.random.split(key, 16)

    def bn(k0, k1, k2, k3, c):
        return (1.0 + 0.1 * jax.random.normal(ks[k0], (c,), jnp.float32),   # gamma
                0.1 * jax.random.normal(ks[k1], (c,), jnp.float32),         # beta
                0.05 * jax.random.normal(ks[k2], (c,), jnp.float32),        # running_mean
                0.5 + jax.random.uniform(ks[k3], (c,), jnp.float32))        # running_var

    params = {
        "w1":   0.3 * jax.random.normal(ks[0], (hidden, inp, 1, 1), jnp.float32),
        "bn1":  bn(1, 2, 3, 4, hidden),
        "wdw":  0.3 * jax.random.normal(ks[5], (hidden, 1, 3, 3), jnp.float32),
        "bn2":  bn(6, 7, 8, 9, hidden),
        "weca": 0.3 * jax.random.normal(ks[10], (hidden, hidden, k), jnp.float32),
        "w3":   0.3 * jax.random.normal(ks[11], (oup, hidden, 1, 1), jnp.float32),
        "bn3":  bn(12, 13, 14, 15, oup),
    }
    return params, hidden, k


if __name__ == "__main__":
    key = jax.random.PRNGKey(0)

    configs = [
        dict(inp=4, oup=4, stride=1, expand_ratio=2),                # residual path
        dict(inp=4, oup=8, stride=2, expand_ratio=2),                # downsampling path
        dict(inp=4, oup=4, stride=1, expand_ratio=2, row_tile=4),    # multi-tile finalize
        dict(inp=4, oup=8, stride=2, expand_ratio=2, row_tile=2),    # multi-tile, stride 2
    ]
    B, H, W = 2, 16, 16
    for i, cfg in enumerate(configs):
        row_tile = cfg.pop("row_tile", None)
        kx, kp = jax.random.split(jax.random.fold_in(key, i))
        x = jax.random.normal(kx, (B, cfg["inp"], H, W), jnp.float32)
        params, hidden, k = init_params(kp, cfg["inp"], cfg["oup"], cfg["expand_ratio"])

        out = inverted_residual_forward(x, params, row_tile=row_tile, **cfg)
        out = jax.block_until_ready(out)

        Ho = (H - 1) // cfg["stride"] + 1
        Wo = (W - 1) // cfg["stride"] + 1
        assert out.shape == (B, cfg["oup"], Ho, Wo)
        assert bool(jnp.all(jnp.isfinite(out)))

        ref = reference_forward(x, params, **cfg)
        err = float(jnp.max(jnp.abs(out - ref)))
        scale = float(jnp.max(jnp.abs(ref))) + 1e-6
        assert err <= 5e-2 * scale + 5e-2, f"config {i}: max|err|={err} (ref scale {scale})"

    print("KERNEL_OK")
</pallas_src>

<mosaic_0001>
module attributes {stable_mosaic.version = 11 : i64} {
  func.func @kernel(%arg0: i32, %arg1: i32, %arg2: memref<1x1x16x128xbf16, #tpu.memory_space<vmem>>, %arg3: memref<1x16x16x128xbf16, #tpu.memory_space<vmem>>, %arg4: memref<1x1x16x128xbf16, #tpu.memory_space<vmem>>, %arg5: memref<128x128xbf16, #tpu.memory_space<vmem>>, %arg6: memref<1x128xf32, #tpu.memory_space<vmem>>, %arg7: memref<3x3x128xf32, #tpu.memory_space<vmem>>, %arg8: memref<1x128xf32, #tpu.memory_space<vmem>>, %arg9: memref<128x128xf32, #tpu.memory_space<vmem>>, %arg10: memref<128x128xbf16, #tpu.memory_space<vmem>>, %arg11: memref<1x128xf32, #tpu.memory_space<vmem>>, %arg12: memref<1x16x16x128xf32, #tpu.memory_space<vmem>>, %arg13: memref<16x16x128xf32, #tpu.memory_space<vmem>>, %arg14: memref<1x128xf32, #tpu.memory_space<vmem>>) attributes {dimension_semantics = [#tpu.dimension_semantics<parallel>, #tpu.dimension_semantics<arbitrary>], iteration_bounds = array<i64: 2, 1>, scalar_prefetch = 0 : i64, scratch_operands = 2 : i64, tpu.core_type = #tpu.core_type<tc>, window_params = [{transform_indices = @transform_0, window_bounds = array<i64: 1, 1, 16, 128>}, {transform_indices = @transform_1, window_bounds = array<i64: 1, 16, 16, 128>}, {transform_indices = @transform_2, window_bounds = array<i64: 1, 1, 16, 128>}, {pipeline_mode = #tpu.pipeline_mode<synchronous>, transform_indices = @transform_3, window_bounds = array<i64: 128, 128>}, {pipeline_mode = #tpu.pipeline_mode<synchronous>, transform_indices = @transform_4, window_bounds = array<i64: 1, 128>}, {pipeline_mode = #tpu.pipeline_mode<synchronous>, transform_indices = @transform_5, window_bounds = array<i64: 3, 3, 128>}, {pipeline_mode = #tpu.pipeline_mode<synchronous>, transform_indices = @transform_6, window_bounds = array<i64: 1, 128>}, {pipeline_mode = #tpu.pipeline_mode<synchronous>, transform_indices = @transform_7, window_bounds = array<i64: 128, 128>}, {pipeline_mode = #tpu.pipeline_mode<synchronous>, transform_indices = @transform_8, window_bounds = array<i64: 128, 128>}, {pipeline_mode = #tpu.pipeline_mode<synchronous>, transform_indices = @transform_9, window_bounds = array<i64: 1, 128>}, {transform_indices = @transform_10, window_bounds = array<i64: 1, 16, 16, 128>}]} {
    %c0 = arith.constant 0 : index
    %c0_0 = arith.constant 0 : index
    %c0_1 = arith.constant 0 : index
    %c0_2 = arith.constant 0 : index
    %0 = vector.load %arg2[%c0, %c0_0, %c0_1, %c0_2] : memref<1x1x16x128xbf16, #tpu.memory_space<vmem>>, vector<1x1x16x128xbf16>
    %1 = vector.shape_cast %0 : vector<1x1x16x128xbf16> to vector<1x16x128xbf16>
    %c0_3 = arith.constant 0 : index
    %c0_4 = arith.constant 0 : index
    %c0_5 = arith.constant 0 : index
    %c0_6 = arith.constant 0 : index
    %2 = vector.load %arg3[%c0_3, %c0_4, %c0_5, %c0_6] : memref<1x16x16x128xbf16, #tpu.memory_space<vmem>>, vector<1x16x16x128xbf16>
    %3 = vector.shape_cast %2 : vector<1x16x16x128xbf16> to vector<16x16x128xbf16>
    %c0_7 = arith.constant 0 : index
    %c0_8 = arith.constant 0 : index
    %c0_9 = arith.constant 0 : index
    %c0_10 = arith.constant 0 : index
    %4 = vector.load %arg4[%c0_7, %c0_8, %c0_9, %c0_10] : memref<1x1x16x128xbf16, #tpu.memory_space<vmem>>, vector<1x1x16x128xbf16>
    %5 = vector.shape_cast %4 : vector<1x1x16x128xbf16> to vector<1x16x128xbf16>
    %6 = tpu.concatenate %1, %3, %5 in 0 : vector<1x16x128xbf16>, vector<16x16x128xbf16>, vector<1x16x128xbf16> -> vector<18x16x128xbf16>
    %7 = vector.shape_cast %6 : vector<18x16x128xbf16> to vector<288x128xbf16>
    %c0_11 = arith.constant 0 : index
    %c0_12 = arith.constant 0 : index
    %8 = vector.load %arg5[%c0_11, %c0_12] : memref<128x128xbf16, #tpu.memory_space<vmem>>, vector<128x128xbf16>
    %cst = arith.constant dense<0.000000e+00> : vector<288x128xf32>
    %9 = tpu.matmul %7, %8, %cst {dimension_numbers = #tpu.dot_dimension_numbers<[1], [0], [0], [1], [0, 0, 1, 1], [], []>} : vector<288x128xbf16>, vector<128x128xbf16>, vector<288x128xf32> -> vector<288x128xf32>
    %c0_13 = arith.constant 0 : index
    %c0_14 = arith.constant 0 : index
    %10 = vector.load %arg6[%c0_13, %c0_14] : memref<1x128xf32, #tpu.memory_space<vmem>>, vector<1x128xf32>
    %11 = vector.broadcast %10 : vector<1x128xf32> to vector<288x128xf32>
    %12 = arith.addf %9, %11 : vector<288x128xf32>
    %cst_15 = arith.constant 3.000000e+00 : f32
    %13 = vector.broadcast %cst_15 : f32 to vector<288x128xf32>
    %14 = arith.addf %12, %13 : vector<288x128xf32>
    %cst_16 = arith.constant 0.000000e+00 : f32
    %cst_17 = arith.constant 6.000000e+00 : f32
    %15 = vector.broadcast %cst_16 : f32 to vector<288x128xf32>
    %16 = arith.maximumf %15, %14 : vector<288x128xf32>
    %17 = vector.broadcast %cst_17 : f32 to vector<288x128xf32>
    %18 = arith.minimumf %17, %16 : vector<288x128xf32>
    %19 = arith.mulf %12, %18 : vector<288x128xf32>
    %cst_18 = arith.constant 0.166666672 : f32
    %20 = vector.broadcast %cst_18 : f32 to vector<288x128xf32>
    %21 = arith.mulf %19, %20 : vector<288x128xf32>
    %22 = vector.shape_cast %21 : vector<288x128xf32> to vector<18x16x128xf32>
    %23 = tpu.iota {dimensions = array<i32: 0>} : vector<18x1x1xi32>
    %c0_i32 = arith.constant 0 : i32
    %24 = vector.broadcast %c0_i32 : i32 to vector<18x1x1xi32>
    %25 = arith.cmpi eq, %23, %24 : vector<18x1x1xi32>
    %c0_i32_19 = arith.constant 0 : i32
    %26 = arith.cmpi eq, %arg1, %c0_i32_19 : i32
    %27 = vector.broadcast %26 : i1 to vector<18x1x1xi1>
    %28 = arith.andi %25, %27 : vector<18x1x1xi1>
    %c17_i32 = arith.constant 17 : i32
    %29 = vector.broadcast %c17_i32 : i32 to vector<18x1x1xi32>
    %30 = arith.cmpi eq, %23, %29 : vector<18x1x1xi32>
    %c0_i32_20 = arith.constant 0 : i32
    %31 = arith.cmpi eq, %arg1, %c0_i32_20 : i32
    %32 = vector.broadcast %31 : i1 to vector<18x1x1xi1>
    %33 = arith.andi %30, %32 : vector<18x1x1xi1>
    %34 = arith.ori %28, %33 : vector<18x1x1xi1>
    %cst_21 = arith.constant 0.000000e+00 : f32
    %35 = vector.shape_cast %34 : vector<18x1x1xi1> to vector<18x1x1xi1>
    %36 = vector.broadcast %35 : vector<18x1x1xi1> to vector<18x16x128xi1>
    %37 = vector.broadcast %cst_21 : f32 to vector<18x16x128xf32>
    %38 = arith.select %36, %37, %22 : vector<18x16x128xi1>, vector<18x16x128xf32>
    %c0_22 = arith.constant 0 : index
    %c0_23 = arith.constant 0 : index
    %c0_24 = arith.constant 0 : index
    %39 = vector.load %arg7[%c0_22, %c0_23, %c0_24] : memref<3x3x128xf32, #tpu.memory_space<vmem>>, vector<3x3x128xf32>
    %cst_25 = arith.constant 0.000000e+00 : f32
    %40 = vector.broadcast %cst_25 : f32 to vector<18x1x128xf32>
    %cst_26 = arith.constant 0.000000e+00 : f32
    %41 = vector.broadcast %cst_26 : f32 to vector<16x16x128xf32>
    %42 = vector.extract_strided_slice %38 {offsets = [0, 0, 0], sizes = [18, 15, 128], strides = [1, 1, 1]} : vector<18x16x128xf32> to vector<18x15x128xf32>
    %43 = tpu.concatenate %40, %42 in 1 : vector<18x1x128xf32>, vector<18x15x128xf32> -> vector<18x16x128xf32>
    %44 = vector.extract_strided_slice %38 {offsets = [0, 1, 0], sizes = [18, 15, 128], strides = [1, 1, 1]} : vector<18x16x128xf32> to vector<18x15x128xf32>
    %45 = tpu.concatenate %44, %40 in 1 : vector<18x15x128xf32>, vector<18x1x128xf32> -> vector<18x16x128xf32>
    %46 = vector.extract_strided_slice %43 {offsets = [0, 0, 0], sizes = [16, 16, 128], strides = [1, 1, 1]} : vector<18x16x128xf32> to vector<16x16x128xf32>
    %47 = vector.extract_strided_slice %39 {offsets = [0, 0, 0], sizes = [1, 1, 128], strides = [1, 1, 1]} : vector<3x3x128xf32> to vector<1x1x128xf32>
    %48 = vector.shape_cast %47 : vector<1x1x128xf32> to vector<128xf32>
    %49 = vector.shape_cast %48 : vector<128xf32> to vector<1x1x128xf32>
    %50 = vector.broadcast %49 : vector<1x1x128xf32> to vector<16x16x128xf32>
    %51 = arith.mulf %46, %50 : vector<16x16x128xf32>
    %52 = vector.extract_strided_slice %38 {offsets = [0, 0, 0], sizes = [16, 16, 128], strides = [1, 1, 1]} : vector<18x16x128xf32> to vector<16x16x128xf32>
    %53 = vector.extract_strided_slice %39 {offsets = [0, 1, 0], sizes = [1, 1, 128], strides = [1, 1, 1]} : vector<3x3x128xf32> to vector<1x1x128xf32>
    %54 = vector.shape_cast %53 : vector<1x1x128xf32> to vector<128xf32>
    %55 = vector.shape_cast %54 : vector<128xf32> to vector<1x1x128xf32>
    %56 = vector.broadcast %55 : vector<1x1x128xf32> to vector<16x16x128xf32>
    %57 = arith.mulf %52, %56 : vector<16x16x128xf32>
    %58 = arith.addf %51, %57 : vector<16x16x128xf32>
    %59 = vector.extract_strided_slice %45 {offsets = [0, 0, 0], sizes = [16, 16, 128], strides = [1, 1, 1]} : vector<18x16x128xf32> to vector<16x16x128xf32>
    %60 = vector.extract_strided_slice %39 {offsets = [0, 2, 0], sizes = [1, 1, 128], strides = [1, 1, 1]} : vector<3x3x128xf32> to vector<1x1x128xf32>
    %61 = vector.shape_cast %60 : vector<1x1x128xf32> to vector<128xf32>
    %62 = vector.shape_cast %61 : vector<128xf32> to vector<1x1x128xf32>
    %63 = vector.broadcast %62 : vector<1x1x128xf32> to vector<16x16x128xf32>
    %64 = arith.mulf %59, %63 : vector<16x16x128xf32>
    %65 = arith.addf %58, %64 : vector<16x16x128xf32>
    %66 = arith.addf %41, %65 : vector<16x16x128xf32>
    %67 = vector.extract_strided_slice %43 {offsets = [1, 0, 0], sizes = [16, 16, 128], strides = [1, 1, 1]} : vector<18x16x128xf32> to vector<16x16x128xf32>
    %68 = vector.extract_strided_slice %39 {offsets = [1, 0, 0], sizes = [1, 1, 128], strides = [1, 1, 1]} : vector<3x3x128xf32> to vector<1x1x128xf32>
    %69 = vector.shape_cast %68 : vector<1x1x128xf32> to vector<128xf32>
    %70 = vector.shape_cast %69 : vector<128xf32> to vector<1x1x128xf32>
    %71 = vector.broadcast %70 : vector<1x1x128xf32> to vector<16x16x128xf32>
    %72 = arith.mulf %67, %71 : vector<16x16x128xf32>
    %73 = vector.extract_strided_slice %38 {offsets = [1, 0, 0], sizes = [16, 16, 128], strides = [1, 1, 1]} : vector<18x16x128xf32> to vector<16x16x128xf32>
    %74 = vector.extract_strided_slice %39 {offsets = [1, 1, 0], sizes = [1, 1, 128], strides = [1, 1, 1]} : vector<3x3x128xf32> to vector<1x1x128xf32>
    %75 = vector.shape_cast %74 : vector<1x1x128xf32> to vector<128xf32>
    %76 = vector.shape_cast %75 : vector<128xf32> to vector<1x1x128xf32>
    %77 = vector.broadcast %76 : vector<1x1x128xf32> to vector<16x16x128xf32>
    %78 = arith.mulf %73, %77 : vector<16x16x128xf32>
    %79 = arith.addf %72, %78 : vector<16x16x128xf32>
    %80 = vector.extract_strided_slice %45 {offsets = [1, 0, 0], sizes = [16, 16, 128], strides = [1, 1, 1]} : vector<18x16x128xf32> to vector<16x16x128xf32>
    %81 = vector.extract_strided_slice %39 {offsets = [1, 2, 0], sizes = [1, 1, 128], strides = [1, 1, 1]} : vector<3x3x128xf32> to vector<1x1x128xf32>
    %82 = vector.shape_cast %81 : vector<1x1x128xf32> to vector<128xf32>
    %83 = vector.shape_cast %82 : vector<128xf32> to vector<1x1x128xf32>
    %84 = vector.broadcast %83 : vector<1x1x128xf32> to vector<16x16x128xf32>
    %85 = arith.mulf %80, %84 : vector<16x16x128xf32>
    %86 = arith.addf %79, %85 : vector<16x16x128xf32>
    %87 = arith.addf %66, %86 : vector<16x16x128xf32>
    %88 = vector.extract_strided_slice %43 {offsets = [2, 0, 0], sizes = [16, 16, 128], strides = [1, 1, 1]} : vector<18x16x128xf32> to vector<16x16x128xf32>
    %89 = vector.extract_strided_slice %39 {offsets = [2, 0, 0], sizes = [1, 1, 128], strides = [1, 1, 1]} : vector<3x3x128xf32> to vector<1x1x128xf32>
    %90 = vector.shape_cast %89 : vector<1x1x128xf32> to vector<128xf32>
    %91 = vector.shape_cast %90 : vector<128xf32> to vector<1x1x128xf32>
    %92 = vector.broadcast %91 : vector<1x1x128xf32> to vector<16x16x128xf32>
    %93 = arith.mulf %88, %92 : vector<16x16x128xf32>
    %94 = vector.extract_strided_slice %38 {offsets = [2, 0, 0], sizes = [16, 16, 128], strides = [1, 1, 1]} : vector<18x16x128xf32> to vector<16x16x128xf32>
    %95 = vector.extract_strided_slice %39 {offsets = [2, 1, 0], sizes = [1, 1, 128], strides = [1, 1, 1]} : vector<3x3x128xf32> to vector<1x1x128xf32>
    %96 = vector.shape_cast %95 : vector<1x1x128xf32> to vector<128xf32>
    %97 = vector.shape_cast %96 : vector<128xf32> to vector<1x1x128xf32>
    %98 = vector.broadcast %97 : vector<1x1x128xf32> to vector<16x16x128xf32>
    %99 = arith.mulf %94, %98 : vector<16x16x128xf32>
    %100 = arith.addf %93, %99 : vector<16x16x128xf32>
    %101 = vector.extract_strided_slice %45 {offsets = [2, 0, 0], sizes = [16, 16, 128], strides = [1, 1, 1]} : vector<18x16x128xf32> to vector<16x16x128xf32>
    %102 = vector.extract_strided_slice %39 {offsets = [2, 2, 0], sizes = [1, 1, 128], strides = [1, 1, 1]} : vector<3x3x128xf32> to vector<1x1x128xf32>
    %103 = vector.shape_cast %102 : vector<1x1x128xf32> to vector<128xf32>
    %104 = vector.shape_cast %103 : vector<128xf32> to vector<1x1x128xf32>
    %105 = vector.broadcast %104 : vector<1x1x128xf32> to vector<16x16x128xf32>
    %106 = arith.mulf %101, %105 : vector<16x16x128xf32>
    %107 = arith.addf %100, %106 : vector<16x16x128xf32>
    %108 = arith.addf %87, %107 : vector<16x16x128xf32>
    %c0_27 = arith.constant 0 : index
    %c0_28 = arith.constant 0 : index
    %109 = vector.load %arg8[%c0_27, %c0_28] : memref<1x128xf32, #tpu.memory_space<vmem>>, vector<1x128xf32>
    %110 = vector.shape_cast %109 : vector<1x128xf32> to vector<1x1x128xf32>
    %111 = vector.broadcast %110 : vector<1x1x128xf32> to vector<16x16x128xf32>
    %112 = arith.addf %108, %111 : vector<16x16x128xf32>
    %cst_29 = arith.constant 3.000000e+00 : f32
    %113 = vector.broadcast %cst_29 : f32 to vector<16x16x128xf32>
    %114 = arith.addf %112, %113 : vector<16x16x128xf32>
    %cst_30 = arith.constant 0.000000e+00 : f32
    %cst_31 = arith.constant 6.000000e+00 : f32
    %115 = vector.broadcast %cst_30 : f32 to vector<16x16x128xf32>
    %116 = arith.maximumf %115, %114 : vector<16x16x128xf32>
    %117 = vector.broadcast %cst_31 : f32 to vector<16x16x128xf32>
    %118 = arith.minimumf %117, %116 : vector<16x16x128xf32>
    %119 = arith.mulf %112, %118 : vector<16x16x128xf32>
    %cst_32 = arith.constant 0.166666672 : f32
    %120 = vector.broadcast %cst_32 : f32 to vector<16x16x128xf32>
    %121 = arith.mulf %119, %120 : vector<16x16x128xf32>
    %c0_i32_33 = arith.constant 0 : i32
    %122 = arith.cmpi eq, %arg1, %c0_i32_33 : i32
    %123 = arith.extui %122 : i1 to i32
    %c0_i32_34 = arith.constant 0 : i32
    %124 = arith.cmpi ne, %123, %c0_i32_34 : i32
    scf.if %124 {
      %cst_52 = arith.constant 0.000000e+00 : f32
      %144 = vector.broadcast %cst_52 : f32 to vector<1x128xf32>
      %c0_53 = arith.constant 0 : index
      %c0_54 = arith.constant 0 : index
      %145 = vector.load %arg14[%c0_53, %c0_54] : memref<1x128xf32, #tpu.memory_space<vmem>>, vector<1x128xf32>
      tpu.vector_store %arg14[%c0_53, %c0_54], %144 {strides = array<i32>} : memref<1x128xf32, #tpu.memory_space<vmem>>, vector<1x128xf32>,
    } else {
    }
    %c0_35 = arith.constant 0 : index
    %c0_36 = arith.constant 0 : index
    %125 = vector.load %arg14[%c0_35, %c0_36] : memref<1x128xf32, #tpu.memory_space<vmem>>, vector<1x128xf32>
    %cst_37 = arith.constant dense<0.000000e+00> : vector<128xf32>
    %126 = vector.multi_reduction <add>, %121, %cst_37 [0, 1] : vector<16x16x128xf32> to vector<128xf32>
    %127 = vector.shape_cast %126 : vector<128xf32> to vector<1x128xf32>
    %128 = arith.addf %125, %127 : vector<1x128xf32>
    %c0_38 = arith.constant 0 : index
    %c0_39 = arith.constant 0 : index
    %129 = vector.load %arg14[%c0_38, %c0_39] : memref<1x128xf32, #tpu.memory_space<vmem>>, vector<1x128xf32>
    tpu.vector_store %arg14[%c0_38, %c0_39], %128 {strides = array<i32>} : memref<1x128xf32, #tpu.memory_space<vmem>>, vector<1x128xf32>,
    %c16_i32 = arith.constant 16 : i32
    %130 = arith.muli %arg1, %c16_i32 : i32
    %131 = arith.index_cast %130 : i32 to index
    %c0_40 = arith.constant 0 : index
    %c0_41 = arith.constant 0 : index
    %132 = vector.load %arg13[%131, %c0_40, %c0_41] : memref<16x16x128xf32, #tpu.memory_space<vmem>>, vector<16x16x128xf32>
    tpu.vector_store %arg13[%131, %c0_40, %c0_41], %121 {strides = array<i32>} : memref<16x16x128xf32, #tpu.memory_space<vmem>>, vector<16x16x128xf32>,
    %c0_42 = arith.constant 0 : index
    %c0_43 = arith.constant 0 : index
    %c0_44 = arith.constant 0 : index
    %c0_45 = arith.constant 0 : index
    %133 = vector.load %arg3[%c0_42, %c0_43, %c0_44, %c0_45] : memref<1x16x16x128xbf16, #tpu.memory_space<vmem>>, vector<1x16x16x128xbf16>
    %134 = vector.shape_cast %133 : vector<1x16x16x128xbf16> to vector<16x16x128xbf16>
    %135 = arith.extf %134 : vector<16x16x128xbf16> to vector<16x16x128xf32>
    %c16_i32_46 = arith.constant 16 : i32
    %136 = arith.muli %arg1, %c16_i32_46 : i32
    %c0_47 = arith.constant 0 : index
    %137 = arith.index_cast %136 : i32 to index
    %c0_48 = arith.constant 0 : index
    %c0_49 = arith.constant 0 : index
    %138 = vector.load %arg12[%c0_47, %137, %c0_48, %c0_49] : memref<1x16x16x128xf32, #tpu.memory_space<vmem>>, vector<1x16x16x128xf32>
    %139 = vector.shape_cast %138 : vector<1x16x16x128xf32> to vector<16x16x128xf32>
    %140 = vector.shape_cast %135 : vector<16x16x128xf32> to vector<1x16x16x128xf32>
    tpu.vector_store %arg12[%c0_47, %137, %c0_48, %c0_49], %140 {strides = array<i32>} : memref<1x16x16x128xf32, #tpu.memory_space<vmem>>, vector<1x16x16x128xf32>,
    %c0_i32_50 = arith.constant 0 : i32
    %141 = arith.cmpi eq, %arg1, %c0_i32_50 : i32
    %142 = arith.extui %141 : i1 to i32
    %c0_i32_51 = arith.constant 0 : i32
    %143 = arith.cmpi ne, %142, %c0_i32_51 : i32
    scf.if %143 {
      %c0_52 = arith.constant 0 : index
      %c0_53 = arith.constant 0 : index
      %144 = vector.load %arg14[%c0_52, %c0_53] : memref<1x128xf32, #tpu.memory_space<vmem>>, vector<1x128xf32>
      %cst_54 = arith.constant 3.906250e-03 : f32
      %145 = vector.broadcast %cst_54 : f32 to vector<1x128xf32>
      %146 = arith.mulf %144, %145 : vector<1x128xf32>
      %c0_55 = arith.constant 0 : index
      %c0_56 = arith.constant 0 : index
      %147 = vector.load %arg9[%c0_55, %c0_56] : memref<128x128xf32, #tpu.memory_space<vmem>>, vector<128x128xf32>
      %cst_57 = arith.constant dense<0.000000e+00> : vector<1x128xf32>
      %148 = tpu.matmul %146, %147, %cst_57 {dimension_numbers = #tpu.dot_dimension_numbers<[1], [0], [0], [1], [0, 0, 1, 1], [], []>} : vector<1x128xf32>, vector<128x128xf32>, vector<1x128xf32> -> vector<1x128xf32>
      %149 = arith.negf %148 : vector<1x128xf32>
      %150 = math.exp %149 : vector<1x128xf32>
      %cst_58 = arith.constant 1.000000e+00 : f32
      %151 = vector.broadcast %cst_58 : f32 to vector<1x128xf32>
      %152 = arith.addf %151, %150 : vector<1x128xf32>
      %153 = arith.divf %151, %152 : vector<1x128xf32>
      %cst_59 = arith.constant 1.000000e+00 : f32
      %154 = vector.broadcast %cst_59 : f32 to vector<1x128xf32>
      %155 = arith.addf %154, %153 : vector<1x128xf32>
      %c0_60 = arith.constant 0 : index
      %c0_61 = arith.constant 0 : index
      %c0_62 = arith.constant 0 : index
      %156 = vector.load %arg13[%c0_60, %c0_61, %c0_62] : memref<16x16x128xf32, #tpu.memory_space<vmem>>, vector<16x16x128xf32>
      %157 = vector.shape_cast %155 : vector<1x128xf32> to vector<1x1x128xf32>
      %158 = vector.broadcast %157 : vector<1x1x128xf32> to vector<16x16x128xf32>
      %159 = arith.mulf %156, %158 : vector<16x16x128xf32>
      %160 = vector.shape_cast %159 : vector<16x16x128xf32> to vector<256x128xf32>
      %161 = arith.truncf %160 : vector<256x128xf32> to vector<256x128xbf16>
      %c0_63 = arith.constant 0 : index
      %c0_64 = arith.constant 0 : index
      %162 = vector.load %arg10[%c0_63, %c0_64] : memref<128x128xbf16, #tpu.memory_space<vmem>>, vector<128x128xbf16>
      %cst_65 = arith.constant dense<0.000000e+00> : vector<256x128xf32>
      %163 = tpu.matmul %161, %162, %cst_65 {dimension_numbers = #tpu.dot_dimension_numbers<[1], [0], [0], [1], [0, 0, 1, 1], [], []>} : vector<256x128xbf16>, vector<128x128xbf16>, vector<256x128xf32> -> vector<256x128xf32>
      %c0_66 = arith.constant 0 : index
      %c0_67 = arith.constant 0 : index
      %164 = vector.load %arg11[%c0_66, %c0_67] : memref<1x128xf32, #tpu.memory_space<vmem>>, vector<1x128xf32>
      %165 = vector.broadcast %164 : vector<1x128xf32> to vector<256x128xf32>
      %166 = arith.addf %163, %165 : vector<256x128xf32>
      %167 = vector.shape_cast %166 : vector<256x128xf32> to vector<16x16x128xf32>
      %c0_68 = arith.constant 0 : index
      %c0_69 = arith.constant 0 : index
      %c0_70 = arith.constant 0 : index
      %c0_71 = arith.constant 0 : index
      %168 = vector.load %arg12[%c0_68, %c0_69, %c0_70, %c0_71] : memref<1x16x16x128xf32, #tpu.memory_space<vmem>>, vector<1x16x16x128xf32>
      %169 = vector.shape_cast %168 : vector<1x16x16x128xf32> to vector<16x16x128xf32>
      %170 = arith.addf %167, %169 : vector<16x16x128xf32>
      %c0_72 = arith.constant 0 : index
      %c0_73 = arith.constant 0 : index
      %c0_74 = arith.constant 0 : index
      %c0_75 = arith.constant 0 : index
      %171 = vector.load %arg12[%c0_72, %c0_73, %c0_74, %c0_75] : memref<1x16x16x128xf32, #tpu.memory_space<vmem>>, vector<1x16x16x128xf32>
      %172 = vector.shape_cast %171 : vector<1x16x16x128xf32> to vector<16x16x128xf32>
      %173 = vector.shape_cast %170 : vector<16x16x128xf32> to vector<1x16x16x128xf32>
      tpu.vector_store %arg12[%c0_72, %c0_73, %c0_74, %c0_75], %173 {strides = array<i32>} : memref<1x16x16x128xf32, #tpu.memory_space<vmem>>, vector<1x16x16x128xf32>,
    } else {
    }
    return
  }
  func.func @transform_0(%arg0: i32, %arg1: i32) -> (i32, i32, i32, i32) {
    %c16_i32 = arith.constant 16 : i32
    %0 = arith.muli %arg1, %c16_i32 : i32
    %c1_i32 = arith.constant 1 : i32
    %1 = arith.subi %0, %c1_i32 : i32
    %c0_i32 = arith.constant 0 : i32
    %2 = arith.maxsi %1, %c0_i32 : i32
    %c0_i32_0 = arith.constant 0 : i32
    %c0_i32_1 = arith.constant 0 : i32
    %c0_i32_2 = arith.constant 0 : i32
    return %arg0, %2, %c0_i32_0, %c0_i32_1 : i32, i32, i32, i32
  }
  func.func @transform_1(%arg0: i32, %arg1: i32) -> (i32, i32, i32, i32) {
    %c0_i32 = arith.constant 0 : i32
    %c0_i32_0 = arith.constant 0 : i32
    %c0_i32_1 = arith.constant 0 : i32
    return %arg0, %arg1, %c0_i32, %c0_i32_0 : i32, i32, i32, i32
  }
  func.func @transform_2(%arg0: i32, %arg1: i32) -> (i32, i32, i32, i32) {
    %c1_i32 = arith.constant 1 : i32
    %0 = arith.addi %arg1, %c1_i32 : i32
    %c16_i32 = arith.constant 16 : i32
    %1 = arith.muli %0, %c16_i32 : i32
    %c15_i32 = arith.constant 15 : i32
    %2 = arith.minsi %1, %c15_i32 : i32
    %c0_i32 = arith.constant 0 : i32
    %c0_i32_0 = arith.constant 0 : i32
    %c0_i32_1 = arith.constant 0 : i32
    return %arg0, %2, %c0_i32, %c0_i32_0 : i32, i32, i32, i32
  }
  func.func @transform_3(%arg0: i32, %arg1: i32) -> (i32, i32) {
    %c0_i32 = arith.constant 0 : i32
    %c0_i32_0 = arith.constant 0 : i32
    %c0_i32_1 = arith.constant 0 : i32
    return %c0_i32, %c0_i32_0 : i32, i32
  }
  func.func @transform_4(%arg0: i32, %arg1: i32) -> (i32, i32) {
    %c0_i32 = arith.constant 0 : i32
    %c0_i32_0 = arith.constant 0 : i32
    %c0_i32_1 = arith.constant 0 : i32
    return %c0_i32, %c0_i32_0 : i32, i32
  }
  func.func @transform_5(%arg0: i32, %arg1: i32) -> (i32, i32, i32) {
    %c0_i32 = arith.constant 0 : i32
    %c0_i32_0 = arith.constant 0 : i32
    %c0_i32_1 = arith.constant 0 : i32
    %c0_i32_2 = arith.constant 0 : i32
    return %c0_i32, %c0_i32_0, %c0_i32_1 : i32, i32, i32
  }
  func.func @transform_6(%arg0: i32, %arg1: i32) -> (i32, i32) {
    %c0_i32 = arith.constant 0 : i32
    %c0_i32_0 = arith.constant 0 : i32
    %c0_i32_1 = arith.constant 0 : i32
    return %c0_i32, %c0_i32_0 : i32, i32
  }
  func.func @transform_7(%arg0: i32, %arg1: i32) -> (i32, i32) {
    %c0_i32 = arith.constant 0 : i32
    %c0_i32_0 = arith.constant 0 : i32
    %c0_i32_1 = arith.constant 0 : i32
    return %c0_i32, %c0_i32_0 : i32, i32
  }
  func.func @transform_8(%arg0: i32, %arg1: i32) -> (i32, i32) {
    %c0_i32 = arith.constant 0 : i32
    %c0_i32_0 = arith.constant 0 : i32
    %c0_i32_1 = arith.constant 0 : i32
    return %c0_i32, %c0_i32_0 : i32, i32
  }
  func.func @transform_9(%arg0: i32, %arg1: i32) -> (i32, i32) {
    %c0_i32 = arith.constant 0 : i32
    %c0_i32_0 = arith.constant 0 : i32
    %c0_i32_1 = arith.constant 0 : i32
    return %c0_i32, %c0_i32_0 : i32, i32
  }
  func.func @transform_10(%arg0: i32, %arg1: i32) -> (i32, i32, i32, i32) {
    %c0_i32 = arith.constant 0 : i32
    %c0_i32_0 = arith.constant 0 : i32
    %c0_i32_1 = arith.constant 0 : i32
    %c0_i32_2 = arith.constant 0 : i32
    return %arg0, %c0_i32, %c0_i32_0, %c0_i32_1 : i32, i32, i32, i32
  }
}

</mosaic_0001>

<bundles_post_ra>
// kernel: tpu_custom_call.1
= control target key start
LH: loop header
LB: loop body
LE: loop exit
PB: predicated region body
PF: predicated region fallthrough
CT: control target
= control target key end

     0   :  { %s5310_s0 = inlined_call_operand.hbm [shape: bf16[2,16,16,128], index: 0, kind: input, shape index: {}]   ;;  %s5311_s1 = inlined_call_operand.hbm [shape: bf16[2,16,16,128], index: 1, kind: input, shape index: {}]   ;;  %s5312_s2 = inlined_call_operand.hbm [shape: bf16[2,16,16,128], index: 2, kind: input, shape index: {}]   ;;  %s5313_s3 = inlined_call_operand.hbm [shape: bf16[128,128], index: 3, kind: input, shape index: {}]   ;;  %s5314_s4 = inlined_call_operand.vmem [shape: f32[1,128], index: 4, kind: input, shape index: {}]   ;;  %s5315_s5 = inlined_call_operand.hbm [shape: f32[3,3,128], index: 5, kind: input, shape index: {}]   ;;  %s5316_s6 = inlined_call_operand.vmem [shape: f32[1,128], index: 6, kind: input, shape index: {}]   ;;  %s5317_s7 = inlined_call_operand.hbm [shape: f32[128,128], index: 7, kind: input, shape index: {}]   ;;  %s5318_s8 = inlined_call_operand.hbm [shape: bf16[128,128], index: 8, kind: input, shape index: {}]   ;;  %s5319_s9 = inlined_call_operand.vmem [shape: f32[1,128], index: 9, kind: input, shape index: {}]   ;;  %s5320_s10 = inlined_call_operand.hbm [shape: f32[2,16,16,128], index: 10, kind: output, shape index: {}]  }
   0x1   :  { %5356 = sst [smem:[#allocation61_spill]] %s5311_s1 }
   0x2   :  { %5357 = sst [smem:[#allocation62_spill]] %s5313_s3 }
   0x3   :  { %5358 = sst [smem:[#allocation63_spill]] %s5317_s7 }
   0x4   :  { %5359 = sst [smem:[#allocation64_spill]] %s5320_s10 }
   0x5   :  { %15 = vsyncpa [#allocation5], 0 }
   0x6   :  { %17 = vsyncpa [#allocation5 + $0x1], 0 }
   0x7   :  { %18 = vsyncpa [#allocation8], 0 }
   0x8   :  { %20 = vsyncpa [#allocation8 + $0x1], 0 }
   0x9   :  { %21 = vsyncpa [#allocation11], 0 }
   0xa   :  { %22 = vsyncpa [#allocation14], 0 }
   0xb   :  { %23 = vsyncpa [#allocation6], 0 }
   0xc   :  { %25 = vsyncpa [#allocation6 + $0x1], 0  ;;  %s3722_s13 = smov 0   ;;  %s3724_s14 = smov 0  }
   0xd   :  { %s3726_s15 = smov 0   ;;  %s3728_s16 = smov 0  }
   0xe   :  { %s3730_s17 = smov 0   ;;  %s3732_s18 = smov 0  }
   0xf LB: > { %5360 = sst [smem:[#allocation22_spill]] %s3634_s13  ;;  %s3753_s19 = sadd.s32 4294967295, %s3654_s18   ;;  %s3654_s18 = sphi %s3732_s18, %s31_s18   ;;  %s3650_s17 = sphi %s3730_s17, %s5457_s17   ;;  %s3646_s16 = sphi %s3728_s16, %s5456_s16   ;;  %s3642_s15 = sphi %s3726_s15, %s5455_s15   ;;  %s3638_s14 = sphi %s3724_s14, %s5459_s14   ;;  %s3634_s13 = sphi %s3722_s13, %s5458_s13  }
  0x10   : > { %5361 = sst [smem:[#allocation23_spill]] %s3642_s15  ;;  %s2919_s20 = sadd.s32 4294967294, %s3654_s18  }
  0x11   : > { %5362 = sst [smem:[#allocation24_spill]] %s3650_s17  ;;  %p73_p0 = scmp.ne.s32.totalorder %s3638_s14, %s3634_s13 }
  0x12   : > { %5363 = sst [smem:[#allocation25_spill]] %s3654_s18  ;;  %p74_p1 = scmp.eq.s32.totalorder %s3753_s19, 0 }
  0x13   : > { %p308_p2 = scmp.eq.s32.totalorder %s3753_s19, 1  ;;  %p314_p3 = scmp.eq.s32.totalorder %s2919_s20, 1 }
  0x14   : > { %p3762_p4 = por %p74_p1, %p73_p0  ;;  %p2920_p5 = scmp.ge.s32.totalorder %s3654_s18, 1 }
  0x15   : > { %p3767_p6 = por %p314_p3, %p73_p0  ;;  %p321_p7 = scmp.lt.s32.totalorder %s3654_s18, 3 }
  0x16   : > { %s5367_s3 = sld [smem:[#allocation62_spill]]  ;;  %s3656_s27 = smov [#allocation10]  }
  0x17   : > { %s5365_s22 = scalar_select %p3767_p6, 1, 0 }
  0x18   : > { %p3775_p8 = pnand %p2920_p5, %p321_p7  ;;  %s334_s28 = sshll.u32 %s3656_s27, 4  ;;  %s335_s28 = int_to_ptr.vmem [resolvable:$true] %s334_s28 }
  0x19   : > { %5366 = sst [smem:[#allocation26_spill]] %s5365_s22  ;;  %s5321_s20 = smov 64  }
  0x1a   : > { %p3245_p9 = pneg %p3775_p8  ;;  %s5370_s7 = sld [smem:[#allocation63_spill]] }
  0x1b   : > { %s5323_s23 = smov 4   ;;  %s3659_s24 = smov [#allocation13]  }
  0x1c   : > { %s332_s25 = sshll.u32 %s5367_s3, 4  ;;  %p3783_p10 = pnand %p3245_p9, %p74_p1  ;;  %s333_s25 = int_to_ptr.hbm [resolvable:$true] %s332_s25 }
  0x1d   : > { %s368_s27 = sshll.u32 %s3659_s24, 4  ;;  %s3660_s3 = smov 128   ;;  %s369_s27 = int_to_ptr.vmem [resolvable:$true] %s368_s27 }
  0x1e   : > { %3248 = dma.hbm_to_vmem [thread:$0]  (!%p3783_p10), %s333_s25, 1024, %s335_s28, [#allocation11], %s5321_s20, %s5321_s20, %s5323_s23  }
  0x1f   : > { %s3661_s30 = smov 8   ;;  %s43_s11 = sadd.s32 1, %s3650_s17 }
  0x20   : > { %s366_s12 = sshll.u32 %s5370_s7, 4  ;;  %s60_s7 = sadd.s32 1, %s3642_s15  ;;  %s367_s12 = int_to_ptr.hbm [resolvable:$true] %s366_s12 }
  0x21   : > { %3254 = dma.hbm_to_vmem [thread:$0]  (!%p3783_p10), %s367_s12, 2048, %s369_s27, [#allocation14], %s3660_s3, %s3660_s3, %s3661_s30  }
  0x22   : > { %p45_p12 = scmp.ge.s32.totalorder %s43_s11, 2  ;;  %p67_p13 = scmp.ne.s32.totalorder %s3642_s15, %s3638_s14 }
  0x23   : > { %p68_p0 = scmp.eq.s32.totalorder %s3654_s18, 0  ;;  %p3276_p3 = scmp.lt.s32.totalorder %s3654_s18, 2 }
  0x24   : > { %s5461_s11 = smov (%p45_p12, %s43_s11), 0  ;;  %p3808_p7 = por %p308_p2, %p67_p13 }
  0x25   : > { %5371 = sst [smem:[#allocation27_spill]] %s5461_s11  ;;  %p69_p5 = por %p68_p0, %p67_p13 }
  0x26   : > { %s5372_s25 = scalar_select %p3808_p7, 1, 0 }
  0x27   : > { %s55_s28 = ssub.s32 %s3650_s17, %s5461_s11  ;;  %s3815_s24 = sand.u32 1, %s3642_s15  }
  0x28   : > { %5373 = sst [smem:[#allocation28_spill]] %s5372_s25  ;;  %p58_p9 = scmp.eq.s32.totalorder %s55_s28, 0 }
  0x29   : > { %s3818_s3 = sshll.u32 %s3650_s17, 7  ;;  %p3820_p11 = pnand %p3276_p3, %p69_p5 }
  0x2a   : > { %s427_s27 = sand.u32 1, %s3654_s18   ;;  %s2929_s20 = sshll.u32 %s3815_s24, 7 }
  0x2b   : > { %s3826_s30 = scalar_select %p58_p9, %s3642_s15, %s60_s7  }
  0x2c   : > { %s5376_s1 = sld [smem:[#allocation61_spill]]  ;;  %s431_s28 = scalar_lea.vmem [#allocation7], %s2929_s20 }
  0x2d   : > { %5375 = sst [smem:[#allocation29_spill]] %s3826_s30  ;;  %s442_s17 = sshll.u32 %s431_s28, 4  ;;  %s443_s17 = int_to_ptr.vmem [resolvable:$true] %s442_s17 }
  0x2e   : > { %s349_s18 = sshll.u32 %s5315_s5, 4  ;;  %s3836_s7 = scalar_lea.sflag [#allocation8], %s427_s27  ;;  %s350_s18 = int_to_ptr.hbm [resolvable:$true] %s349_s18 }
  0x2f   : > { %s5377_s30 = smov 4   ;;  %s5378_s15 = smov 64  }
  0x30   : > { %s3662_s22 = smov [#allocation12]   ;;  %s380_s28 = sshll.u32 %s5318_s8, 4  ;;  %s381_s28 = int_to_ptr.hbm [resolvable:$true] %s380_s28 }
  0x31   : > { %s351_s23 = sshll.u32 %s3662_s22, 4  ;;  %s3663_s10 = smov [#allocation15]   ;;  %s352_s23 = int_to_ptr.vmem [resolvable:$true] %s351_s23 }
  0x32   : > { %s439_s11 = scalar_lea.hbm %s5376_s1, %s3818_s3  ;;  %s382_s25 = sshll.u32 %s3663_s10, 4  ;;  %s383_s25 = int_to_ptr.vmem [resolvable:$true] %s382_s25 }
  0x33   : > { %s440_s13 = sshll.u32 %s439_s11, 4  ;;  %s414_s22 = scalar_lea.hbm %s5310_s0, %s3818_s3  ;;  %s441_s13 = int_to_ptr.hbm [resolvable:$true] %s440_s13 }
  0x34   : > { %3264 = dma.hbm_to_vmem [thread:$0]  (!%p3820_p11), %s441_s13, 2048, %s443_s17, %s3836_s7, %s5378_s15, %s5378_s15, %s5377_s30  }
  0x35   : > { %3251 = dma.hbm_to_vmem [thread:$0]  (!%p3783_p10), %s350_s18, 192, %s352_s23, [#allocation11], %s5378_s15, %s5378_s15, %s5377_s30  }
  0x36   : > { %s2926_s13 = sshll.u32 %s3815_s24, 3  ;;  %s415_s1 = sshll.u32 %s414_s22, 4  ;;  %s416_s1 = int_to_ptr.hbm [resolvable:$true] %s415_s1 }
  0x37   : > { %3257 = dma.hbm_to_vmem [thread:$0]  (!%p3783_p10), %s381_s28, 1024, %s383_s25, [#allocation14], %s5378_s15, %s5378_s15, %s5377_s30  }
  0x38   : > { %s403_s20 = scalar_lea.vmem [#allocation4], %s2926_s13  ;;  %s400_s18 = scalar_lea.sflag [#allocation5], %s3815_s24 }
  0x39   : > { %s417_s11 = sshll.u32 %s403_s20, 4  ;;  %s456_s29 = scalar_lea.vmem [#allocation9], %s2926_s13  ;;  %s418_s11 = int_to_ptr.vmem [resolvable:$true] %s417_s11 }
  0x3a   : > { %3261 = dma.hbm_to_vmem [thread:$0]  (!%p3820_p11), %s416_s1, 128, %s418_s11, %s400_s18, %s5378_s15, %s5378_s15, %s5377_s30  }
  0x3b   : > { %s470_s23 = sshll.u32 %s456_s29, 4  ;;  %s3089_s28 = sadd.s32 120, %s3818_s3  ;;  %s471_s23 = int_to_ptr.vmem [resolvable:$true] %s470_s23 }
  0x3c   : > { %s467_s17 = scalar_lea.hbm %s5312_s2, %s3089_s28  ;;  %482 = sbr.rel (%p3775_p8) target bundleno = 1001 (0x3e9), region = 60 }
  0x3d   : > { %s468_s27 = sshll.u32 %s467_s17, 4  ;;  %s469_s27 = int_to_ptr.hbm [resolvable:$true] %s468_s27 }
  0x3e   : > { %3267 = dma.hbm_to_vmem [thread:$0]  (!%p3820_p11), %s469_s27, 128, %s471_s23, %s3836_s7, %s5378_s15, %s5378_s15, %s5377_s30  }
  0x41   : > { %s3881_s1 = sand.u32 1, %s3638_s14  }
  0x42   : > { %s2936_s24 = sshll.u32 %s3881_s1, 3  ;;  %s485_s3 = scalar_lea.sflag [#allocation5], %s3881_s1 }
  0x43   : > { %s3885_s13 = scalar_lea.vmem [#allocation4], %s2936_s24 }
  0x44   : > { %3613 = dma.done.wait (%p3762_p4), %s485_s3, 128  }
  0x45   : > { %3615 = vsyncadd (%p3762_p4), %s485_s3, 4294967168  ;;  %s494_s15 = sand.u32 1, %s3753_s19   ;;  %s2937_s26 = sshll.u32 %s3881_s1, 7 }
  0x46   : > { %s495_s12 = scalar_lea.sflag [#allocation8], %s494_s15  ;;  %s3893_s30 = scalar_lea.vmem [#allocation7], %s2937_s26 }
  0x47   : > { %3617 = dma.done.wait (%p3762_p4), %s495_s12, 2176  }
  0x48   : > { %3619 = vsyncadd (%p3762_p4), %s495_s12, 4294965120  ;;  %s3899_s7 = scalar_lea.vmem [#allocation9], %s2936_s24 }
  0x49   : > { %3621 = dma.done.wait (%p74_p1), [#allocation11], 1216  }
  0x4a   : > { %3623 = vsyncadd (%p74_p1), [#allocation11], 4294966080 }
  0x4b   : > { %3625 = dma.done.wait (%p74_p1), [#allocation14], 3072  }
  0x4c   : > { %3627 = vsyncadd (%p74_p1), [#allocation14], 4294964224  ;;  %v3115_v0 = vld [vmem:[#allocation10 + $0x38] sm:$0xff]  ;;  %v3114_v1 = vld [vmem:[#allocation10 + $0x30] sm:$0xff]  ;;  %v3664_v31 = vmov 0.0   ;;  %vm1157_vm0 = vcmask 1040384  }
  0x4d   : > { %797 = vmatpush.bf16.msra.mxu0 %v3115_v0  ;;  %3205 = vmatpush.bf16.msra.mxu3 %v3115_v0  ;;  %v3113_v2 = vld [vmem:[#allocation10 + $0x28] sm:$0xff]  ;;  %v3112_v3 = vld [vmem:[#allocation10 + $0x20] sm:$0xff]  ;;  %v3111_v4 = vld [vmem:[#allocation10 + $0x18] sm:$0xff]  ;;  %2159 = vst [vmem:[#allocation3] sm:$0x1] %v3664_v31  ;;  %v3932_v36 = vrot.slane %v3664_v31, 7 }
  0x4e   : > { %v3110_v5 = vld [vmem:[#allocation10 + $0x10] sm:$0xff]  ;;  %v3109_v6 = vld [vmem:[#allocation10 + $0x8] sm:$0xff]  ;;  %v3108_v7 = vld [vmem:[#allocation10] sm:$0xff]  ;;  %vm1266_vm1 = vcmask 1046528   ;;  %v3956_v57 = vrot.slane %v3664_v31, 1  ;;  %s2943_s25 = sshll.u32 %s3881_s1, 8 }
  0x4f   : > { %v3090_v8 = vld [vmem:[%s3885_s13] sm:$0xff]  ;;  %v3099_v9 = vld [vmem:[%s3893_s30 + $0x40] sm:$0xff]  ;;  %v3100_v11 = vld [vmem:[%s3893_s30 + $0x48] sm:$0xff]  ;;  %v3948_v50 = vsel %vm1157_vm0, 0.0, %v3932_v36  ;;  %s5192_s17 = scalar_lea.vmem [#allocation16], %s2943_s25  ;;  %s3124_s27 = sshll.u32 %s3646_s16, 8 }
  0x50   : > { %v3091_v10 = vld [vmem:[%s3893_s30] sm:$0xff]  ;;  %v3092_v12 = vld [vmem:[%s3893_s30 + $0x8] sm:$0xff]  ;;  %v3101_v13 = vld [vmem:[%s3893_s30 + $0x50] sm:$0xff]  ;;  %5379 = vst [vmem:[#allocation30_spill] sm:$0xff] %v3948_v50  ;;  %s5447_s13 = sld [smem:[#allocation64_spill]] }
  0x51   : > { %798 = vmatpush.bf16.msra.mxu0 %v3114_v1  ;;  %3206 = vmatpush.bf16.msra.mxu3 %v3114_v1  ;;  %v3093_v14 = vld [vmem:[%s3893_s30 + $0x10] sm:$0xff]  ;;  %v3102_v15 = vld [vmem:[%s3893_s30 + $0x58] sm:$0xff]  ;;  %v3103_v17 = vld [vmem:[%s3893_s30 + $0x60] sm:$0xff]  ;;  %5380 = vst [vmem:[#allocation31_spill] sm:$0xff] %v3956_v57 }
  0x52   : > { %v3094_v16 = vld [vmem:[%s3893_s30 + $0x18] sm:$0xff]  ;;  %v3095_v18 = vld [vmem:[%s3893_s30 + $0x20] sm:$0xff]  ;;  %v3104_v19 = vld [vmem:[%s3893_s30 + $0x68] sm:$0xff] }
  0x53   : > { %v3096_v20 = vld [vmem:[%s3893_s30 + $0x28] sm:$0xff]  ;;  %v3105_v21 = vld [vmem:[%s3893_s30 + $0x70] sm:$0xff]  ;;  %v3106_v23 = vld [vmem:[%s3893_s30 + $0x78] sm:$0xff] }
  0x54   : > { %v3097_v22 = vld [vmem:[%s3893_s30 + $0x30] sm:$0xff]  ;;  %v3098_v24 = vld [vmem:[%s3893_s30 + $0x38] sm:$0xff]  ;;  %v3929_v26 = vld [vmem:[%s5314_s4] ss:$0 sm:$0xff] }
  0x55   : > { %799 = vmatpush.bf16.msra.mxu0 %v3113_v2  ;;  %3207 = vmatpush.bf16.msra.mxu3 %v3113_v2  ;;  %v1118_v34 = vld [vmem:[#allocation12] sm:$0x7]  ;;  %v1119_v38 = vld [vmem:[#allocation12 + $0x4] sm:$0x7]  ;;  %v1120_v40 = vld [vmem:[#allocation12 + $0x8] sm:$0x7] }
  0x56   : > { %v3935_v41 = vperm.slane %v1118_v34, 0  ;;  %v3937_v44 = vperm.slane %v1118_v34, 1  ;;  %v3940_v47 = vperm.slane %v1119_v38, 0  ;;  %v3942_v48 = vperm.slane %v1119_v38, 1  ;;  %s5448_s26 = smov %s5447_s13  ;;  %s2739_s15 = scalar_lea.hbm %s5447_s13, %s3124_s27 }
  0x57   : > { %v3944_v49 = vperm.slane %v1120_v40, 0  ;;  %v3950_v52 = vperm.slane %v1120_v40, 1  ;;  %v3952_v53 = vperm.slane %v1118_v34, 2  ;;  %v3954_v55 = vperm.slane %v1119_v38, 2  ;;  %s2742_s19 = sshll.u32 %s2739_s15, 4  ;;  %s3580_s11 = scalar_lea.hbm %s5448_s26, 512  ;;  %s2743_s19 = int_to_ptr.hbm [resolvable:$true] %s2742_s19 }
  0x58   : > { %v3959_v59 = vperm.slane %v1120_v40, 2  ;;  %v1376_v60 = vmul.f32 %v3935_v41, %v3948_v50  ;;  %v1409_v61 = vmul.f32 0.0, %v3937_v44  ;;  %v1377_v2 = vmul.f32 %v3935_v41, %v3932_v36  ;;  %s3574_s21 = sshra.s32 %s2743_s19, 4  ;;  %s3575_s21 = int_to_ptr.hbm [resolvable:$true] %s3574_s21 }
  0x59   : > { %800 = vmatpush.bf16.msra.mxu0 %v3112_v3  ;;  %3208 = vmatpush.bf16.msra.mxu3 %v3112_v3  ;;  %s3576_s16 = scalar_lea.hbm %s3575_s21, 256  ;;  %p3581_p8 = scmp.lt.s32.totalorder %s3575_s21, %s5448_s26 }
  0x5a   : > { %p3577_p1 = scmp.ne.s32.totalorder %s3575_s21, %s3576_s16  ;;  %p3582_p10 = scmp.lt.s32.totalorder %s3580_s11, %s3576_s16 }
  0x5c   : > { %p3578_p2 = pnand %p3577_p1, %p3808_p7  ;;  %p3583_p11 = por %p3582_p10, %p3581_p8 }
  0x5d   : > { %801 = vmatpush.bf16.msra.mxu0 %v3111_v4  ;;  %3209 = vmatpush.bf16.msra.mxu3 %v3111_v4 }
  0x5e   : > { %p3579_p4 = pneg %p3578_p2 }
  0x60   : > { %p3584_p12 = pnand %p3583_p11, %p3579_p4 }
  0x61   : > { %802 = vmatpush.bf16.msra.mxu0 %v3110_v5  ;;  %3210 = vmatpush.bf16.msra.mxu3 %v3110_v5 }
  0x65   : > { %803 = vmatpush.bf16.msra.mxu0 %v3109_v6  ;;  %3211 = vmatpush.bf16.msra.mxu3 %v3109_v6 }
  0x69   : > { %804 = vmatpush.bf16.msra.mxu0 %v3108_v7  ;;  %3212 = vmatpush.bf16.msra.mxu3 %v3108_v7 }
  0x6c   : > { %805 = vmatmul.bf16.vlgmr.msra.gmra.mxu0 %v3090_v8  ;;  %850 = vmatmul.bf16.vlgmr.msra.gmra.mxu3 %v3099_v9 }
  0x7c   : > { %810 = vmatmul.bf16.gmra.mxu0 %v3091_v10  ;;  %855 = vmatmul.bf16.gmra.mxu3 %v3100_v11  ;;  %v3975_v11 = vsel %vm1266_vm1, %v3956_v57, 0.0 }
  0x7d   : > { %5381 = vst [vmem:[#allocation32_spill] sm:$0xff] %v3975_v11 }
  0x8c   : > { %815 = vmatmul.bf16.gmra.mxu0 %v3092_v12  ;;  %860 = vmatmul.bf16.gmra.mxu3 %v3101_v13 }
  0x9c   : > { %820 = vmatmul.bf16.gmra.mxu0 %v3093_v14  ;;  %865 = vmatmul.bf16.gmra.mxu3 %v3102_v15  ;;  %v1441_v15 = vadd.f32 %v1409_v61, %v1376_v60 }
  0xac   : > { %825 = vmatmul.bf16.gmra.mxu0 %v3094_v16  ;;  %870 = vmatmul.bf16.gmra.mxu3 %v3103_v17 }
  0xbc   : > { %830 = vmatmul.bf16.gmra.mxu0 %v3095_v18  ;;  %875 = vmatmul.bf16.gmra.mxu3 %v3104_v19  ;;  %v1474_v19 = vmul.f32 %v3952_v53, %v3956_v57 }
  0xcc   : > { %835 = vmatmul.bf16.gmra.mxu0 %v3096_v20  ;;  %880 = vmatmul.bf16.gmra.mxu3 %v3105_v21 }
  0xdc   : > { %840 = vmatmul.bf16.gmra.mxu0 %v3097_v22  ;;  %885 = vmatmul.bf16.gmra.mxu3 %v3106_v23 }
  0xe9   : > { %v806_v25 = vpop.f32.mrf.mxu0 }
  0xec   : > { %845 = vmatmul.bf16.gmra.mxu0 %v3098_v24 }
  0xef   : > { %v851_v27 = vpop.f32.mrf.mxu3 }
  0xf0   : > { %v852_v28 = vadd.f32 %v3929_v26, %v851_v27 }
  0xf1   : > { %v808_v29 = vpop.f32.mrf.mxu0 }
  0xf2   : > { %v914_v30 = vadd.f32 3.0, %v852_v28 }
  0xf4   : > { %v950_v32 = vmax.f32 %v914_v30, 0.0 }
  0xf6   : > { %v986_v33 = vmin.f32 %v950_v32, 6.0 }
  0xf7   : > { %v853_v35 = vpop.f32.mrf.mxu3 }
  0xf8   : > { %v1022_v37 = vmul.f32 %v986_v33, %v852_v28  ;;  %v854_v39 = vadd.f32 %v3929_v26, %v853_v35 }
  0xf9   : > { %v811_v42 = vpop.f32.mrf.mxu0 }
  0xfa   : > { %v1058_v43 = vmul.f32 0.16666667, %v1022_v37  ;;  %v915_v45 = vadd.f32 3.0, %v854_v39  ;;  %v812_v46 = vadd.f32 %v3929_v26, %v811_v42 }
  0xfc   : > { %v1185_v51 = vrot.slane %v1058_v43, 7  ;;  %v951_v54 = vmax.f32 %v915_v45, 0.0  ;;  %v898_v56 = vadd.f32 3.0, %v812_v46  ;;  %v1427_v63 = vmul.f32 %v3937_v44, %v1058_v43 }
  0xfd   : > { %v1620_v4 = vmul.f32 %v3942_v48, %v1058_v43  ;;  %v1813_v8 = vmul.f32 %v3950_v52, %v1058_v43  ;;  %v1294_v16 = vrot.slane %v1058_v43, 1 }
  0xfe   : > { %v1257_v58 = vsel %vm1157_vm0, 0.0, %v1185_v51  ;;  %v987_v0 = vmin.f32 %v951_v54, 6.0  ;;  %v934_v5 = vmax.f32 %v898_v56, 0.0 }
  0xff   : > { %v1394_v62 = vmul.f32 %v3935_v41, %v1257_v58  ;;  %v856_v1 = vpop.f32.mrf.mxu3  ;;  %v1587_v3 = vmul.f32 %v3940_v47, %v1257_v58  ;;  %v1780_v7 = vmul.f32 %v3944_v49, %v1257_v58 }
 0x100   : > { %v857_v6 = vadd.f32 %v3929_v26, %v856_v1  ;;  %v1023_v9 = vmul.f32 %v987_v0, %v854_v39  ;;  %v970_v12 = vmin.f32 %v934_v5, 6.0 }
 0x101   : > { %v813_v10 = vpop.f32.mrf.mxu0  ;;  %v1459_v17 = vadd.f32 %v1427_v63, %v1394_v62  ;;  %v1652_v20 = vadd.f32 %v1620_v4, %v1587_v3  ;;  %v1845_v24 = vadd.f32 %v1813_v8, %v1780_v7  ;;  %v1442_v8 = vadd.f32 %v1409_v61, %v1377_v2 }
 0x102   : > { %v916_v13 = vadd.f32 3.0, %v857_v6  ;;  %v814_v14 = vadd.f32 %v3929_v26, %v813_v10  ;;  %v1059_v18 = vmul.f32 0.16666667, %v1023_v9  ;;  %v1006_v21 = vmul.f32 %v970_v12, %v812_v46 }
 0x103   : > { %v1475_v9 = vmul.f32 %v3952_v53, %v3975_v11 }
 0x104   : > { %v952_v22 = vmax.f32 %v916_v13, 0.0  ;;  %v899_v23 = vadd.f32 3.0, %v814_v14  ;;  %v1186_v25 = vrot.slane %v1059_v18, 7  ;;  %v1295_v27 = vrot.slane %v1059_v18, 1 }
 0x105   : > { %v1428_v28 = vmul.f32 %v3937_v44, %v1059_v18  ;;  %v1621_v29 = vmul.f32 %v3942_v48, %v1059_v18  ;;  %v1814_v30 = vmul.f32 %v3950_v52, %v1059_v18  ;;  %v3983_v31 = vmul.f32 0.16666667, %v1006_v21 }
 0x106   : > { %v988_v32 = vmin.f32 %v952_v22, 6.0  ;;  %v1187_v33 = vsel %vm1157_vm0, %v1185_v51, %v1186_v25  ;;  %v1296_v34 = vsel %vm1266_vm1, %v1294_v16, %v1295_v27  ;;  %v1366_v35 = vsel %vm1266_vm1, %v1295_v27, 0.0 }
 0x107   : > { %v935_v37 = vmax.f32 %v899_v23, 0.0  ;;  %v1395_v38 = vmul.f32 %v3935_v41, %v1187_v33  ;;  %v1492_v39 = vmul.f32 %v3952_v53, %v1296_v34  ;;  %v1493_v40 = vmul.f32 %v3952_v53, %v1366_v35  ;;  %v858_v43 = vpop.f32.mrf.mxu3 }
 0x108   : > { %v1588_v42 = vmul.f32 %v3940_v47, %v1187_v33  ;;  %v1685_v45 = vmul.f32 %v3954_v55, %v1296_v34  ;;  %v1686_v46 = vmul.f32 %v3954_v55, %v1366_v35  ;;  %v1781_v51 = vmul.f32 %v3944_v49, %v1187_v33 }
 0x109   : > { %v1878_v54 = vmul.f32 %v3959_v59, %v1296_v34  ;;  %v816_v56 = vpop.f32.mrf.mxu0  ;;  %v1460_v58 = vadd.f32 %v1428_v28, %v1395_v38  ;;  %v3996_v60 = vadd.f32 %v1492_v39, %v1459_v17  ;;  %v1879_v63 = vmul.f32 %v3959_v59, %v1366_v35 }
 0x10a   : > { %v1653_v62 = vadd.f32 %v1621_v29, %v1588_v42  ;;  %v3999_v0 = vadd.f32 %v1685_v45, %v1652_v20  ;;  %v1846_v1 = vadd.f32 %v1814_v30, %v1781_v51  ;;  %v1161_v4 = vrot.slane %v3983_v31, 7 }
 0x10b   : > { %v4001_v3 = vadd.f32 %v1878_v54, %v1845_v24  ;;  %v4004_v5 = vadd.f32 %v1493_v40, %v1460_v58  ;;  %v1024_v13 = vmul.f32 %v988_v32, %v857_v6  ;;  %v1506_v16 = vadd.f32 %v1474_v19, %v1441_v15 }
 0x10c   : > { %5382 = vst [vmem:[#allocation33_spill] sm:$0xff] %v3999_v0  ;;  %v4006_v7 = vadd.f32 %v1686_v46, %v1653_v62  ;;  %v4010_v10 = vadd.f32 %v1879_v63, %v1846_v1  ;;  %v1249_v12 = vsel %vm1157_vm0, 0.0, %v1161_v4  ;;  %v971_v20 = vmin.f32 %v935_v37, 6.0 }
 0x10d   : > { %5383 = vst [vmem:[#allocation34_spill] sm:$0xff] %v4001_v3  ;;  %v1378_v17 = vmul.f32 %v3935_v41, %v1249_v12  ;;  %v1571_v18 = vmul.f32 %v3940_v47, %v1249_v12  ;;  %v859_v21 = vadd.f32 %v3929_v26, %v858_v43  ;;  %v1411_v22 = vmul.f32 %v3937_v44, %v3983_v31 }
 0x10e   : > { %5384 = vst [vmem:[#allocation35_spill] sm:$0xff] %v4006_v7  ;;  %v1604_v61 = vmul.f32 %v3942_v48, %v3983_v31  ;;  %v4020_v2 = vmul.f32 0.16666667, %v1024_v13  ;;  %v817_v23 = vadd.f32 %v3929_v26, %v816_v56  ;;  %v1270_v6 = vrot.slane %v3983_v31, 1 }
 0x10f   : > { %5385 = vst [vmem:[#allocation36_spill] sm:$0xff] %v4010_v10  ;;  %v1007_v15 = vmul.f32 %v971_v20, %v814_v14  ;;  %v1507_v19 = vadd.f32 %v1475_v9, %v1442_v8  ;;  %v917_v24 = vadd.f32 3.0, %v859_v21  ;;  %v1443_v25 = vadd.f32 %v1411_v22, %v1378_v17  ;;  %v861_v37 = vpop.f32.mrf.mxu3 }
 0x110   : > { %v1636_v27 = vadd.f32 %v1604_v61, %v1571_v18  ;;  %v1188_v28 = vrot.slane %v4020_v2, 7  ;;  %v1297_v29 = vrot.slane %v4020_v2, 1  ;;  %v1429_v32 = vmul.f32 %v3937_v44, %v4020_v2 }
 0x111   : > { %v818_v30 = vpop.f32.mrf.mxu0  ;;  %v1622_v33 = vmul.f32 %v3942_v48, %v4020_v2  ;;  %v1043_v34 = vmul.f32 0.16666667, %v1007_v15  ;;  %v953_v35 = vmax.f32 %v917_v24, 0.0  ;;  %v1815_v31 = vmul.f32 %v3950_v52, %v4020_v2 }
 0x112   : > { %v1258_v14 = vsel %vm1157_vm0, 0.0, %v1188_v28  ;;  %v900_v38 = vadd.f32 3.0, %v817_v23  ;;  %v4034_v39 = vadd.f32 %v3929_v26, %v861_v37  ;;  %v4039_v45 = vadd.f32 %v3929_v26, %v818_v30 }
 0x113   : > { %v1396_v40 = vmul.f32 %v3935_v41, %v1258_v14  ;;  %v1589_v42 = vmul.f32 %v3940_v47, %v1258_v14  ;;  %v1162_v43 = vrot.slane %v1043_v34, 7  ;;  %v1782_v46 = vmul.f32 %v3944_v49, %v1258_v14 }
 0x114   : > { %v1271_v51 = vrot.slane %v1043_v34, 1  ;;  %v1412_v54 = vmul.f32 %v3937_v44, %v1043_v34  ;;  %v989_v56 = vmin.f32 %v953_v35, 6.0  ;;  %v1605_v1 = vmul.f32 %v3942_v48, %v1043_v34 }
 0x115   : > { %v1461_v58 = vadd.f32 %v1429_v32, %v1396_v40  ;;  %v1654_v62 = vadd.f32 %v1622_v33, %v1589_v42  ;;  %v1163_v63 = vsel %vm1157_vm0, %v1161_v4, %v1162_v43  ;;  %v936_v15 = vmax.f32 %v900_v38, 0.0 }
 0x116   : > { %v1272_v8 = vsel %vm1266_vm1, %v1270_v6, %v1271_v51  ;;  %v1358_v9 = vsel %vm1266_vm1, %v1271_v51, 0.0  ;;  %v1379_v12 = vmul.f32 %v3935_v41, %v1163_v63  ;;  %v1572_v13 = vmul.f32 %v3940_v47, %v1163_v63 }
 0x117   : > { %v1476_v17 = vmul.f32 %v3952_v53, %v1272_v8  ;;  %v1477_v18 = vmul.f32 %v3952_v53, %v1358_v9  ;;  %v1669_v20 = vmul.f32 %v3954_v55, %v1272_v8  ;;  %v1670_v22 = vmul.f32 %v3954_v55, %v1358_v9 }
 0x118   : > { %v1444_v61 = vadd.f32 %v1412_v54, %v1379_v12  ;;  %v1637_v4 = vadd.f32 %v1605_v1, %v1572_v13  ;;  %v1025_v2 = vmul.f32 %v989_v56, %v859_v21  ;;  %v918_v30 = vadd.f32 3.0, %v4034_v39 }
 0x119   : > { %v4053_v24 = vadd.f32 %v1476_v17, %v1443_v25  ;;  %v1701_v6 = vadd.f32 %v1669_v20, %v1636_v27  ;;  %v901_v32 = vadd.f32 3.0, %v4039_v45  ;;  %v972_v37 = vmin.f32 %v936_v15, 6.0 }
 0x11a   : > { %v4057_v33 = vadd.f32 %v1477_v18, %v1444_v61  ;;  %v1702_v34 = vadd.f32 %v1670_v22, %v1637_v4  ;;  %v1061_v35 = vmul.f32 0.16666667, %v1025_v2  ;;  %v1847_v14 = vadd.f32 %v1815_v31, %v1782_v46 }
 0x11b   : > { %v4059_v40 = vadd.f32 %v1701_v6, %v1506_v16  ;;  %v954_v42 = vmax.f32 %v918_v30, 0.0  ;;  %v937_v43 = vmax.f32 %v901_v32, 0.0  ;;  %v1008_v56 = vmul.f32 %v972_v37, %v817_v23  ;;  %v863_v37 = vpop.f32.mrf.mxu3 }
 0x11c   : > { %v4061_v51 = vadd.f32 %v1702_v34, %v1507_v19  ;;  %v1189_v21 = vrot.slane %v1061_v35, 7  ;;  %v1298_v25 = vrot.slane %v1061_v35, 1  ;;  %v1430_v27 = vmul.f32 %v3937_v44, %v1061_v35 }
 0x11d   : > { %v1623_v38 = vmul.f32 %v3942_v48, %v1061_v35  ;;  %v1816_v54 = vmul.f32 %v3950_v52, %v1061_v35  ;;  %v990_v63 = vmin.f32 %v954_v42, 6.0  ;;  %v973_v46 = vmin.f32 %v937_v43, 6.0 }
 0x11e   : > { %v1190_v1 = vsel %vm1157_vm0, %v1188_v28, %v1189_v21  ;;  %v1299_v31 = vsel %vm1266_vm1, %v1297_v29, %v1298_v25  ;;  %v1367_v16 = vsel %vm1266_vm1, %v1298_v25, 0.0  ;;  %v1044_v15 = vmul.f32 0.16666667, %v1008_v56 }
 0x11f   : > { %v1397_v19 = vmul.f32 %v3935_v41, %v1190_v1  ;;  %v1494_v8 = vmul.f32 %v3952_v53, %v1299_v31  ;;  %v1495_v9 = vmul.f32 %v3952_v53, %v1367_v16  ;;  %v1590_v12 = vmul.f32 %v3940_v47, %v1190_v1 }
 0x120   : > { %v1687_v13 = vmul.f32 %v3954_v55, %v1299_v31  ;;  %v1688_v23 = vmul.f32 %v3954_v55, %v1367_v16  ;;  %v1783_v17 = vmul.f32 %v3944_v49, %v1190_v1  ;;  %v1880_v28 = vmul.f32 %v3959_v59, %v1299_v31 }
 0x121   : > { %v1462_v29 = vadd.f32 %v1430_v27, %v1397_v19  ;;  %v4077_v18 = vadd.f32 %v1494_v8, %v1461_v58  ;;  %v1655_v20 = vadd.f32 %v1623_v38, %v1590_v12  ;;  %v1881_v22 = vmul.f32 %v3959_v59, %v1367_v16  ;;  %v821_v27 = vpop.f32.mrf.mxu0 }
 0x122   : > { %v1719_v61 = vadd.f32 %v1687_v13, %v1654_v62  ;;  %v1848_v4 = vadd.f32 %v1816_v54, %v1783_v17  ;;  %v4080_v2 = vadd.f32 %v1880_v28, %v1847_v14  ;;  %v1009_v32 = vmul.f32 %v973_v46, %v4039_v45 }
 0x123   : > { %v4082_v6 = vadd.f32 %v1495_v9, %v1462_v29  ;;  %v1720_v30 = vadd.f32 %v1688_v23, %v1655_v20  ;;  %v1164_v58 = vrot.slane %v1044_v15, 7  ;;  %v1026_v14 = vmul.f32 %v990_v63, %v4034_v39 }
 0x124   : > { %5386 = vst [vmem:[#allocation37_spill] sm:$0xff] %v4080_v2  ;;  %v4086_v34 = vadd.f32 %v1719_v61, %v3996_v60  ;;  %v4088_v35 = vadd.f32 %v1881_v22, %v1848_v4  ;;  %v1045_v43 = vmul.f32 0.16666667, %v1009_v32  ;;  %v864_v45 = vadd.f32 %v3929_v26, %v863_v37 }
 0x125   : > { %v4091_v42 = vadd.f32 %v1720_v30, %v4004_v5  ;;  %v1250_v62 = vsel %vm1157_vm0, 0.0, %v1164_v58  ;;  %v1273_v38 = vrot.slane %v1044_v15, 1  ;;  %v1413_v54 = vmul.f32 %v3937_v44, %v1044_v15 }
 0x126   : > { %5387 = vst [vmem:[#allocation38_spill] sm:$0xff] %v4088_v35  ;;  %v1380_v21 = vmul.f32 %v3935_v41, %v1250_v62  ;;  %v1573_v25 = vmul.f32 %v3940_v47, %v1250_v62  ;;  %v1766_v60 = vmul.f32 %v3944_v49, %v1250_v62  ;;  %v1606_v5 = vmul.f32 %v3942_v48, %v1044_v15 }
 0x127   : > { %v1799_v56 = vmul.f32 %v3950_v52, %v1044_v15  ;;  %v4102_v1 = vmul.f32 0.16666667, %v1026_v14  ;;  %v1165_v39 = vrot.slane %v1045_v43, 7  ;;  %v1274_v63 = vrot.slane %v1045_v43, 1 }
 0x128   : > { %v1445_v31 = vadd.f32 %v1413_v54, %v1380_v21  ;;  %v1638_v16 = vadd.f32 %v1606_v5, %v1573_v25  ;;  %v919_v46 = vadd.f32 3.0, %v864_v45  ;;  %v822_v19 = vadd.f32 %v3929_v26, %v821_v27 }
 0x129   : > { %v1831_v8 = vadd.f32 %v1799_v56, %v1766_v60  ;;  %v1166_v9 = vsel %vm1157_vm0, %v1164_v58, %v1165_v39  ;;  %v1275_v12 = vsel %vm1266_vm1, %v1273_v38, %v1274_v63  ;;  %v1359_v13 = vsel %vm1266_vm1, %v1274_v63, 0.0 }
 0x12a   : > { %v1381_v23 = vmul.f32 %v3935_v41, %v1166_v9  ;;  %v1414_v17 = vmul.f32 %v3937_v44, %v1045_v43  ;;  %v1607_v28 = vmul.f32 %v3942_v48, %v1045_v43  ;;  %v1800_v29 = vmul.f32 %v3950_v52, %v1045_v43 }
 0x12b   : > { %v1478_v20 = vmul.f32 %v3952_v53, %v1275_v12  ;;  %v1479_v22 = vmul.f32 %v3952_v53, %v1359_v13  ;;  %v1574_v61 = vmul.f32 %v3940_v47, %v1166_v9  ;;  %v1671_v4 = vmul.f32 %v3954_v55, %v1275_v12 }
 0x12c   : > { %v1446_v15 = vadd.f32 %v1414_v17, %v1381_v23  ;;  %v1672_v30 = vmul.f32 %v3954_v55, %v1359_v13  ;;  %v1767_v32 = vmul.f32 %v3944_v49, %v1166_v9  ;;  %v1864_v58 = vmul.f32 %v3959_v59, %v1275_v12 }
 0x12d   : > { %v4119_v37 = vadd.f32 %v1478_v20, %v1445_v31  ;;  %v1639_v62 = vadd.f32 %v1607_v28, %v1574_v61  ;;  %v1703_v14 = vadd.f32 %v1671_v4, %v1638_v16  ;;  %v1865_v43 = vmul.f32 %v3959_v59, %v1359_v13  ;;  %v823_v13 = vpop.f32.mrf.mxu0 }
 0x12e   : > { %v4122_v21 = vadd.f32 %v1479_v22, %v1446_v15  ;;  %v1832_v25 = vadd.f32 %v1800_v29, %v1767_v32  ;;  %v1896_v60 = vadd.f32 %v1864_v58, %v1831_v8  ;;  %v955_v27 = vmax.f32 %v919_v46, 0.0 }
 0x12f   : > { %v1191_v38 = vrot.slane %v4102_v1, 7  ;;  %v1704_v54 = vadd.f32 %v1672_v30, %v1639_v62  ;;  %v4126_v5 = vadd.f32 %v1703_v14, %v4053_v24  ;;  %v902_v56 = vadd.f32 3.0, %v822_v19 }
 0x130   : > { %v1897_v39 = vadd.f32 %v1865_v43, %v1832_v25  ;;  %v4129_v63 = vadd.f32 %v1896_v60, %v4059_v40  ;;  %v991_v31 = vmin.f32 %v955_v27, 6.0  ;;  %v1624_v40 = vmul.f32 %v3942_v48, %v4102_v1 }
 0x131   : > { %v4132_v16 = vadd.f32 %v1704_v54, %v4057_v33  ;;  %v4138_v46 = vsel %vm1157_vm0, 0.0, %v1191_v38  ;;  %v938_v12 = vmax.f32 %v902_v56, 0.0  ;;  %v1300_v33 = vrot.slane %v4102_v1, 1 }
 0x132   : > { %v4135_v9 = vadd.f32 %v1897_v39, %v4061_v51  ;;  %v1027_v8 = vmul.f32 %v991_v31, %v864_v45  ;;  %v1591_v24 = vmul.f32 %v3940_v47, %v4138_v46  ;;  %v824_v45 = vadd.f32 %v3929_v26, %v823_v13 }
 0x133   : > { %v1784_v28 = vmul.f32 %v3944_v49, %v4138_v46  ;;  %v1817_v29 = vmul.f32 %v3950_v52, %v4102_v1  ;;  %v974_v22 = vmin.f32 %v938_v12, 6.0 }
 0x134   : > { %v4144_v23 = vmul.f32 0.16666667, %v1027_v8  ;;  %v1656_v61 = vadd.f32 %v1624_v40, %v1591_v24  ;;  %v903_v14 = vadd.f32 3.0, %v824_v45 }
 0x135   : > { %v1849_v43 = vadd.f32 %v1817_v29, %v1784_v28  ;;  %v1010_v27 = vmul.f32 %v974_v22, %v822_v19 }
 0x136   : > { %v1192_v17 = vrot.slane %v4144_v23, 7  ;;  %v1301_v51 = vrot.slane %v4144_v23, 1  ;;  %v1625_v20 = vmul.f32 %v3942_v48, %v4144_v23  ;;  %v1818_v62 = vmul.f32 %v3950_v52, %v4144_v23 }
 0x137   : > { %v939_v13 = vmax.f32 %v903_v14, 0.0  ;;  %v4185_v40 = vmul.f32 0.16666667, %v1010_v27 }
 0x138   : > { %v4157_v4 = vsel %vm1157_vm0, %v1191_v38, %v1192_v17  ;;  %v4160_v15 = vsel %vm1266_vm1, %v1300_v33, %v1301_v51  ;;  %v4165_v32 = vsel %vm1266_vm1, %v1301_v51, 0.0 }
 0x139   : > { %v1592_v30 = vmul.f32 %v3940_v47, %v4157_v4  ;;  %v1689_v58 = vmul.f32 %v3954_v55, %v4160_v15  ;;  %v1690_v60 = vmul.f32 %v3954_v55, %v4165_v32  ;;  %v1785_v54 = vmul.f32 %v3944_v49, %v4157_v4 }
 0x13a   : > { %v1882_v39 = vmul.f32 %v3959_v59, %v4160_v15  ;;  %v1883_v31 = vmul.f32 %v3959_v59, %v4165_v32  ;;  %v975_v28 = vmin.f32 %v939_v13, 6.0  ;;  %v1167_v29 = vrot.slane %v4185_v40, 7 }
 0x13b   : > { %v1657_v25 = vadd.f32 %v1625_v20, %v1592_v30  ;;  %v1721_v38 = vadd.f32 %v1689_v58, %v1656_v61  ;;  %v1850_v12 = vadd.f32 %v1818_v62, %v1785_v54  ;;  %v866_v20 = vpop.f32.mrf.mxu3 }
 0x13c   : > { %v1914_v19 = vadd.f32 %v1882_v39, %v1849_v43  ;;  %v4193_v22 = vsel %vm1157_vm0, 0.0, %v1167_v29  ;;  %v867_v62 = vadd.f32 %v3929_v26, %v866_v20 }
 0x13d   : > { %v1722_v56 = vadd.f32 %v1690_v60, %v1657_v25  ;;  %v4180_v8 = vadd.f32 %v1721_v38, %v4077_v18  ;;  %v1915_v33 = vadd.f32 %v1883_v31, %v1850_v12  ;;  %v1011_v18 = vmul.f32 %v975_v28, %v824_v45  ;;  %v4227_v31 = vld [vmem:[%s5316_s6] ss:$0 sm:$0xff] }
 0x13e   : > { %v1946_v17 = vadd.f32 %v1914_v19, %v4086_v34  ;;  %v1575_v30 = vmul.f32 %v3940_v47, %v4193_v22  ;;  %v1768_v58 = vmul.f32 %v3944_v49, %v4193_v22  ;;  %v1608_v45 = vmul.f32 %v3942_v48, %v4185_v40 }
 0x13f   : > { %v4183_v24 = vadd.f32 %v1722_v56, %v4082_v6  ;;  %v4189_v51 = vadd.f32 %v1915_v33, %v4091_v42  ;;  %v4195_v61 = vmul.f32 0.16666667, %v1011_v18  ;;  %v1276_v6 = vrot.slane %v4185_v40, 1 }
 0x140   : > { %v1801_v60 = vmul.f32 %v3950_v52, %v4185_v40  ;;  %v1640_v27 = vadd.f32 %v1608_v45, %v1575_v30  ;;  %v920_v13 = vadd.f32 3.0, %v867_v62 }
 0x141   : > { %v1168_v34 = vrot.slane %v4195_v61, 7  ;;  %v1277_v42 = vrot.slane %v4195_v61, 1  ;;  %v1609_v54 = vmul.f32 %v3942_v48, %v4195_v61  ;;  %v1802_v20 = vmul.f32 %v3950_v52, %v4195_v61 }
 0x142   : > { %v1833_v12 = vadd.f32 %v1801_v60, %v1768_v58  ;;  %v1964_v60 = vadd.f32 %v4227_v31, %v4129_v63  ;;  %v1416_v3 = vmul.f32 %v3937_v44, %v4195_v61 }
 0x143   : > { %v4208_v14 = vsel %vm1157_vm0, %v1167_v29, %v1168_v34  ;;  %v4211_v43 = vsel %vm1266_vm1, %v1276_v6, %v1277_v42  ;;  %v4214_v25 = vsel %vm1266_vm1, %v1277_v42, 0.0  ;;  %v868_v39 = vpop.f32.mrf.mxu3 }
 0x144   : > { %v1576_v38 = vmul.f32 %v3940_v47, %v4208_v14  ;;  %v1673_v56 = vmul.f32 %v3954_v55, %v4211_v43  ;;  %v1674_v19 = vmul.f32 %v3954_v55, %v4214_v25  ;;  %v1769_v33 = vmul.f32 %v3944_v49, %v4208_v14 }
 0x145   : > { %v1866_v18 = vmul.f32 %v3959_v59, %v4211_v43  ;;  %v1867_v6 = vmul.f32 %v3959_v59, %v4214_v25  ;;  %v869_v30 = vadd.f32 %v3929_v26, %v868_v39  ;;  %v826_v39 = vpop.f32.mrf.mxu0 }
 0x146   : > { %v1641_v28 = vadd.f32 %v1609_v54, %v1576_v38  ;;  %v1705_v29 = vadd.f32 %v1673_v56, %v1640_v27  ;;  %v1834_v58 = vadd.f32 %v1802_v20, %v1769_v33  ;;  %v1965_v27 = vadd.f32 %v4227_v31, %v4135_v9 }
 0x147   : > { %v1898_v45 = vadd.f32 %v1866_v18, %v1833_v12  ;;  %v956_v38 = vmax.f32 %v920_v13, 0.0  ;;  %v1996_v33 = vadd.f32 3.0, %v1964_v60  ;;  %v1982_v9 = vadd.f32 %v4227_v31, %v1946_v17 }
 0x148   : > { %v1706_v34 = vadd.f32 %v1674_v19, %v1641_v28  ;;  %v4241_v42 = vadd.f32 %v1705_v29, %v4119_v37  ;;  %v1899_v56 = vadd.f32 %v1867_v6, %v1834_v58  ;;  %v921_v37 = vadd.f32 3.0, %v869_v30 }
 0x149   : > { %v1930_v57 = vadd.f32 %v1898_v45, %v4126_v5  ;;  %v1997_v12 = vadd.f32 3.0, %v1965_v27  ;;  %v992_v28 = vmin.f32 %v956_v38, 6.0  ;;  %v2028_v63 = vmax.f32 %v1996_v33, 0.0 }
 0x14a   : > { %v4248_v54 = vadd.f32 %v1706_v34, %v4122_v21  ;;  %v4252_v19 = vadd.f32 %v1899_v56, %v4132_v16  ;;  %v957_v29 = vmax.f32 %v921_v37, 0.0  ;;  %v4256_v5 = vadd.f32 %v3929_v26, %v826_v39 }
 0x14b   : > { %v2029_v20 = vmax.f32 %v1997_v12, 0.0  ;;  %v1028_v18 = vmul.f32 %v992_v28, %v867_v62  ;;  %v2060_v21 = vmin.f32 %v2028_v63, 6.0  ;;  %v1398_v16 = vmul.f32 %v3935_v41, %v4138_v46 }
 0x14c   : > { %v993_v13 = vmin.f32 %v957_v29, 6.0  ;;  %v1431_v45 = vmul.f32 %v3937_v44, %v4102_v1  ;;  %v4264_v38 = vadd.f32 %v4227_v31, %v4189_v51  ;;  %v2014_v62 = vadd.f32 3.0, %v1982_v9 }
 0x14d   : > { %v2061_v34 = vmin.f32 %v2029_v20, 6.0  ;;  %v828_v6 = vpop.f32.mrf.mxu0  ;;  %v1064_v58 = vmul.f32 0.16666667, %v1028_v18  ;;  %v2092_v37 = vmul.f32 %v2060_v21, %v1964_v60  ;;  %v1399_v39 = vmul.f32 %v3935_v41, %v4157_v4 }
 0x14e   : > { %v1029_v17 = vmul.f32 %v993_v13, %v869_v30  ;;  %v4267_v56 = vadd.f32 %v3929_v26, %v828_v6  ;;  %v1432_v46 = vmul.f32 %v3937_v44, %v4144_v23  ;;  %v904_v1 = vadd.f32 3.0, %v4256_v5  ;;  %v871_v13 = vpop.f32.mrf.mxu3 }
 0x14f   : > { %v2093_v33 = vmul.f32 %v2061_v34, %v1965_v27  ;;  %v1194_v12 = vrot.slane %v1064_v58, 7  ;;  %v1463_v28 = vadd.f32 %v1431_v45, %v1398_v16  ;;  %v1496_v51 = vmul.f32 %v3952_v53, %v4160_v15 }
 0x150   : > { %v2015_v30 = vadd.f32 3.0, %v4264_v38  ;;  %v1497_v29 = vmul.f32 %v3952_v53, %v4165_v32  ;;  %v2046_v60 = vmax.f32 %v2014_v62, 0.0  ;;  %v1065_v27 = vmul.f32 0.16666667, %v1029_v17 }
 0x151   : > { %v905_v63 = vadd.f32 3.0, %v4267_v56  ;;  %v4280_v4 = vmul.f32 0.16666667, %v2092_v37  ;;  %v4282_v20 = vmul.f32 0.16666667, %v2093_v33  ;;  %v1464_v23 = vadd.f32 %v1432_v46, %v1399_v39 }
 0x152   : > { %v1415_v18 = vmul.f32 %v3937_v44, %v4185_v40  ;;  %v1382_v15 = vmul.f32 %v3935_v41, %v4193_v22  ;;  %v1260_v21 = vsel %vm1157_vm0, 0.0, %v1194_v12  ;;  %v940_v34 = vmax.f32 %v904_v1, 0.0 }
 0x153   : > { %5388 = vst [vmem:[#allocation39_spill] sm:$0xff] %v4280_v4  ;;  %v4290_v32 = vadd.f32 %v3929_v26, %v871_v13  ;;  %v2047_v6 = vmax.f32 %v2015_v30, 0.0  ;;  %v1303_v16 = vrot.slane %v1064_v58, 1  ;;  %v1433_v45 = vmul.f32 %v3937_v44, %v1064_v58 }
 0x154   : > { %5389 = vst [vmem:[#allocation40_spill] sm:$0xff] %v4282_v20  ;;  %v1626_v62 = vmul.f32 %v3942_v48, %v1064_v58  ;;  %v2078_v17 = vmin.f32 %v2046_v60, 6.0  ;;  %v1400_v37 = vmul.f32 %v3935_v41, %v1260_v21  ;;  %v1195_v40 = vrot.slane %v1065_v27, 7 }
 0x155   : > { %v941_v33 = vmax.f32 %v905_v63, 0.0  ;;  %v1593_v39 = vmul.f32 %v3940_v47, %v1260_v21  ;;  %v1786_v22 = vmul.f32 %v3944_v49, %v1260_v21  ;;  %v1819_v46 = vmul.f32 %v3950_v52, %v1064_v58 }
 0x156   : > { %v1304_v1 = vrot.slane %v1065_v27, 1  ;;  %v4300_v30 = vadd.f32 %v4282_v20, %v4280_v4  ;;  %v4302_v13 = vadd.f32 %v1496_v51, %v1463_v28  ;;  %v4304_v35 = vadd.f32 %v1497_v29, %v1464_v23 }
 0x157   : > { %v4307_v60 = vadd.f32 %v4227_v31, %v1930_v57  ;;  %v2079_v10 = vmin.f32 %v2047_v6, 6.0  ;;  %v1447_v63 = vadd.f32 %v1415_v18, %v1382_v15  ;;  %v976_v21 = vmin.f32 %v940_v34, 6.0  ;;  %v873_v6 = vpop.f32.mrf.mxu3 }
 0x158   : > { %v4311_v2 = vmul.f32 %v2078_v17, %v1982_v9  ;;  %v1465_v58 = vadd.f32 %v1433_v45, %v1400_v37  ;;  %v1196_v7 = vsel %vm1157_vm0, %v1194_v12, %v1195_v40  ;;  %v977_v20 = vmin.f32 %v941_v33, 6.0 }
 0x159   : > { %v1658_v4 = vadd.f32 %v1626_v62, %v1593_v39  ;;  %v1851_v28 = vadd.f32 %v1819_v46, %v1786_v22  ;;  %v1305_v51 = vsel %vm1266_vm1, %v1303_v16, %v1304_v1  ;;  %v922_v29 = vadd.f32 3.0, %v4290_v32  ;;  %v831_v16 = vpop.f32.mrf.mxu0 }
 0x15a   : > { %5390 = vst [vmem:[#allocation41_spill] sm:$0xff] %v4311_v2  ;;  %v1383_v57 = vmul.f32 %v3935_v41, %v4208_v14  ;;  %v1480_v23 = vmul.f32 %v3952_v53, %v4211_v43  ;;  %v4322_v61 = vadd.f32 %v4227_v31, %v4252_v19  ;;  %v1998_v9 = vadd.f32 3.0, %v4307_v60 }
 0x15b   : > { %v1369_v12 = vsel %vm1266_vm1, %v1304_v1, 0.0  ;;  %v1787_v18 = vmul.f32 %v3944_v49, %v1196_v7  ;;  %v1820_v15 = vmul.f32 %v3950_v52, %v1065_v27  ;;  %v1012_v34 = vmul.f32 %v976_v21, %v4256_v5 }
 0x15c   : > { %v1594_v14 = vmul.f32 %v3940_v47, %v1196_v7  ;;  %v1627_v43 = vmul.f32 %v3942_v48, %v1065_v27  ;;  %v1884_v45 = vmul.f32 %v3959_v59, %v1305_v51  ;;  %v1013_v19 = vmul.f32 %v977_v20, %v4267_v56 }
 0x15d   : > { %v1481_v62 = vmul.f32 %v3952_v53, %v4214_v25  ;;  %v1401_v17 = vmul.f32 %v3935_v41, %v1196_v7  ;;  %v1434_v37 = vmul.f32 %v3937_v44, %v1065_v27  ;;  %v958_v40 = vmax.f32 %v922_v29, 0.0 }
 0x15e   : > { %v1999_v5 = vadd.f32 3.0, %v4322_v61  ;;  %v2030_v33 = vmax.f32 %v1998_v9, 0.0  ;;  %v1691_v39 = vmul.f32 %v3954_v55, %v1305_v51  ;;  %v4340_v22 = vadd.f32 %v3929_v26, %v873_v6 }
 0x15f   : > { %v1448_v46 = vadd.f32 %v1416_v3, %v1383_v57  ;;  %v1852_v1 = vadd.f32 %v1820_v15, %v1787_v18  ;;  %v1885_v56 = vmul.f32 %v3959_v59, %v1369_v12  ;;  %v1048_v20 = vmul.f32 0.16666667, %v1012_v34 }
 0x160   : > { %v1659_v21 = vadd.f32 %v1627_v43, %v1594_v14  ;;  %v1692_v25 = vmul.f32 %v3954_v55, %v1369_v12  ;;  %v1916_v7 = vadd.f32 %v1884_v45, %v1851_v28  ;;  %v4344_v2 = vmul.f32 0.16666667, %v1013_v19 }
 0x161   : > { %v1466_v27 = vadd.f32 %v1434_v37, %v1401_v17  ;;  %v1498_v29 = vmul.f32 %v3952_v53, %v1305_v51  ;;  %v1499_v9 = vmul.f32 %v3952_v53, %v1369_v12  ;;  %v994_v0 = vmin.f32 %v958_v40, 6.0 }
 0x162   : > { %v2031_v50 = vmax.f32 %v1999_v5, 0.0  ;;  %v2062_v6 = vmin.f32 %v2030_v33, 6.0  ;;  %v1723_v11 = vadd.f32 %v1691_v39, %v1658_v4  ;;  %v923_v3 = vadd.f32 3.0, %v4340_v22 }
 0x163   : > { %v4350_v57 = vmul.f32 %v2079_v10, %v4264_v38  ;;  %v4352_v18 = vadd.f32 %v1480_v23, %v1447_v63  ;;  %v1917_v15 = vadd.f32 %v1885_v56, %v1852_v1  ;;  %v1170_v28 = vrot.slane %v1048_v20, 7  ;;  %v833_v38 = vpop.f32.mrf.mxu0 }
 0x164   : > { %v4354_v34 = vadd.f32 %v1481_v62, %v1448_v46  ;;  %v1724_v14 = vadd.f32 %v1692_v25, %v1659_v21  ;;  %v1948_v51 = vadd.f32 %v1916_v7, %v4180_v8  ;;  %v1171_v12 = vrot.slane %v4344_v2, 7  ;;  %v876_v7 = vpop.f32.mrf.mxu3 }
 0x165   : > { %5391 = vst [vmem:[#allocation42_spill] sm:$0xff] %v4350_v57  ;;  %v4358_v43 = vadd.f32 %v1498_v29, %v1465_v58  ;;  %v4360_v45 = vadd.f32 %v1499_v9, %v1466_v27  ;;  %v1030_v4 = vmul.f32 %v994_v0, %v4290_v32  ;;  %v1280_v10 = vrot.slane %v4344_v2, 1 }
 0x166   : > { %v2063_v63 = vmin.f32 %v2031_v50, 6.0  ;;  %v2094_v23 = vmul.f32 %v2062_v6, %v4307_v60  ;;  %v4366_v19 = vadd.f32 %v1723_v11, %v4302_v13  ;;  %v959_v62 = vmax.f32 %v923_v3, 0.0 }
 0x167   : > { %v1949_v8 = vadd.f32 %v1917_v15, %v4183_v24  ;;  %v1252_v17 = vsel %vm1157_vm0, 0.0, %v1170_v28  ;;  %v1279_v58 = vrot.slane %v1048_v20, 1  ;;  %v4371_v37 = vadd.f32 %v3929_v26, %v831_v16 }
 0x168   : > { %v4374_v0 = vadd.f32 %v1724_v14, %v4304_v35  ;;  %v4377_v32 = vadd.f32 %v4227_v31, %v1948_v51  ;;  %v1172_v50 = vsel %vm1157_vm0, %v1170_v28, %v1171_v12  ;;  %v4381_v11 = vadd.f32 %v3929_v26, %v833_v38 }
 0x169   : > { %v1417_v13 = vmul.f32 %v3937_v44, %v1048_v20  ;;  %v1610_v24 = vmul.f32 %v3942_v48, %v1048_v20  ;;  %v4385_v60 = vmul.f32 0.16666667, %v1030_v4  ;;  %v4388_v16 = vsel %vm1266_vm1, %v1279_v58, %v1280_v10 }
 0x16a   : > { %5392 = vst [vmem:[#allocation43_spill] sm:$0xff] %v4377_v32  ;;  %v2095_v35 = vmul.f32 %v2063_v63, %v4322_v61  ;;  %v4391_v40 = vmul.f32 0.16666667, %v2094_v23  ;;  %v1770_v5 = vmul.f32 %v3944_v49, %v1252_v17  ;;  %v995_v33 = vmin.f32 %v959_v62, 6.0 }
 0x16b   : > { %v4395_v39 = vadd.f32 %v4227_v31, %v1949_v8  ;;  %v1803_v46 = vmul.f32 %v3950_v52, %v1048_v20  ;;  %v1771_v1 = vmul.f32 %v3944_v49, %v1172_v50  ;;  %v906_v56 = vadd.f32 3.0, %v4371_v37 }
 0x16c   : > { %5393 = vst [vmem:[#allocation44_spill] sm:$0xff] %v4391_v40  ;;  %v2016_v21 = vadd.f32 3.0, %v4377_v32  ;;  %v1384_v25 = vmul.f32 %v3935_v41, %v1252_v17  ;;  %v1868_v61 = vmul.f32 %v3959_v59, %v4388_v16  ;;  %v907_v27 = vadd.f32 3.0, %v4381_v11 }
 0x16d   : > { %5394 = vst [vmem:[#allocation45_spill] sm:$0xff] %v4395_v39  ;;  %v1577_v29 = vmul.f32 %v3940_v47, %v1252_v17  ;;  %v1197_v9 = vrot.slane %v4385_v60, 7  ;;  %v1804_v20 = vmul.f32 %v3950_v52, %v4344_v2  ;;  %v4410_v6 = vadd.f32 %v3929_v26, %v876_v7 }
 0x16e   : > { %v4412_v3 = vmul.f32 0.16666667, %v2095_v35  ;;  %v1835_v15 = vadd.f32 %v1803_v46, %v1770_v5  ;;  %v1361_v28 = vsel %vm1266_vm1, %v1280_v10, 0.0  ;;  %v1031_v14 = vmul.f32 %v995_v33, %v4340_v22 }
 0x16f   : > { %v2162_v51 = vadd.f32 %v4300_v30, %v4391_v40  ;;  %v4419_v12 = vadd.f32 3.0, %v4395_v39  ;;  %v1836_v4 = vadd.f32 %v1804_v20, %v1771_v1  ;;  %v942_v38 = vmax.f32 %v906_v56, 0.0 }
 0x170   : > { %5395 = vst [vmem:[#allocation46_spill] sm:$0xff] %v4412_v3  ;;  %v2048_v63 = vmax.f32 %v2016_v21, 0.0  ;;  %v1449_v23 = vadd.f32 %v1417_v13, %v1384_v25  ;;  %v1900_v62 = vadd.f32 %v1868_v61, %v1835_v15  ;;  %v943_v26 = vmax.f32 %v907_v27, 0.0 }
 0x171   : > { %5396 = vst [vmem:[#allocation47_spill] sm:$0xff] %v4419_v12  ;;  %v1261_v8 = vsel %vm1157_vm0, 0.0, %v1197_v9  ;;  %v1435_v17 = vmul.f32 %v3937_v44, %v4385_v60  ;;  %v1869_v10 = vmul.f32 %v3959_v59, %v1361_v28  ;;  %v924_v22 = vadd.f32 3.0, %v4410_v6 }
 0x172   : > { %v1402_v30 = vmul.f32 %v3935_v41, %v1261_v8  ;;  %v1595_v58 = vmul.f32 %v3940_v47, %v1261_v8  ;;  %v1628_v35 = vmul.f32 %v3942_v48, %v4385_v60  ;;  %v1067_v5 = vmul.f32 0.16666667, %v1031_v14 }
 0x173   : > { %v4431_v13 = vadd.f32 %v2162_v51, %v4412_v3  ;;  %v1642_v33 = vadd.f32 %v1610_v24, %v1577_v29  ;;  %v1901_v46 = vadd.f32 %v1869_v10, %v1836_v4  ;;  %v978_v1 = vmin.f32 %v942_v38, 6.0  ;;  %v878_v4 = vpop.f32.mrf.mxu3 }
 0x174   : > { %v1788_v56 = vmul.f32 %v3944_v49, %v1261_v8  ;;  %v1821_v21 = vmul.f32 %v3950_v52, %v4385_v60  ;;  %v1932_v25 = vadd.f32 %v1900_v62, %v4241_v42  ;;  %v979_v61 = vmin.f32 %v943_v26, 6.0 }
 0x175   : > { %v4438_v27 = vmin.f32 %v2048_v63, 6.0  ;;  %v1306_v20 = vrot.slane %v4385_v60, 1  ;;  %v960_v15 = vmax.f32 %v924_v22, 0.0  ;;  %v1467_v14 = vadd.f32 %v1435_v17, %v1402_v30 }
 0x176   : > { %v4441_v51 = vadd.f32 %v1628_v35, %v1595_v58  ;;  %v1198_v24 = vrot.slane %v1067_v5, 7  ;;  %v1307_v29 = vrot.slane %v1067_v5, 1  ;;  %v1385_v38 = vmul.f32 %v3935_v41, %v1172_v50 }
 0x177   : > { %5397 = vst [vmem:[#allocation48_spill] sm:$0xff] %v4438_v27  ;;  %v1578_v8 = vmul.f32 %v3940_v47, %v1172_v50  ;;  %v1933_v42 = vadd.f32 %v1901_v46, %v4248_v54  ;;  %v1014_v62 = vmul.f32 %v978_v1, %v4371_v37  ;;  %v1853_v26 = vadd.f32 %v1821_v21, %v1788_v56  ;;  %v4460_v54 = vld [vmem:[%s5314_s4] ss:$0 sm:$0xff] }
 0x178   : > { %v1675_v63 = vmul.f32 %v3954_v55, %v4388_v16  ;;  %v4450_v60 = vadd.f32 %v4227_v31, %v1932_v25  ;;  %v1015_v17 = vmul.f32 %v979_v61, %v4381_v11  ;;  %v1418_v10 = vmul.f32 %v3937_v44, %v4344_v2 }
 0x179   : > { %v1611_v22 = vmul.f32 %v3942_v48, %v4344_v2  ;;  %v996_v50 = vmin.f32 %v960_v15, 6.0  ;;  %v4463_v37 = vadd.f32 %v4460_v54, %v878_v4  ;;  %v1482_v30 = vmul.f32 %v3952_v53, %v4388_v16  ;;  %v836_v4 = vpop.f32.mrf.mxu0 }
 0x17a   : > { %v1199_v11 = vsel %vm1157_vm0, %v1197_v9, %v1198_v24  ;;  %v1308_v58 = vsel %vm1266_vm1, %v1306_v20, %v1307_v29  ;;  %v1436_v35 = vmul.f32 %v3937_v44, %v1067_v5  ;;  %v1450_v46 = vadd.f32 %v1418_v10, %v1385_v38 }
 0x17b   : > { %v1643_v2 = vadd.f32 %v1611_v22, %v1578_v8  ;;  %v4471_v1 = vadd.f32 %v4227_v31, %v1933_v42  ;;  %v4473_v56 = vmul.f32 0.16666667, %v1014_v62  ;;  %v1483_v21 = vmul.f32 %v3952_v53, %v1361_v28 }
 0x17c   : > { %v1707_v25 = vadd.f32 %v1675_v63, %v1642_v33  ;;  %v2000_v61 = vadd.f32 3.0, %v4450_v60  ;;  %v4477_v15 = vmul.f32 0.16666667, %v1015_v17  ;;  %v1676_v16 = vmul.f32 %v3954_v55, %v1361_v28 }
 0x17d   : > { %v1789_v9 = vmul.f32 %v3944_v49, %v1199_v11  ;;  %v1822_v20 = vmul.f32 %v3950_v52, %v1067_v5  ;;  %v1886_v24 = vmul.f32 %v3959_v59, %v1308_v58  ;;  %v4483_v38 = vadd.f32 %v1482_v30, %v1449_v23 }
 0x17e   : > { %v1370_v8 = vsel %vm1266_vm1, %v1307_v29, 0.0  ;;  %v1403_v42 = vmul.f32 %v3935_v41, %v1199_v11  ;;  %v1629_v33 = vmul.f32 %v3942_v48, %v1067_v5  ;;  %v4488_v62 = vadd.f32 %v1483_v21, %v1450_v46 }
 0x17f   : > { %v1708_v63 = vadd.f32 %v1676_v16, %v1643_v2  ;;  %v2001_v28 = vadd.f32 3.0, %v4471_v1  ;;  %v1173_v17 = vrot.slane %v4473_v56, 7  ;;  %v4493_v10 = vadd.f32 %v1707_v25, %v4352_v18 }
 0x180   : > { %v2032_v22 = vmax.f32 %v2000_v61, 0.0  ;;  %v1500_v23 = vmul.f32 %v3952_v53, %v1308_v58  ;;  %v1174_v30 = vrot.slane %v4477_v15, 7  ;;  %v1854_v29 = vadd.f32 %v1822_v20, %v1789_v9 }
 0x181   : > { %v1887_v7 = vmul.f32 %v3959_v59, %v1370_v8  ;;  %v1918_v3 = vadd.f32 %v1886_v24, %v1853_v26  ;;  %v1283_v5 = vrot.slane %v4477_v15, 1  ;;  %v1468_v46 = vadd.f32 %v1436_v35, %v1403_v42 }
 0x182   : > { %v1501_v2 = vmul.f32 %v3952_v53, %v1370_v8  ;;  %v1596_v21 = vmul.f32 %v3940_v47, %v1199_v11  ;;  %v925_v16 = vadd.f32 3.0, %v4463_v37  ;;  %v2033_v18 = vmax.f32 %v2001_v28, 0.0 }
 0x183   : > { %v1693_v25 = vmul.f32 %v3954_v55, %v1308_v58  ;;  %v1253_v61 = vsel %vm1157_vm0, 0.0, %v1173_v17  ;;  %v1282_v40 = vrot.slane %v4473_v56, 1  ;;  %v4506_v9 = vadd.f32 %v1708_v63, %v4354_v34 }
 0x184   : > { %v2064_v26 = vmin.f32 %v2032_v22, 6.0  ;;  %v4508_v20 = vadd.f32 %v1500_v23, %v1467_v14  ;;  %v4511_v35 = vsel %vm1157_vm0, %v1173_v17, %v1174_v30  ;;  %v1919_v24 = vadd.f32 %v1887_v7, %v1854_v29 }
 0x185   : > { %v1950_v11 = vadd.f32 %v1918_v3, %v4366_v19  ;;  %v1032_v42 = vmul.f32 %v996_v50, %v4410_v6  ;;  %v4516_v58 = vsel %vm1266_vm1, %v1282_v40, %v1283_v5  ;;  %v1661_v28 = vadd.f32 %v1629_v33, %v1596_v21  ;;  %v838_v19 = vpop.f32.mrf.mxu0 }
 0x186   : > { %v1694_v39 = vmul.f32 %v3954_v55, %v1370_v8  ;;  %v1772_v34 = vmul.f32 %v3944_v49, %v1253_v61  ;;  %v961_v63 = vmax.f32 %v925_v16, 0.0  ;;  %v2065_v22 = vmin.f32 %v2033_v18, 6.0 }
 0x187   : > { %v4520_v14 = vadd.f32 %v1501_v2, %v1468_v46  ;;  %v1725_v17 = vadd.f32 %v1693_v25, %v4441_v51  ;;  %v1773_v7 = vmul.f32 %v3944_v49, %v4511_v35  ;;  %v2096_v6 = vmul.f32 %v2064_v26, %v4450_v60 }
 0x188   : > { %v1805_v40 = vmul.f32 %v3950_v52, %v4473_v56  ;;  %v1870_v3 = vmul.f32 %v3959_v59, %v4516_v58  ;;  %v4531_v50 = vadd.f32 %v4460_v54, %v836_v4  ;;  %v1951_v8 = vadd.f32 %v1919_v24, %v4374_v0 }
 0x189   : > { %v4535_v33 = vadd.f32 %v4227_v31, %v1950_v11  ;;  %v4537_v51 = vmul.f32 0.16666667, %v1032_v42  ;;  %v1806_v23 = vmul.f32 %v3950_v52, %v4477_v15  ;;  %v4542_v30 = vsel %vm1266_vm1, %v1283_v5, 0.0 }
 0x18a   : > { %v1837_v60 = vadd.f32 %v1805_v40, %v1772_v34  ;;  %v997_v29 = vmin.f32 %v961_v63, 6.0  ;;  %v4545_v46 = vadd.f32 %v4460_v54, %v838_v19  ;;  %v1726_v4 = vadd.f32 %v1694_v39, %v1661_v28  ;;  %v881_v28 = vpop.f32.mrf.mxu3 }
 0x18b   : > { %5398 = vst [vmem:[#allocation49_spill] sm:$0xff] %v4535_v33  ;;  %v1386_v2 = vmul.f32 %v3935_v41, %v1253_v61  ;;  %v1419_v0 = vmul.f32 %v3937_v44, %v4473_v56  ;;  %v1838_v21 = vadd.f32 %v1806_v23, %v1773_v7  ;;  %v2097_v16 = vmul.f32 %v2065_v22, %v4471_v1 }
 0x18c   : > { %v1579_v18 = vmul.f32 %v3940_v47, %v1253_v61  ;;  %v1902_v25 = vadd.f32 %v1870_v3, %v1837_v60  ;;  %v908_v26 = vadd.f32 3.0, %v4531_v50  ;;  %v4553_v5 = vmul.f32 0.16666667, %v2096_v6 }
 0x18d   : > { %v4556_v24 = vadd.f32 %v4227_v31, %v1951_v8  ;;  %v4559_v39 = vadd.f32 3.0, %v4535_v33  ;;  %v1871_v11 = vmul.f32 %v3959_v59, %v4542_v30  ;;  %v1612_v42 = vmul.f32 %v3942_v48, %v4473_v56 }
 0x18e   : > { %5399 = vst [vmem:[#allocation50_spill] sm:$0xff] %v4553_v5  ;;  %v1200_v1 = vrot.slane %v4537_v51, 7  ;;  %v1033_v61 = vmul.f32 %v997_v29, %v4463_v37  ;;  %v909_v34 = vadd.f32 3.0, %v4545_v46  ;;  %v4569_v63 = vadd.f32 %v1725_v17, %v4358_v43 }
 0x18f   : > { %5400 = vst [vmem:[#allocation51_spill] sm:$0xff] %v4556_v24  ;;  %v4572_v22 = vadd.f32 %v1726_v4, %v4360_v45  ;;  %v1451_v7 = vadd.f32 %v1419_v0, %v1386_v2  ;;  %v1903_v19 = vadd.f32 %v1871_v11, %v1838_v21  ;;  %v4574_v6 = vmul.f32 0.16666667, %v2097_v16 }
 0x190   : > { %5401 = vst [vmem:[#allocation52_spill] sm:$0xff] %v4559_v39  ;;  %v1644_v40 = vadd.f32 %v1612_v42, %v1579_v18  ;;  %v1934_v56 = vadd.f32 %v1902_v25, %v4493_v10  ;;  %v944_v3 = vmax.f32 %v908_v26, 0.0  ;;  %v2164_v37 = vadd.f32 %v4431_v13, %v4553_v5 }
 0x191   : > { %5402 = vst [vmem:[#allocation53_spill] sm:$0xff] %v4574_v6  ;;  %v4580_v8 = vadd.f32 3.0, %v4556_v24  ;;  %v4584_v17 = vadd.f32 %v4460_v54, %v881_v28  ;;  %v1262_v45 = vsel %vm1157_vm0, 0.0, %v1200_v1  ;;  %v1309_v23 = vrot.slane %v4537_v51, 1 }
 0x192   : > { %v1069_v60 = vmul.f32 0.16666667, %v1033_v61  ;;  %v945_v29 = vmax.f32 %v909_v34, 0.0  ;;  %v1404_v10 = vmul.f32 %v3935_v41, %v1262_v45  ;;  %v1437_v4 = vmul.f32 %v3937_v44, %v4537_v51 }
 0x193   : > { %5403 = vst [vmem:[#allocation54_spill] sm:$0xff] %v4580_v8  ;;  %v1630_v13 = vmul.f32 %v3942_v48, %v4537_v51  ;;  %v1935_v2 = vadd.f32 %v1903_v19, %v4506_v9  ;;  %v1823_v0 = vmul.f32 %v3950_v52, %v4537_v51  ;;  %v1387_v21 = vmul.f32 %v3935_v41, %v4511_v35 }
 0x194   : > { %v4599_v16 = vadd.f32 %v4227_v31, %v1934_v56  ;;  %v980_v18 = vmin.f32 %v944_v3, 6.0  ;;  %v1597_v25 = vmul.f32 %v3940_v47, %v1262_v45  ;;  %v1790_v26 = vmul.f32 %v3944_v49, %v1262_v45 }
 0x195   : > { %v1580_v11 = vmul.f32 %v3940_v47, %v4511_v35  ;;  %v926_v42 = vadd.f32 3.0, %v4584_v17  ;;  %v4607_v9 = vadd.f32 %v2164_v37, %v4574_v6  ;;  %v1420_v51 = vmul.f32 %v3937_v44, %v4477_v15 }
 0x196   : > { %v1201_v61 = vrot.slane %v1069_v60, 7  ;;  %v981_v28 = vmin.f32 %v945_v29, 6.0  ;;  %v4611_v34 = vadd.f32 %v1437_v4, %v1404_v10  ;;  %v1484_v19 = vmul.f32 %v3952_v53, %v4516_v58  ;;  %v883_v29 = vpop.f32.mrf.mxu3  ;;  %v841_v10 = vpop.f32.mrf.mxu0 }
 0x197   : > { %v1613_v56 = vmul.f32 %v3942_v48, %v4477_v15  ;;  %v4618_v35 = vadd.f32 %v4227_v31, %v1935_v2  ;;  %v1452_v3 = vadd.f32 %v1420_v51, %v1387_v21  ;;  %v1677_v37 = vmul.f32 %v3954_v55, %v4516_v58 }
 0x198   : > { %v2002_v45 = vadd.f32 3.0, %v4599_v16  ;;  %v1016_v43 = vmul.f32 %v980_v18, %v4531_v50  ;;  %v1662_v4 = vadd.f32 %v1630_v13, %v1597_v25  ;;  %v1855_v6 = vadd.f32 %v1823_v0, %v1790_v26 }
 0x199   : > { %v1645_v5 = vadd.f32 %v1613_v56, %v1580_v11  ;;  %v962_v24 = vmax.f32 %v926_v42, 0.0  ;;  %v1485_v15 = vmul.f32 %v3952_v53, %v4542_v30  ;;  %v1202_v2 = vsel %vm1157_vm0, %v1200_v1, %v1201_v61 }
 0x19a   : > { %v1310_v33 = vrot.slane %v1069_v60, 1  ;;  %v1017_v21 = vmul.f32 %v981_v28, %v4545_v46  ;;  %v4628_v51 = vadd.f32 %v1484_v19, %v1451_v7  ;;  %v1678_v58 = vmul.f32 %v3954_v55, %v4542_v30 }
 0x19b   : > { %v2003_v50 = vadd.f32 3.0, %v4618_v35  ;;  %v4634_v13 = vadd.f32 %v4460_v54, %v883_v29  ;;  %v4636_v0 = vadd.f32 %v1485_v15, %v1452_v3  ;;  %v1709_v18 = vadd.f32 %v1677_v37, %v1644_v40 }
 0x19c   : > { %v2034_v25 = vmax.f32 %v2002_v45, 0.0  ;;  %v4638_v26 = vmul.f32 0.16666667, %v1016_v43  ;;  %v1710_v1 = vadd.f32 %v1678_v58, %v1645_v5  ;;  %v1791_v11 = vmul.f32 %v3944_v49, %v1202_v2 }
 0x19d   : > { %v1824_v46 = vmul.f32 %v3950_v52, %v1069_v60  ;;  %v998_v7 = vmin.f32 %v962_v24, 6.0  ;;  %v1311_v42 = vsel %vm1266_vm1, %v1309_v23, %v1310_v33  ;;  %v1438_v30 = vmul.f32 %v3937_v44, %v1069_v60 }
 0x19e   : > { %v1631_v61 = vmul.f32 %v3942_v48, %v1069_v60  ;;  %v4645_v28 = vmul.f32 0.16666667, %v1017_v21  ;;  %v2035_v19 = vmax.f32 %v2003_v50, 0.0  ;;  %v1371_v40 = vsel %vm1266_vm1, %v1310_v33, 0.0  ;;  %v843_v21 = vpop.f32.mrf.mxu0 }
 0x19f   : > { %v1405_v43 = vmul.f32 %v3935_v41, %v1202_v2  ;;  %v1598_v5 = vmul.f32 %v3940_v47, %v1202_v2  ;;  %v4651_v56 = vadd.f32 %v1709_v18, %v4483_v38  ;;  %v2066_v3 = vmin.f32 %v2034_v25, 6.0 }
 0x1a0   : > { %v1502_v24 = vmul.f32 %v3952_v53, %v1311_v42  ;;  %v1176_v23 = vrot.slane %v4638_v26, 7  ;;  %v1503_v37 = vmul.f32 %v3952_v53, %v1371_v40  ;;  %v1695_v60 = vmul.f32 %v3954_v55, %v1311_v42 }
 0x1a1   : > { %v1856_v45 = vadd.f32 %v1824_v46, %v1791_v11  ;;  %v1888_v29 = vmul.f32 %v3959_v59, %v1311_v42  ;;  %v1889_v33 = vmul.f32 %v3959_v59, %v1371_v40  ;;  %v1177_v15 = vrot.slane %v4645_v28, 7 }
 0x1a2   : > { %v1286_v2 = vrot.slane %v4645_v28, 1  ;;  %v4662_v38 = vadd.f32 %v4460_v54, %v841_v10  ;;  %v2067_v58 = vmin.f32 %v2035_v19, 6.0  ;;  %v1470_v50 = vadd.f32 %v1438_v30, %v1405_v43 }
 0x1a3   : > { %v1663_v18 = vadd.f32 %v1631_v61, %v1598_v5  ;;  %v1696_v25 = vmul.f32 %v3954_v55, %v1371_v40  ;;  %v2098_v57 = vmul.f32 %v2066_v3, %v4599_v16  ;;  %v1254_v11 = vsel %vm1157_vm0, 0.0, %v1176_v23 }
 0x1a4   : > { %v1285_v46 = vrot.slane %v4638_v26, 1  ;;  %v1034_v42 = vmul.f32 %v998_v7, %v4584_v17  ;;  %v4670_v39 = vadd.f32 %v1710_v1, %v4488_v62  ;;  %v1727_v27 = vadd.f32 %v1695_v60, %v1662_v4  ;;  %v886_v60 = vpop.f32.mrf.mxu3 }
 0x1a5   : > { %v1920_v10 = vadd.f32 %v1888_v29, %v1855_v6  ;;  %v4673_v32 = vadd.f32 %v4460_v54, %v843_v21  ;;  %v1921_v30 = vadd.f32 %v1889_v33, %v1856_v45  ;;  %v1178_v61 = vsel %vm1157_vm0, %v1176_v23, %v1177_v15 }
 0x1a6   : > { %v4677_v19 = vsel %vm1266_vm1, %v1285_v46, %v1286_v2  ;;  %v910_v16 = vadd.f32 3.0, %v4662_v38  ;;  %v2099_v40 = vmul.f32 %v2067_v58, %v4618_v35  ;;  %v4682_v17 = vadd.f32 %v1502_v24, %v4611_v34 }
 0x1a7   : > { %v1774_v62 = vmul.f32 %v3944_v49, %v1254_v11  ;;  %v927_v6 = vadd.f32 3.0, %v4634_v13  ;;  %v4686_v4 = vmul.f32 0.16666667, %v2098_v57  ;;  %v4688_v1 = vadd.f32 %v1503_v37, %v1470_v50 }
 0x1a8   : > { %v1728_v7 = vadd.f32 %v1696_v25, %v1663_v18  ;;  %v4690_v43 = vmul.f32 0.16666667, %v1034_v42  ;;  %v1807_v5 = vmul.f32 %v3950_v52, %v4638_v26  ;;  %v1775_v3 = vmul.f32 %v3944_v49, %v1178_v61 }
 0x1a9   : > { %5404 = vst [vmem:[#allocation55_spill] sm:$0xff] %v4686_v4  ;;  %v1872_v34 = vmul.f32 %v3959_v59, %v4677_v19  ;;  %v911_v35 = vadd.f32 3.0, %v4673_v32  ;;  %v4699_v24 = vadd.f32 %v1727_v27, %v4508_v20  ;;  %v1952_v57 = vadd.f32 %v1920_v10, %v4569_v63 }
 0x1aa   : > { %5405 = vst [vmem:[#allocation56_spill] sm:$0xff] %v4688_v1  ;;  %v1953_v23 = vadd.f32 %v1921_v30, %v4572_v22  ;;  %v946_v37 = vmax.f32 %v910_v16, 0.0  ;;  %v4703_v45 = vmul.f32 0.16666667, %v2099_v40  ;;  %v1839_v29 = vadd.f32 %v1807_v5, %v1774_v62 }
 0x1ab   : > { %v1808_v33 = vmul.f32 %v3950_v52, %v4645_v28  ;;  %v963_v15 = vmax.f32 %v927_v6, 0.0  ;;  %v2166_v21 = vadd.f32 %v4607_v9, %v4686_v4  ;;  %v1388_v58 = vmul.f32 %v3935_v41, %v1254_v11 }
 0x1ac   : > { %5406 = vst [vmem:[#allocation57_spill] sm:$0xff] %v4703_v45  ;;  %v1203_v27 = vrot.slane %v4690_v43, 7  ;;  %v1363_v20 = vsel %vm1266_vm1, %v1286_v2, 0.0  ;;  %v4713_v63 = vadd.f32 %v1728_v7, %v4520_v14  ;;  %v1904_v50 = vadd.f32 %v1872_v34, %v1839_v29 }
 0x1ad   : > { %v1840_v22 = vadd.f32 %v1808_v33, %v1775_v3  ;;  %v947_v18 = vmax.f32 %v911_v35, 0.0  ;;  %v1421_v25 = vmul.f32 %v3937_v44, %v4638_v26  ;;  %v1581_v46 = vmul.f32 %v3940_v47, %v1254_v11 }
 0x1ae   : > { %v1614_v9 = vmul.f32 %v3942_v48, %v4638_v26  ;;  %v982_v42 = vmin.f32 %v946_v37, 6.0  ;;  %v4721_v10 = vadd.f32 %v4227_v31, %v1952_v57  ;;  %v4724_v2 = vadd.f32 %v4227_v31, %v1953_v23 }
 0x1af   : > { %v1873_v14 = vmul.f32 %v3959_v59, %v1363_v20  ;;  %v999_v30 = vmin.f32 %v963_v15, 6.0  ;;  %v4728_v16 = vadd.f32 %v2166_v21, %v4703_v45  ;;  %v1453_v40 = vadd.f32 %v1421_v25, %v1388_v58  ;;  %v888_v21 = vpop.f32.mrf.mxu3 }
 0x1b0   : > { %5407 = vst [vmem:[#allocation58_spill] sm:$0xff] %v4724_v2  ;;  %v1263_v11 = vsel %vm1157_vm0, 0.0, %v1203_v27  ;;  %v1312_v26 = vrot.slane %v4690_v43, 1  ;;  %v1936_v6 = vadd.f32 %v1904_v50, %v4651_v56  ;;  %v4736_v7 = vadd.f32 %v4460_v54, %v886_v60 }
 0x1b1   : > { %v1905_v62 = vadd.f32 %v1873_v14, %v1840_v22  ;;  %v983_v5 = vmin.f32 %v947_v18, 6.0  ;;  %v1646_v3 = vadd.f32 %v1614_v9, %v1581_v46  ;;  %v1406_v34 = vmul.f32 %v3935_v41, %v1263_v11 }
 0x1b2   : > { %v1582_v35 = vmul.f32 %v3940_v47, %v1178_v61  ;;  %v1018_v57 = vmul.f32 %v982_v42, %v4662_v38  ;;  %v1439_v23 = vmul.f32 %v3937_v44, %v4690_v43  ;;  %v1599_v37 = vmul.f32 %v3940_v47, %v1263_v11 }
 0x1b3   : > { %v1632_v29 = vmul.f32 %v3942_v48, %v4690_v43  ;;  %v1035_v56 = vmul.f32 %v999_v30, %v4634_v13  ;;  %v1792_v60 = vmul.f32 %v3944_v49, %v1263_v11  ;;  %v1825_v33 = vmul.f32 %v3950_v52, %v4690_v43 }
 0x1b4   : > { %v1389_v15 = vmul.f32 %v3935_v41, %v1178_v61  ;;  %v1615_v38 = vmul.f32 %v3942_v48, %v4645_v28  ;;  %v1937_v58 = vadd.f32 %v1905_v62, %v4670_v39  ;;  %v4755_v22 = vadd.f32 %v4227_v31, %v1936_v6  ;;  %v846_v62 = vpop.f32.mrf.mxu0 }
 0x1b5   : > { %v928_v50 = vadd.f32 3.0, %v4736_v7  ;;  %v1019_v13 = vmul.f32 %v983_v5, %v4673_v32  ;;  %v1422_v18 = vmul.f32 %v3937_v44, %v4645_v28  ;;  %v1679_v61 = vmul.f32 %v3954_v55, %v4677_v19 }
 0x1b6   : > { %v1647_v25 = vadd.f32 %v1615_v38, %v1582_v35  ;;  %v4763_v46 = vmul.f32 0.16666667, %v1018_v57  ;;  %v4765_v9 = vadd.f32 %v1439_v23, %v1406_v34  ;;  %v1071_v42 = vmul.f32 0.16666667, %v1035_v56 }
 0x1b7   : > { %v4767_v39 = vmul.f32 0.16666667, %v1019_v13  ;;  %v4770_v14 = vadd.f32 %v4460_v54, %v888_v21  ;;  %v4772_v30 = vadd.f32 %v1632_v29, %v1599_v37  ;;  %v1454_v32 = vadd.f32 %v1422_v18, %v1389_v15 }
 0x1b8   : > { %v1486_v28 = vmul.f32 %v3952_v53, %v4677_v19  ;;  %v1680_v11 = vmul.f32 %v3954_v55, %v1363_v20  ;;  %v4778_v6 = vadd.f32 %v4227_v31, %v1937_v58  ;;  %v2004_v5 = vadd.f32 3.0, %v4755_v22 }
 0x1b9   : > { %v964_v34 = vmax.f32 %v928_v50, 0.0  ;;  %v1180_v35 = vrot.slane %v4767_v39, 7  ;;  %v1487_v57 = vmul.f32 %v3952_v53, %v1363_v20  ;;  %v1711_v23 = vadd.f32 %v1679_v61, %v1646_v3 }
 0x1ba   : > { %v1712_v37 = vadd.f32 %v1680_v11, %v1647_v25  ;;  %v1179_v29 = vrot.slane %v4763_v46, 7  ;;  %v1857_v56 = vadd.f32 %v1825_v33, %v1792_v60  ;;  %v1204_v15 = vrot.slane %v1071_v42, 7 }
 0x1bb   : > { %v4785_v19 = vadd.f32 3.0, %v4770_v14  ;;  %v4788_v38 = vadd.f32 %v4460_v54, %v846_v62  ;;  %v4790_v31 = vadd.f32 %v1486_v28, %v1453_v40  ;;  %v4792_v21 = vadd.f32 %v1487_v57, %v1454_v32 }
 0x1bc   : > { %v1313_v58 = vrot.slane %v1071_v42, 1  ;;  %v1289_v50 = vrot.slane %v4767_v39, 1  ;;  %v2005_v20 = vadd.f32 3.0, %v4778_v6  ;;  %v2036_v3 = vmax.f32 %v2004_v5, 0.0 }
 0x1bd   : > { %v1000_v13 = vmin.f32 %v964_v34, 6.0  ;;  %v4797_v60 = vsel %vm1157_vm0, %v1179_v29, %v1180_v35  ;;  %v1743_v33 = vadd.f32 %v1711_v23, %v4628_v51  ;;  %v1744_v18 = vadd.f32 %v1712_v37, %v4636_v0 }
 0x1be   : > { %v1255_v25 = vsel %vm1157_vm0, 0.0, %v1179_v29  ;;  %v1288_v40 = vrot.slane %v4763_v46, 1  ;;  %v1205_v61 = vsel %vm1157_vm0, %v1203_v27, %v1204_v15  ;;  %v1440_v32 = vmul.f32 %v3937_v44, %v1071_v42 }
 0x1bf   : > { %v1633_v28 = vmul.f32 %v3942_v48, %v1071_v42  ;;  %v1826_v11 = vmul.f32 %v3950_v52, %v1071_v42  ;;  %v1314_v51 = vsel %vm1266_vm1, %v1312_v26, %v1313_v58  ;;  %v1372_v0 = vsel %vm1266_vm1, %v1313_v58, 0.0 }
 0x1c0   : > { %v4814_v62 = vsel %vm1266_vm1, %v1288_v40, %v1289_v50  ;;  %v1777_v5 = vmul.f32 %v3944_v49, %v4797_v60  ;;  %v2037_v34 = vmax.f32 %v2005_v20, 0.0  ;;  %v2068_v27 = vmin.f32 %v2036_v3, 6.0 }
 0x1c1   : > { %v1407_v35 = vmul.f32 %v3935_v41, %v1205_v61  ;;  %v1776_v57 = vmul.f32 %v3944_v49, %v1255_v25  ;;  %v1600_v42 = vmul.f32 %v3940_v47, %v1205_v61  ;;  %v1809_v43 = vmul.f32 %v3950_v52, %v4763_v46 }
 0x1c2   : > { %v1036_v26 = vmul.f32 %v1000_v13, %v4736_v7  ;;  %v1810_v23 = vmul.f32 %v3950_v52, %v4767_v39  ;;  %v4827_v37 = vsel %vm1266_vm1, %v1289_v50, 0.0  ;;  %v1874_v29 = vmul.f32 %v3959_v59, %v4814_v62 }
 0x1c3   : > { %v1797_v15 = vmul.f32 %v3944_v49, %v3932_v36  ;;  %v4834_v58 = vmul.f32 0.0, %v3950_v52  ;;  %v4837_v20 = vmul.f32 %v3952_v53, %v1314_v51  ;;  %v1793_v7 = vmul.f32 %v3944_v49, %v1205_v61 }
 0x1c4   : > { %v1890_v3 = vmul.f32 %v3959_v59, %v1314_v51  ;;  %v1842_v13 = vadd.f32 %v1810_v23, %v1777_v5  ;;  %v2069_v40 = vmin.f32 %v2037_v34, 6.0  ;;  %v2100_v50 = vmul.f32 %v2068_v27, %v4755_v22  ;;  %v5409_v23 = vld [vmem:[#allocation32_spill] sm:$0xff] }
 0x1c5   : > { %v1697_v45 = vmul.f32 %v3954_v55, %v1314_v51  ;;  %v1841_v4 = vadd.f32 %v1809_v43, %v1776_v57  ;;  %v4844_v2 = vmul.f32 %v3952_v53, %v1372_v0  ;;  %v1665_v36 = vadd.f32 %v1633_v28, %v1600_v42 }
 0x1c6   : > { %v1698_v8 = vmul.f32 %v3954_v55, %v1372_v0  ;;  %v1875_v12 = vmul.f32 %v3959_v59, %v4827_v37  ;;  %v4849_v1 = vadd.f32 %v1440_v32, %v1407_v35  ;;  %v4851_v61 = vmul.f32 0.16666667, %v1036_v26 }
 0x1c7   : > { %v1906_v5 = vadd.f32 %v1874_v29, %v1841_v4  ;;  %v1862_v34 = vadd.f32 %v4834_v58, %v1797_v15  ;;  %v1858_v22 = vadd.f32 %v1826_v11, %v1793_v7  ;;  %v1891_v51 = vmul.f32 %v3959_v59, %v1372_v0 }
 0x1c8   : > { %v1922_v27 = vadd.f32 %v1890_v3, %v1857_v56  ;;  %v1907_v57 = vadd.f32 %v1875_v12, %v1842_v13  ;;  %v2101_v43 = vmul.f32 %v2069_v40, %v4778_v6  ;;  %v4856_v28 = vmul.f32 0.16666667, %v2100_v50  ;;  %v848_v12 = vpop.f32.mrf.mxu0 }
 0x1c9   : > { %v4859_v42 = vadd.f32 %v1697_v45, %v4772_v30  ;;  %v1895_v32 = vmul.f32 %v3959_v59, %v5409_v23  ;;  %v4863_v35 = vadd.f32 %v1698_v8, %v1665_v36  ;;  %v1423_v4 = vmul.f32 %v3937_v44, %v4763_v46 }
 0x1ca   : > { %5408 = vst [vmem:[#allocation59_spill] sm:$0xff] %v4856_v28  ;;  %v1583_v11 = vmul.f32 %v3940_v47, %v1255_v25  ;;  %v965_v56 = vmax.f32 %v4785_v19, 0.0  ;;  %v1616_v6 = vmul.f32 %v3942_v48, %v4763_v46  ;;  %v5353_v0 = vrot.slane %v4851_v61, 7 }
 0x1cb   : > { %v1938_v45 = vadd.f32 %v1906_v5, %v1743_v33  ;;  %v4872_v30 = vadd.f32 %v1895_v32, %v1862_v34  ;;  %v4874_v26 = vadd.f32 %v1891_v51, %v1858_v22  ;;  %v4877_v8 = vadd.f32 %v1922_v27, %v4699_v24 }
 0x1cc   : > { %v1939_v29 = vadd.f32 %v1907_v57, %v1744_v18  ;;  %v912_v15 = vadd.f32 3.0, %v4788_v38  ;;  %v4880_v7 = vmul.f32 0.16666667, %v2101_v43  ;;  %v2168_v19 = vadd.f32 %v4728_v16, %v4856_v28  ;;  %v4896_v16 = vld [vmem:[%s5316_s6] ss:$0 sm:$0xff] }
 0x1cd   : > { %5410 = vst [vmem:[#allocation32_spill] sm:$0xff] %v4872_v30  ;;  %v1390_v46 = vmul.f32 %v3935_v41, %v1255_v25  ;;  %v849_v3 = vadd.f32 %v4460_v54, %v848_v12  ;;  %v1648_v33 = vadd.f32 %v1616_v6, %v1583_v11  ;;  %v1584_v13 = vmul.f32 %v3940_v47, %v4797_v60 }
 0x1ce   : > { %5411 = vst [vmem:[#allocation60_spill] sm:$0xff] %v4880_v7  ;;  %v1001_v40 = vmin.f32 %v965_v56, 6.0  ;;  %v948_v50 = vmax.f32 %v912_v15, 0.0  ;;  %v1264_v24 = vsel %vm1157_vm0, 0.0, %v5353_v0  ;;  %v1634_v18 = vmul.f32 %v3942_v48, %v4851_v61 }
 0x1cf   : > { %v4899_v54 = vadd.f32 %v4896_v16, %v1938_v45  ;;  %v913_v25 = vadd.f32 3.0, %v849_v3  ;;  %v1391_v36 = vmul.f32 %v3935_v41, %v4797_v60  ;;  %v1617_v5 = vmul.f32 %v3942_v48, %v4767_v39 }
 0x1d0   : > { %v4906_v34 = vadd.f32 %v4896_v16, %v1939_v29  ;;  %v984_v22 = vmin.f32 %v948_v50, 6.0  ;;  %v1601_v51 = vmul.f32 %v3940_v47, %v1264_v24  ;;  %v1827_v27 = vmul.f32 %v3950_v52, %v4851_v61 }
 0x1d1   : > { %v1681_v57 = vmul.f32 %v3954_v55, %v4814_v62  ;;  %v949_v43 = vmax.f32 %v913_v25, 0.0  ;;  %v1424_v23 = vmul.f32 %v3937_v44, %v4767_v39  ;;  %v1649_v60 = vadd.f32 %v1617_v5, %v1584_v13 }
 0x1d2   : > { %v1037_v32 = vmul.f32 %v1001_v40, %v4770_v14  ;;  %v1020_v11 = vmul.f32 %v984_v22, %v4788_v38  ;;  %v1794_v56 = vmul.f32 %v3944_v49, %v1264_v24  ;;  %v1488_v12 = vmul.f32 %v3952_v53, %v4814_v62 }
 0x1d3   : > { %v2006_v6 = vadd.f32 3.0, %v4899_v54  ;;  %v985_v45 = vmin.f32 %v949_v43, 6.0  ;;  %v1456_v29 = vadd.f32 %v1424_v23, %v1391_v36  ;;  %v1682_v15 = vmul.f32 %v3954_v55, %v4827_v37 }
 0x1d4   : > { %v2007_v50 = vadd.f32 3.0, %v4906_v34  ;;  %v1056_v39 = vmul.f32 0.16666667, %v1020_v11  ;;  %v4925_v13 = vadd.f32 %v2168_v19, %v4880_v7  ;;  %v1455_v14 = vadd.f32 %v1423_v4, %v1390_v46  ;;  %v5412_v46 = vld [vmem:[#allocation30_spill] sm:$0xff]  ;;  %v5413_v7 = vld [vmem:[#allocation33_spill] sm:$0xff] }
 0x1d5   : > { %v1489_v38 = vmul.f32 %v3952_v53, %v4827_v37  ;;  %v1713_v40 = vadd.f32 %v1681_v57, %v1648_v33  ;;  %v1714_v24 = vadd.f32 %v1682_v15, %v1649_v60  ;;  %v4929_v62 = vmul.f32 0.16666667, %v1037_v32 }
 0x1d6   : > { %v1182_v25 = vrot.slane %v1056_v39, 7  ;;  %v1021_v5 = vmul.f32 %v985_v45, %v849_v3  ;;  %v4932_v22 = vadd.f32 %v1634_v18, %v1601_v51  ;;  %v4934_v43 = vadd.f32 %v1827_v27, %v1794_v56 }
 0x1d7   : > { %v2038_v23 = vmax.f32 %v2006_v6, 0.0  ;;  %v1520_v11 = vadd.f32 %v1488_v12, %v1455_v14  ;;  %v1521_v19 = vadd.f32 %v1489_v38, %v1456_v29  ;;  %v2039_v0 = vmax.f32 %v2007_v50, 0.0 }
 0x1d8   : > { %v1256_v4 = vsel %vm1157_vm0, 0.0, %v1182_v25  ;;  %v4939_v37 = vmul.f32 %v3944_v49, %v5412_v46  ;;  %v1745_v18 = vadd.f32 %v1713_v40, %v4790_v31  ;;  %v1746_v51 = vadd.f32 %v1714_v24, %v4792_v21 }
 0x1d9   : > { %v1392_v33 = vmul.f32 %v3935_v41, %v1256_v4  ;;  %v1585_v3 = vmul.f32 %v3940_v47, %v1256_v4  ;;  %v1778_v57 = vmul.f32 %v3944_v49, %v1256_v4  ;;  %v1207_v27 = vrot.slane %v4929_v62, 7 }
 0x1da   : > { %v1057_v60 = vmul.f32 0.16666667, %v1021_v5  ;;  %v2070_v32 = vmin.f32 %v2038_v23, 6.0  ;;  %v1425_v56 = vmul.f32 %v3937_v44, %v1056_v39  ;;  %v1618_v12 = vmul.f32 %v3942_v48, %v1056_v39 }
 0x1db   : > { %v1811_v6 = vmul.f32 %v3950_v52, %v1056_v39  ;;  %v2071_v45 = vmin.f32 %v2039_v0, 6.0  ;;  %v1291_v29 = vrot.slane %v1056_v39, 1 }
 0x1dc   : > { %v1183_v15 = vrot.slane %v1057_v60, 7  ;;  %v1292_v50 = vrot.slane %v1057_v60, 1  ;;  %v1457_v14 = vadd.f32 %v1425_v56, %v1392_v33  ;;  %v1650_v38 = vadd.f32 %v1618_v12, %v1585_v3 }
 0x1dd   : > { %v1843_v4 = vadd.f32 %v1811_v6, %v1778_v57  ;;  %v1426_v31 = vmul.f32 %v3937_v44, %v1057_v60  ;;  %v1619_v5 = vmul.f32 %v3942_v48, %v1057_v60  ;;  %v1812_v46 = vmul.f32 %v3950_v52, %v1057_v60 }
 0x1de   : > { %v1184_v21 = vsel %vm1157_vm0, %v1182_v25, %v1183_v15  ;;  %v1293_v40 = vsel %vm1266_vm1, %v1291_v29, %v1292_v50  ;;  %v1365_v24 = vsel %vm1266_vm1, %v1292_v50, 0.0  ;;  %v2102_v60 = vmul.f32 %v2070_v32, %v4899_v54  ;;  %v5416_v32 = vld [vmem:[#allocation34_spill] sm:$0xff] }
 0x1df   : > { %v1393_v23 = vmul.f32 %v3935_v41, %v1184_v21  ;;  %v1490_v0 = vmul.f32 %v3952_v53, %v1293_v40  ;;  %v1586_v39 = vmul.f32 %v3940_v47, %v1184_v21  ;;  %v1491_v33 = vmul.f32 %v3952_v53, %v1365_v24 }
 0x1e0   : > { %v1683_v44 = vmul.f32 %v3954_v55, %v1293_v40  ;;  %v1779_v25 = vmul.f32 %v3944_v49, %v1184_v21  ;;  %v1876_v3 = vmul.f32 %v3959_v59, %v1293_v40  ;;  %v1684_v6 = vmul.f32 %v3954_v55, %v1365_v24 }
 0x1e1   : > { %v1458_v57 = vadd.f32 %v1426_v31, %v1393_v23  ;;  %v1522_v56 = vadd.f32 %v1490_v0, %v1457_v14  ;;  %v1651_v12 = vadd.f32 %v1619_v5, %v1586_v39  ;;  %v1877_v15 = vmul.f32 %v3959_v59, %v1365_v24  ;;  %v5415_v0 = vld [vmem:[#allocation37_spill] sm:$0xff] }
 0x1e2   : > { %v1715_v41 = vadd.f32 %v1683_v44, %v1650_v38  ;;  %v1844_v29 = vadd.f32 %v1812_v46, %v1779_v25  ;;  %v1908_v50 = vadd.f32 %v1876_v3, %v1843_v4  ;;  %v1316_v21 = vrot.slane %v4929_v62, 1  ;;  %v5414_v38 = vld [vmem:[#allocation35_spill] sm:$0xff] }
 0x1e3   : > { %v1523_v36 = vadd.f32 %v1491_v33, %v1458_v57  ;;  %v1716_v53 = vadd.f32 %v1684_v6, %v1651_v12  ;;  %v1749_v28 = vadd.f32 %v5413_v7, %v1522_v56  ;;  %v1635_v14 = vmul.f32 %v3942_v48, %v4929_v62 }
 0x1e4   : > { %v1747_v30 = vadd.f32 %v1715_v41, %v1520_v11  ;;  %v1909_v40 = vadd.f32 %v1877_v15, %v1844_v29  ;;  %v1940_v31 = vadd.f32 %v1908_v50, %v1745_v18  ;;  %v2103_v4 = vmul.f32 %v2071_v45, %v4906_v34  ;;  %v5417_v11 = vld [vmem:[#allocation36_spill] sm:$0xff]  ;;  %v5418_v18 = vld [vmem:[#allocation38_spill] sm:$0xff] }
 0x1e5   : > { %v1748_v5 = vadd.f32 %v1716_v53, %v1521_v19  ;;  %v1750_v23 = vadd.f32 %v5414_v38, %v1523_v36  ;;  %v1944_v24 = vadd.f32 %v5415_v0, %v1749_v28  ;;  %v4975_v46 = vmul.f32 0.16666667, %v2102_v60 }
 0x1e6   : > { %v1941_v54 = vadd.f32 %v1909_v40, %v1746_v51  ;;  %v1942_v39 = vadd.f32 %v5416_v32, %v1747_v30  ;;  %v1976_v7 = vadd.f32 %v4896_v16, %v1940_v31  ;;  %v1828_v36 = vmul.f32 %v3950_v52, %v4929_v62 }
 0x1e7   : > { %v1943_v33 = vadd.f32 %v5417_v11, %v1748_v5  ;;  %v1945_v44 = vadd.f32 %v5418_v18, %v1750_v23  ;;  %v1980_v48 = vadd.f32 %v4896_v16, %v1944_v24  ;;  %v5419_v30 = vrot.slane %v4851_v61, 7 }
 0x1e8   : > { %v1977_v28 = vadd.f32 %v4896_v16, %v1941_v54  ;;  %v1978_v34 = vadd.f32 %v4896_v16, %v1942_v39  ;;  %v2008_v19 = vadd.f32 3.0, %v1976_v7  ;;  %v5420_v57 = vrot.slane %v4851_v61, 1 }
 0x1e9   : > { %v1208_v51 = vsel %vm1157_vm0, %v5419_v30, %v1207_v27  ;;  %v1979_v45 = vadd.f32 %v4896_v16, %v1943_v33  ;;  %v1981_v25 = vadd.f32 %v4896_v16, %v1945_v44  ;;  %v2012_v3 = vadd.f32 3.0, %v1980_v48 }
 0x1ea   : > { %v1317_v56 = vsel %vm1266_vm1, %v5420_v57, %v1316_v21  ;;  %v2009_v12 = vadd.f32 3.0, %v1977_v28  ;;  %v2010_v52 = vadd.f32 3.0, %v1978_v34  ;;  %v2040_v62 = vmax.f32 %v2008_v19, 0.0  ;;  %v2351_v57 = vld [vmem:[#allocation13 + $0x70] sm:$0xff] }
 0x1eb   : > { %v4992_v6 = vmul.f32 0.16666667, %v2103_v4  ;;  %v2170_v41 = vadd.f32 %v4925_v13, %v4975_v46  ;;  %v2011_v29 = vadd.f32 3.0, %v1979_v45  ;;  %v2013_v15 = vadd.f32 3.0, %v1981_v25 }
 0x1ec   : > { %v2041_v27 = vmax.f32 %v2009_v12, 0.0  ;;  %v2042_v50 = vmax.f32 %v2010_v52, 0.0  ;;  %v2044_v60 = vmax.f32 %v2012_v3, 0.0  ;;  %v2072_v53 = vmin.f32 %v2040_v62, 6.0  ;;  %v2352_v3 = vld [vmem:[#allocation13 + $0x78] sm:$0xff]  ;;  %v2350_v62 = vld [vmem:[#allocation13 + $0x68] sm:$0xff] }
 0x1ed   : > { %v1373_v40 = vsel %vm1266_vm1, %v1316_v21, 0.0  ;;  %v1602_v61 = vmul.f32 %v3940_v47, %v1208_v51  ;;  %v1795_v31 = vmul.f32 %v3944_v49, %v1208_v51  ;;  %v2043_v5 = vmax.f32 %v2011_v29, 0.0  ;;  %2353 = vmatpush.msra.mxu1 %v2352_v3  ;;  %v5432_v3 = vld [vmem:[#allocation42_spill] sm:$0xff] }
 0x1ee   : > { %v2045_v38 = vmax.f32 %v2013_v15, 0.0  ;;  %v2073_v23 = vmin.f32 %v2041_v27, 6.0  ;;  %v2074_v0 = vmin.f32 %v2042_v50, 6.0  ;;  %v2104_v24 = vmul.f32 %v2072_v53, %v1976_v7  ;;  %v2348_v27 = vld [vmem:[#allocation13 + $0x58] sm:$0xff]  ;;  %v5423_v50 = vld [vmem:[#allocation47_spill] sm:$0xff] }
 0x1ef   : > { %v2171_v4 = vadd.f32 %v2170_v41, %v4992_v6  ;;  %v1699_v13 = vmul.f32 %v3954_v55, %v1317_v56  ;;  %v1892_v54 = vmul.f32 %v3959_v59, %v1317_v56  ;;  %v2075_v32 = vmin.f32 %v2043_v5, 6.0  ;;  %2354 = vmatpush.msra.mxu1 %v2351_v57  ;;  %v2349_v41 = vld [vmem:[#allocation13 + $0x60] sm:$0xff] }
 0x1f0   : > { %v2076_v39 = vmin.f32 %v2044_v60, 6.0  ;;  %v2105_v11 = vmul.f32 %v2073_v23, %v1977_v28  ;;  %v2106_v33 = vmul.f32 %v2074_v0, %v1978_v34  ;;  %v5002_v21 = vmul.f32 0.16666667, %v2104_v24  ;;  %v2347_v24 = vld [vmem:[#allocation13 + $0x50] sm:$0xff] }
 0x1f1   : > { %v1667_v47 = vadd.f32 %v1635_v14, %v1602_v61  ;;  %v1700_v49 = vmul.f32 %v3954_v55, %v1373_v40  ;;  %v1860_v18 = vadd.f32 %v1828_v36, %v1795_v31  ;;  %v1893_v44 = vmul.f32 %v3959_v59, %v1373_v40  ;;  %v5421_v55 = vld [vmem:[#allocation31_spill] sm:$0xff]  ;;  %2355 = vmatpush.msra.mxu1 %v2350_v62  ;;  %v5425_v40 = vld [vmem:[#allocation54_spill] sm:$0xff] }
 0x1f2   : > { %v2077_v19 = vmin.f32 %v2045_v38, 6.0  ;;  %v2107_v7 = vmul.f32 %v2075_v32, %v1979_v45  ;;  %v5006_v30 = vmul.f32 0.16666667, %v2105_v11  ;;  %v2172_v51 = vadd.f32 %v2171_v4, %v5002_v21  ;;  %v5426_v31 = vld [vmem:[#allocation58_spill] sm:$0xff]  ;;  %v5427_v4 = vld [vmem:[#allocation41_spill] sm:$0xff]  ;;  %v5429_v32 = vld [vmem:[#allocation48_spill] sm:$0xff] }
 0x1f3   : > { %v1536_v28 = vadd.f32 %v4837_v20, %v4765_v9  ;;  %v1731_v34 = vadd.f32 %v1699_v13, %v4932_v22  ;;  %v1861_v14 = vadd.f32 %v4834_v58, %v4939_v37  ;;  %v1894_v36 = vmul.f32 %v3959_v59, %v5421_v55  ;;  %2356 = vmatpush.msra.mxu1 %v2349_v41  ;;  %v5430_v11 = vld [vmem:[#allocation52_spill] sm:$0xff] }
 0x1f4   : > { %v1924_v45 = vadd.f32 %v1892_v54, %v4934_v43  ;;  %v2108_v56 = vmul.f32 %v2076_v39, %v1980_v48  ;;  %v5017_v12 = vmul.f32 0.16666667, %v2106_v33  ;;  %v2173_v52 = vadd.f32 %v2172_v51, %v5006_v30  ;;  %v5428_v54 = vld [vmem:[#allocation43_spill] sm:$0xff] }
 0x1f5   : > { %v1955_v9 = vadd.f32 %v4874_v26, %v4713_v63  ;;  %v1537_v20 = vadd.f32 %v4844_v2, %v4849_v1  ;;  %v1732_v22 = vadd.f32 %v1700_v49, %v1667_v47  ;;  %v1761_v58 = vadd.f32 %v4859_v42, %v4682_v17  ;;  %v5422_v26 = vld [vmem:[#allocation56_spill] sm:$0xff]  ;;  %2357 = vmatpush.msra.mxu1 %v2348_v27  ;;  %v2346_v51 = vld [vmem:[#allocation13 + $0x48] sm:$0xff] }
 0x1f6   : > { %v1925_v59 = vadd.f32 %v1893_v44, %v1860_v18  ;;  %v2109_v37 = vmul.f32 %v2077_v19, %v1981_v25  ;;  %v5026_v43 = vmul.f32 0.16666667, %v2107_v7  ;;  %v2174_v48 = vadd.f32 %v2173_v52, %v5017_v12 }
 0x1f7   : > { %v2020_v29 = vadd.f32 3.0, %v4721_v10  ;;  %v5032_v63 = vadd.f32 %v4896_v16, %v4877_v8  ;;  %v1762_v1 = vadd.f32 %v4863_v35, %v5422_v26  ;;  %v1763_v2 = vadd.f32 %v1731_v34, %v1536_v28  ;;  %v5433_v28 = vld [vmem:[#allocation45_spill] sm:$0xff]  ;;  %2358 = vmatpush.msra.mxu1 %v2347_v24  ;;  %v2342_v24 = vld [vmem:[#allocation13 + $0x28] sm:$0xff] }
 0x1f8   : > { %v1926_v17 = vadd.f32 %v1894_v36, %v1861_v14  ;;  %v1956_v42 = vadd.f32 %v1924_v45, %v1761_v58  ;;  %v5036_v15 = vmul.f32 0.16666667, %v2108_v56  ;;  %v2175_v25 = vadd.f32 %v2174_v48, %v5026_v43  ;;  %v5434_v45 = vld [vmem:[#allocation32_spill] sm:$0xff]  ;;  %v2344_v26 = vld [vmem:[#allocation13 + $0x38] sm:$0xff] }
 0x1f9   : > { %v5424_v60 = vmax.f32 %v5423_v50, 0.0  ;;  %v2051_v61 = vmax.f32 %v5425_v40, 0.0  ;;  %v2021_v8 = vadd.f32 3.0, %v5426_v31  ;;  %v5044_v5 = vadd.f32 %v4896_v16, %v1955_v9  ;;  %v2345_v9 = vld [vmem:[#allocation13 + $0x40] sm:$0xff]  ;;  %2359 = vmatpush.msra.mxu1 %v2346_v51 }
 0x1fa   : > { %v1764_v35 = vadd.f32 %v1732_v22, %v1537_v20  ;;  %v1957_v38 = vadd.f32 %v1925_v59, %v1762_v1  ;;  %v5046_v23 = vmul.f32 0.16666667, %v2109_v37  ;;  %v2176_v0 = vadd.f32 %v2175_v25, %v5036_v15  ;;  %v5435_v22 = vld [vmem:[#allocation49_spill] sm:$0xff] }
 0x1fb   : > { %v2081_v53 = vmin.f32 %v5424_v60, 6.0  ;;  %v5050_v13 = vmul.f32 0.16666667, %v5427_v4  ;;  %v2112_v39 = vmul.f32 %v5429_v32, %v5428_v54  ;;  %v5431_v33 = vmax.f32 %v5430_v11, 0.0  ;;  %2360 = vmatpush.msra.mxu1 %v2345_v9 }
 0x1fc   : > { %v2052_v49 = vmax.f32 %v2020_v29, 0.0  ;;  %v2022_v18 = vadd.f32 3.0, %v5032_v63  ;;  %v1958_v44 = vadd.f32 %v1926_v17, %v1763_v2  ;;  %v5058_v19 = vadd.f32 %v4896_v16, %v1956_v42  ;;  %v5436_v2 = vld [vmem:[#allocation51_spill] sm:$0xff] }
 0x1fd   : > { %v2082_v47 = vmin.f32 %v5431_v33, 6.0  ;;  %v2177_v7 = vadd.f32 %v2176_v0, %v5046_v23  ;;  %v5062_v57 = vmul.f32 0.16666667, %v5432_v3  ;;  %v2113_v34 = vmul.f32 %v2081_v53, %v5433_v28  ;;  %v2343_v53 = vld [vmem:[#allocation13 + $0x30] sm:$0xff]  ;;  %2361 = vmatpush.msra.mxu1 %v2344_v26  ;;  %v2341_v33 = vld [vmem:[#allocation13 + $0x20] sm:$0xff] }
 0x1fe   : > { %v2083_v14 = vmin.f32 %v2051_v61, 6.0  ;;  %v2053_v55 = vmax.f32 %v2021_v8, 0.0  ;;  %v2023_v36 = vadd.f32 3.0, %v5044_v5  ;;  %v1959_v56 = vadd.f32 %v5434_v45, %v1764_v35 }
 0x1ff   : > { %v1993_v52 = vadd.f32 %v4896_v16, %v1957_v38  ;;  %v2178_v62 = vadd.f32 %v2177_v7, %v5050_v13  ;;  %v5069_v20 = vmul.f32 0.16666667, %v2112_v39  ;;  %v2114_v58 = vmul.f32 %v2082_v47, %v5435_v22  ;;  %2362 = vmatpush.msra.mxu1 %v2343_v53  ;;  %v2340_v7 = vld [vmem:[#allocation13 + $0x18] sm:$0xff] }
 0x200   : > { %v2084_v59 = vmin.f32 %v2052_v49, 6.0  ;;  %v2054_v37 = vmax.f32 %v2022_v18, 0.0  ;;  %v1994_v48 = vadd.f32 %v4896_v16, %v1958_v44  ;;  %v2024_v41 = vadd.f32 3.0, %v5058_v19 }
 0x201   : > { %v2179_v29 = vadd.f32 %v2178_v62, %v5062_v57  ;;  %v5075_v1 = vmul.f32 0.16666667, %v2113_v34  ;;  %v2115_v17 = vmul.f32 %v2083_v14, %v5436_v2  ;;  %v2085_v42 = vmin.f32 %v2053_v55, 6.0  ;;  %2363 = vmatpush.msra.mxu1 %v2342_v24  ;;  %v2339_v14 = vld [vmem:[#allocation13 + $0x10] sm:$0xff]  ;;  %v3123_v24 = vld [vmem:[#allocation15 + $0x38] sm:$0xff] }
 0x202   : > { %v2055_v25 = vmax.f32 %v2023_v36, 0.0  ;;  %v1995_v27 = vadd.f32 %v4896_v16, %v1959_v56  ;;  %v2025_v50 = vadd.f32 3.0, %v1993_v52  ;;  %v5080_v40 = vmul.f32 0.16666667, %v2114_v58  ;;  %v2338_v56 = vld [vmem:[#allocation13 + $0x8] sm:$0xff]  ;;  %v2337_v58 = vld [vmem:[#allocation13] sm:$0xff]  ;;  %3213 = vmatpush.bf16.msra.mxu2 %v3123_v24 }
 0x203   : > { %v2180_v60 = vadd.f32 %v2179_v29, %v5069_v20  ;;  %v2116_v61 = vmul.f32 %v2084_v59, %v4721_v10  ;;  %v2086_v8 = vmin.f32 %v2054_v37, 6.0  ;;  %v2026_v35 = vadd.f32 3.0, %v1994_v48  ;;  %2364 = vmatpush.msra.mxu1 %v2341_v33  ;;  %v3117_v33 = vld [vmem:[#allocation15 + $0x8] sm:$0xff] }
 0x204   : > { %v2056_v38 = vmax.f32 %v2024_v41, 0.0  ;;  %v5084_v4 = vmul.f32 0.16666667, %v2115_v17  ;;  %v2117_v54 = vmul.f32 %v2085_v42, %v5426_v31  ;;  %v2087_v16 = vmin.f32 %v2055_v25, 6.0 }
 0x205   : > { %v2181_v0 = vadd.f32 %v2180_v60, %v5075_v1  ;;  %v2027_v32 = vadd.f32 3.0, %v1995_v27  ;;  %v2057_v39 = vmax.f32 %v2025_v50, 0.0  ;;  %v5088_v47 = vmul.f32 0.16666667, %v2116_v61  ;;  %2365 = vmatpush.msra.mxu1 %v2340_v7 }
 0x206   : > { %v2118_v10 = vmul.f32 %v2086_v8, %v5032_v63  ;;  %v2058_v49 = vmax.f32 %v2026_v35, 0.0  ;;  %v2088_v18 = vmin.f32 %v2056_v38, 6.0  ;;  %v5092_v51 = vmul.f32 0.16666667, %v2117_v54  ;;  %v3122_v54 = vld [vmem:[#allocation15 + $0x30] sm:$0xff] }
 0x207   : > { %v2182_v11 = vadd.f32 %v2181_v0, %v5080_v40  ;;  %v2119_v31 = vmul.f32 %v2087_v16, %v5044_v5  ;;  %v2059_v3 = vmax.f32 %v2027_v32, 0.0  ;;  %v2089_v28 = vmin.f32 %v2057_v39, 6.0  ;;  %2366 = vmatpush.msra.mxu1 %v2339_v14  ;;  %3214 = vmatpush.bf16.msra.mxu2 %v3122_v54  ;;  %v3121_v16 = vld [vmem:[#allocation15 + $0x28] sm:$0xff]  ;;  %v3120_v32 = vld [vmem:[#allocation15 + $0x20] sm:$0xff]  ;;  %v3119_v39 = vld [vmem:[#allocation15 + $0x18] sm:$0xff] }
 0x208   : > { %v5096_v55 = vmul.f32 0.16666667, %v2118_v10  ;;  %v2090_v36 = vmin.f32 %v2058_v49, 6.0  ;;  %v2120_v63 = vmul.f32 %v2088_v18, %v5058_v19  ;;  %v3116_v18 = vld [vmem:[#allocation15] sm:$0xff] }
 0x209   : > { %v2183_v44 = vadd.f32 %v2182_v11, %v5084_v4  ;;  %v5100_v62 = vmul.f32 0.16666667, %v2119_v31  ;;  %v2091_v9 = vmin.f32 %v2059_v3, 6.0  ;;  %v2121_v22 = vmul.f32 %v2089_v28, %v1993_v52  ;;  %2367 = vmatpush.msra.mxu1 %v2338_v56  ;;  %v3118_v11 = vld [vmem:[#allocation15 + $0x10] sm:$0xff] }
 0x20a   : > { %v2122_v59 = vmul.f32 %v2090_v36, %v1994_v48  ;;  %v5103_v37 = vmul.f32 0.16666667, %v2120_v63 }
 0x20b   : > { %v2184_v34 = vadd.f32 %v2183_v44, %v5088_v47  ;;  %2368 = vmatpush.msra.mxu1 %v2337_v58  ;;  %v2123_v29 = vmul.f32 %v2091_v9, %v1995_v27  ;;  %v5106_v19 = vmul.f32 0.16666667, %v2121_v22  ;;  %v2160_v27 = vld [vmem:[#allocation3] sm:$0x1]  ;;  %3215 = vmatpush.bf16.msra.mxu2 %v3121_v16  ;;  %v5437_v58 = vld [vmem:[#allocation39_spill] sm:$0xff] }
 0x20c   : > { %v5109_v2 = vmul.f32 0.16666667, %v2122_v59 }
 0x20d   : > { %v2185_v45 = vadd.f32 %v2184_v34, %v5092_v51  ;;  %v5112_v52 = vmul.f32 0.16666667, %v2123_v29  ;;  %2542 = vmatpush.bf16.msrb.mxu1 %v3123_v24 }
 0x20f   : > { %v2186_v5 = vadd.f32 %v2185_v45, %v5096_v55  ;;  %3216 = vmatpush.bf16.msra.mxu2 %v3120_v32 }
 0x211   : > { %v2187_v41 = vadd.f32 %v2186_v5, %v5100_v62  ;;  %2543 = vmatpush.bf16.msrb.mxu1 %v3122_v54 }
 0x213   : > { %v2188_v26 = vadd.f32 %v2187_v41, %v5103_v37  ;;  %3217 = vmatpush.bf16.msra.mxu2 %v3119_v39  ;;  %v5438_v41 = vld [vmem:[#allocation40_spill] sm:$0xff] }
 0x215   : > { %v2189_v17 = vadd.f32 %v2188_v26, %v5106_v19  ;;  %2544 = vmatpush.bf16.msrb.mxu1 %v3121_v16 }
 0x217   : > { %v2190_v42 = vadd.f32 %v2189_v17, %v5109_v2  ;;  %3218 = vmatpush.bf16.msra.mxu2 %v3118_v11 }
 0x219   : > { %v2191_v48 = vadd.f32 %v2190_v42, %v5112_v52  ;;  %2545 = vmatpush.bf16.msrb.mxu1 %v3120_v32 }
 0x21b   : > { %v2192_v25 = vrot.slane %v2191_v48, 4  ;;  %3219 = vmatpush.bf16.msra.mxu2 %v3117_v33 }
 0x21d   : > { %v2193_v50 = vadd.f32 %v2192_v25, %v2191_v48  ;;  %2546 = vmatpush.bf16.msrb.mxu1 %v3119_v39  ;;  %v5439_v25 = vld [vmem:[#allocation44_spill] sm:$0xff]  ;;  %v5444_v39 = vld [vmem:[#allocation57_spill] sm:$0xff] }
 0x21f   : > { %v2194_v60 = vrot.slane %v2193_v50, 2  ;;  %3220 = vmatpush.bf16.msra.mxu2 %v3116_v18 }
 0x221   : > { %v2195_v53 = vadd.f32 %v2194_v60, %v2193_v50  ;;  %2547 = vmatpush.bf16.msrb.mxu1 %v3118_v11  ;;  %v5440_v60 = vld [vmem:[#allocation46_spill] sm:$0xff] }
 0x223   : > { %v2196_v61 = vrot.slane %v2195_v53, 1 }
 0x225   : > { %v2197_v8 = vadd.f32 %v2196_v61, %v2195_v53  ;;  %2548 = vmatpush.bf16.msrb.mxu1 %v3117_v33 }
 0x227   : > { %v2198_v35 = vadd.f32 %v2197_v8, %v2160_v27 }
 0x229   : > { %2199 = vst [vmem:[#allocation3] sm:$0x1] %v2198_v35  ;;  %2549 = vmatpush.bf16.msrb.mxu1 %v3116_v18 }
 0x230   : > { %v2335_v38 = vld [vmem:[#allocation3] sm:$0x1] }
 0x231   : > { %v2336_v0 = vmul.f32 0.00390625, %v2335_v38  ;;  %v5442_v38 = vld [vmem:[#allocation53_spill] sm:$0xff] }
 0x233   : > { %2369 = vmatmul.f32.vlgmr.msra.gmra.mxu1 %v2336_v0 }
 0x2b0   : > { %v2370_v10 = vpop.f32.mrf.mxu1 }
 0x2b1   : > { %v3048_v49 = vmul.f32 -1.442695, %v2370_v10 }
 0x2b3   : > { %3344 = vpow2.f32 %v3048_v49 }
 0x2b9   : > { %v3345_v44 = vpop.eup %3344 }
 0x2ba   : > { %v2376_v7 = vadd.f32 1.0, %v3345_v44  ;;  %v5446_v44 = vld [vmem:[#allocation60_spill] sm:$0xff] }
 0x2bc   : > { %3346 = vrcp.f32 %v2376_v7  ;;  %v2388_v34 = vand.u32 2147483648, %v2376_v7  ;;  %v2386_v36 = vand.u32 2147483647, %v2376_v7  ;;  %vm2382_vm3 = vweird.f32 %v2376_v7 }
 0x2be   : > { %v2389_v45 = vor.u32 1.1754944e-38, %v2388_v34  ;;  %vm2387_vm5 = vcmp.eq.f32.partialorder %v2386_v36, 8.507059e+37 }
 0x2c2   : > { %v3347_v31 = vpop.eup %3346 }
 0x2c3   : > { %v2378_v3 = vmul.f32 %v3347_v31, %v2376_v7  ;;  %vm2383_vm2 = vweird.f32 %v3347_v31 }
 0x2c4   : > { %vm2384_vm4 = vmor %vm2382_vm3, %vm2383_vm2 }
 0x2c5   : > { %v2379_v28 = vsub.f32 1.0, %v2378_v3 }
 0x2c7   : > { %v2380_v14 = vmul.f32 %v3347_v31, %v2379_v28 }
 0x2c9   : > { %v2381_v63 = vadd.f32 %v3347_v31, %v2380_v14 }
 0x2cb   : > { %v2385_v56 = vsel %vm2384_vm4, %v3347_v31, %v2381_v63 }
 0x2cc   : > { %v2390_v9 = vsel %vm2387_vm5, %v2389_v45, %v2385_v56  ;;  %v3107_v56 = vld [vmem:[%s3899_s7] sm:$0xff]  ;;  %s2740_s7 = sshll.u32 %s5192_s17, 4  ;;  %s2741_s7 = int_to_ptr.vmem [resolvable:$true] %s2740_s7 }
 0x2cd   : > { %v2392_v22 = vadd.f32 1.0, %v2390_v9  ;;  %890 = vmatmul.bf16.gmra.mxu3 %v3107_v56 }
 0x2cf   : > { %v5116_v5 = vperm.slane %v2392_v22, 0 }
 0x2d1   : > { %v2426_v59 = vmul.f32 %v5116_v5, %v5437_v58  ;;  %v2427_v29 = vmul.f32 %v5116_v5, %v5438_v41  ;;  %v2440_v26 = vmul.f32 %v5116_v5, %v5017_v12  ;;  %v2441_v17 = vmul.f32 %v5116_v5, %v5026_v43  ;;  %v5441_v43 = vld [vmem:[#allocation50_spill] sm:$0xff] }
 0x2d2   : > { %v2428_v50 = vmul.f32 %v5116_v5, %v5439_v25  ;;  %v2429_v53 = vmul.f32 %v5116_v5, %v5440_v60  ;;  %v2442_v61 = vmul.f32 %v5116_v5, %v5036_v15  ;;  %v2443_v27 = vmul.f32 %v5116_v5, %v5046_v23  ;;  %v5443_v23 = vld [vmem:[#allocation55_spill] sm:$0xff] }
 0x2d3   : > { %v2458_v42 = vpack.c.bf16 %v2427_v29, %v2426_v59  ;;  %v2465_v48 = vpack.c.bf16 %v2441_v17, %v2440_v26  ;;  %v2430_v35 = vmul.f32 %v5116_v5, %v5441_v43  ;;  %v2431_v0 = vmul.f32 %v5116_v5, %v5442_v38  ;;  %v3196_v29 = vld [vmem:[%s3893_s30 + $0x38] sm:$0xff]   ;;  %v3190_v60 = vld [vmem:[%s3893_s30 + $0x8] sm:$0xff]   ;;  %v3197_v38 = vld [vmem:[%s3893_s30 + $0x40] sm:$0xff]  }
 0x2d4   : > { %v2459_v12 = vpack.c.bf16 %v2429_v53, %v2428_v50  ;;  %v2466_v8 = vpack.c.bf16 %v2443_v27, %v2442_v61  ;;  %v2444_v24 = vmul.f32 %v5116_v5, %v5050_v13  ;;  %v2445_v54 = vmul.f32 %v5116_v5, %v5062_v57  ;;  %v5445_v57 = vld [vmem:[#allocation59_spill] sm:$0xff] }
 0x2d5   : > { %2550 = vmatmul.bf16.vlgmr.msrb.gmra.mxu1 %v2458_v42  ;;  %2585 = vmatmul.bf16.vlgmr.msra.gmra.mxu2 %v2465_v48  ;;  %v2460_v15 = vpack.c.bf16 %v2431_v0, %v2430_v35  ;;  %v2432_v32 = vmul.f32 %v5116_v5, %v5443_v23  ;;  %v2433_v11 = vmul.f32 %v5116_v5, %v5444_v39  ;;  %v3156_v53 = vunpack.c.h.bf16 %v3196_v29 }
 0x2d6   : > { %v2467_v16 = vpack.c.bf16 %v2445_v54, %v2444_v24  ;;  %v2446_v33 = vmul.f32 %v5116_v5, %v5069_v20  ;;  %v2447_v10 = vmul.f32 %v5116_v5, %v5075_v1  ;;  %v2434_v18 = vmul.f32 %v5116_v5, %v5445_v57 }
 0x2d7   : > { %v2461_v13 = vpack.c.bf16 %v2433_v11, %v2432_v32  ;;  %v2435_v7 = vmul.f32 %v5116_v5, %v5446_v44  ;;  %v2448_v31 = vmul.f32 %v5116_v5, %v5080_v40  ;;  %v2449_v3 = vmul.f32 %v5116_v5, %v5084_v4 }
 0x2d8   : > { %v2468_v49 = vpack.c.bf16 %v2447_v10, %v2446_v33  ;;  %v2436_v1 = vmul.f32 %v5116_v5, %v4975_v46  ;;  %v2437_v34 = vmul.f32 %v5116_v5, %v4992_v6  ;;  %v2450_v14 = vmul.f32 %v5116_v5, %v5088_v47  ;;  %v3191_v33 = vld [vmem:[%s3893_s30 + $0x10] sm:$0xff]  }
 0x2d9   : > { %v2462_v20 = vpack.c.bf16 %v2435_v7, %v2434_v18  ;;  %v2469_v28 = vpack.c.bf16 %v2449_v3, %v2448_v31  ;;  %v2451_v40 = vmul.f32 %v5116_v5, %v5092_v51  ;;  %v2438_v4 = vmul.f32 %v5116_v5, %v5002_v21  ;;  %v3198_v31 = vld [vmem:[%s3893_s30 + $0x48] sm:$0xff]  }
 0x2da   : > { %v2463_v36 = vpack.c.bf16 %v2437_v34, %v2436_v1  ;;  %v2439_v46 = vmul.f32 %v5116_v5, %v5006_v30  ;;  %v2452_v6 = vmul.f32 %v5116_v5, %v5096_v55  ;;  %v2453_v47 = vmul.f32 %v5116_v5, %v5100_v62  ;;  %v3126_v55 = vld [vmem:[%s3893_s30] sm:$0xff]   ;;  %v5183_v62 = vld [vmem:[%s5319_s9] ss:$0 sm:$0xff] }
 0x2db   : > { %v2470_v63 = vpack.c.bf16 %v2451_v40, %v2450_v14  ;;  %v2454_v21 = vmul.f32 %v5116_v5, %v5103_v37  ;;  %v2455_v30 = vmul.f32 %v5116_v5, %v5106_v19  ;;  %v2456_v22 = vmul.f32 %v5116_v5, %v5109_v2 }
 0x2dc   : > { %v2464_v45 = vpack.c.bf16 %v2439_v46, %v2438_v4  ;;  %v2471_v51 = vpack.c.bf16 %v2453_v47, %v2452_v6  ;;  %v2457_v58 = vmul.f32 %v5116_v5, %v5112_v52  ;;  %v3127_v59 = vunpack.c.l.bf16 %v3126_v55  ;;  %v3192_v4 = vld [vmem:[%s3893_s30 + $0x18] sm:$0xff]  }
 0x2dd   : > { %v2472_v9 = vpack.c.bf16 %v2455_v30, %v2454_v21  ;;  %v3155_v2 = vunpack.c.l.bf16 %v3196_v29  ;;  %v3128_v5 = vunpack.c.h.bf16 %v3126_v55  ;;  %v3159_v24 = vunpack.c.l.bf16 %v3197_v38  ;;  %v3199_v30 = vld [vmem:[%s3893_s30 + $0x50] sm:$0xff]  }
 0x2de   : > { %v2473_v19 = vpack.c.bf16 %v2457_v58, %v2456_v22  ;;  %v3160_v10 = vunpack.c.h.bf16 %v3197_v38  ;;  %v3135_v57 = vunpack.c.l.bf16 %v3191_v33  ;;  %v3136_v34 = vunpack.c.h.bf16 %v3191_v33 }
 0x2df   : > { %v3164_v46 = vunpack.c.h.bf16 %v3198_v31  ;;  %v3167_v55 = vunpack.c.l.bf16 %v3199_v30 }
 0x2e5   : > { %2555 = vmatmul.bf16.gmra.mxu1 %v2459_v12  ;;  %2590 = vmatmul.bf16.gmra.mxu2 %v2466_v8  ;;  %v3131_v12 = vunpack.c.l.bf16 %v3190_v60 }
 0x2f5   : > { %2560 = vmatmul.bf16.gmra.mxu1 %v2460_v15  ;;  %2595 = vmatmul.bf16.gmra.mxu2 %v2467_v16  ;;  %v3132_v16 = vunpack.c.h.bf16 %v3190_v60 }
 0x305   : > { %2565 = vmatmul.bf16.gmra.mxu1 %v2461_v13  ;;  %2600 = vmatmul.bf16.gmra.mxu2 %v2468_v49 }
 0x315   : > { %2570 = vmatmul.bf16.gmra.mxu1 %v2462_v20  ;;  %2605 = vmatmul.bf16.gmra.mxu2 %v2469_v28  ;;  %v3163_v20 = vunpack.c.l.bf16 %v3198_v31 }
 0x325   : > { %2575 = vmatmul.bf16.gmra.mxu1 %v2463_v36  ;;  %2610 = vmatmul.bf16.gmra.mxu2 %v2470_v63 }
 0x335   : > { %2580 = vmatmul.bf16.gmra.mxu1 %v2464_v45  ;;  %2615 = vmatmul.bf16.gmra.mxu2 %v2471_v51  ;;  %v3139_v45 = vunpack.c.l.bf16 %v3192_v4 }
 0x345   : > { %2620 = vmatmul.bf16.gmra.mxu2 %v2472_v9 }
 0x352   : > { %v2551_v37 = vpop.f32.mrf.mxu1 }
 0x353   : > { %v2552_v41 = vadd.f32 %v5183_v62, %v2551_v37 }
 0x355   : > { %v2663_v26 = vadd.f32 %v3127_v59, %v2552_v41  ;;  %2625 = vmatmul.bf16.gmra.mxu2 %v2473_v19  ;;  %v3140_v59 = vunpack.c.h.bf16 %v3192_v4 }
 0x357   : > { %2695 = vst [vmem:[%s5192_s17] sm:$0xff] %v2663_v26  ;;  %v3193_v26 = vld [vmem:[%s3893_s30 + $0x20] sm:$0xff]  }
 0x358   : > { %v2586_v17 = vpop.f32.mrf.mxu2 }
 0x359   : > { %v2587_v52 = vadd.f32 %v5183_v62, %v2586_v17 }
 0x35a   : > { %v2553_v42 = vpop.f32.mrf.mxu1 }
 0x35b   : > { %v2677_v48 = vadd.f32 %v3155_v2, %v2587_v52  ;;  %v2554_v25 = vadd.f32 %v5183_v62, %v2553_v42  ;;  %v3168_v2 = vunpack.c.h.bf16 %v3199_v30  ;;  %v891_v30 = vpop.f32.mrf.mxu3 }
 0x35d   : > { %2709 = vst [vmem:[%s5192_s17 + $0x70] sm:$0xff] %v2677_v48  ;;  %v2664_v50 = vadd.f32 %v3128_v5, %v2554_v25  ;;  %v3143_v5 = vunpack.c.l.bf16 %v3193_v26 }
 0x35f   : > { %2696 = vst [vmem:[%s5192_s17 + $0x8] sm:$0xff] %v2664_v50  ;;  %v3200_v50 = vld [vmem:[%s3893_s30 + $0x58] sm:$0xff]  }
 0x360   : > { %v2588_v61 = vpop.f32.mrf.mxu2 }
 0x361   : > { %v2589_v27 = vadd.f32 %v5183_v62, %v2588_v61 }
 0x362   : > { %v2556_v8 = vpop.f32.mrf.mxu1 }
 0x363   : > { %v2678_v43 = vadd.f32 %v3156_v53, %v2589_v27  ;;  %v2557_v35 = vadd.f32 %v5183_v62, %v2556_v8  ;;  %v3171_v53 = vunpack.c.l.bf16 %v3200_v50 }
 0x365   : > { %2710 = vst [vmem:[%s5192_s17 + $0x78] sm:$0xff] %v2678_v43  ;;  %v2665_v0 = vadd.f32 %v3131_v12, %v2557_v35  ;;  %v3144_v12 = vunpack.c.h.bf16 %v3193_v26 }
 0x367   : > { %2697 = vst [vmem:[%s5192_s17 + $0x10] sm:$0xff] %v2665_v0  ;;  %v3194_v0 = vld [vmem:[%s3893_s30 + $0x28] sm:$0xff]  }
 0x368   : > { %v2591_v54 = vpop.f32.mrf.mxu2 }
 0x369   : > { %v2592_v15 = vadd.f32 %v5183_v62, %v2591_v54 }
 0x36a   : > { %v2558_v23 = vpop.f32.mrf.mxu1 }
 0x36b   : > { %v2679_v32 = vadd.f32 %v3159_v24, %v2592_v15  ;;  %v2559_v39 = vadd.f32 %v5183_v62, %v2558_v23  ;;  %v3172_v24 = vunpack.c.h.bf16 %v3200_v50 }
 0x36d   : > { %2711 = vst [vmem:[%s5192_s17 + $0x80] sm:$0xff] %v2679_v32  ;;  %v2666_v11 = vadd.f32 %v3132_v16, %v2559_v39  ;;  %v3147_v16 = vunpack.c.l.bf16 %v3194_v0 }
 0x36f   : > { %2698 = vst [vmem:[%s5192_s17 + $0x18] sm:$0xff] %v2666_v11  ;;  %v3201_v11 = vld [vmem:[%s3893_s30 + $0x60] sm:$0xff]  }
 0x370   : > { %v2593_v13 = vpop.f32.mrf.mxu2 }
 0x371   : > { %v2594_v49 = vadd.f32 %v5183_v62, %v2593_v13 }
 0x372   : > { %v2561_v18 = vpop.f32.mrf.mxu1 }
 0x373   : > { %v2680_v44 = vadd.f32 %v3160_v10, %v2594_v49  ;;  %v2562_v7 = vadd.f32 %v5183_v62, %v2561_v18  ;;  %v3175_v10 = vunpack.c.l.bf16 %v3201_v11 }
 0x375   : > { %2712 = vst [vmem:[%s5192_s17 + $0x88] sm:$0xff] %v2680_v44  ;;  %v2667_v3 = vadd.f32 %v3135_v57, %v2562_v7  ;;  %v3148_v57 = vunpack.c.h.bf16 %v3194_v0 }
 0x377   : > { %2699 = vst [vmem:[%s5192_s17 + $0x20] sm:$0xff] %v2667_v3  ;;  %v3195_v3 = vld [vmem:[%s3893_s30 + $0x30] sm:$0xff]  }
 0x378   : > { %v2596_v28 = vpop.f32.mrf.mxu2 }
 0x379   : > { %v2597_v1 = vadd.f32 %v5183_v62, %v2596_v28 }
 0x37a   : > { %v2563_v14 = vpop.f32.mrf.mxu1 }
 0x37b   : > { %v2681_v40 = vadd.f32 %v3163_v20, %v2597_v1  ;;  %v2564_v36 = vadd.f32 %v5183_v62, %v2563_v14  ;;  %v3176_v20 = vunpack.c.h.bf16 %v3201_v11 }
 0x37d   : > { %2713 = vst [vmem:[%s5192_s17 + $0x90] sm:$0xff] %v2681_v40  ;;  %v2668_v63 = vadd.f32 %v3136_v34, %v2564_v36  ;;  %v3151_v34 = vunpack.c.l.bf16 %v3195_v3 }
 0x37f   : > { %2700 = vst [vmem:[%s5192_s17 + $0x28] sm:$0xff] %v2668_v63  ;;  %v3202_v63 = vld [vmem:[%s3893_s30 + $0x68] sm:$0xff]  }
 0x380   : > { %v2598_v6 = vpop.f32.mrf.mxu2 }
 0x381   : > { %v2599_v47 = vadd.f32 %v5183_v62, %v2598_v6 }
 0x382   : > { %v2566_v51 = vpop.f32.mrf.mxu1 }
 0x383   : > { %v2682_v56 = vadd.f32 %v3164_v46, %v2599_v47  ;;  %v2567_v21 = vadd.f32 %v5183_v62, %v2566_v51  ;;  %v3179_v46 = vunpack.c.l.bf16 %v3202_v63 }
 0x385   : > { %2714 = vst [vmem:[%s5192_s17 + $0x98] sm:$0xff] %v2682_v56  ;;  %v2669_v9 = vadd.f32 %v3139_v45, %v2567_v21  ;;  %v3152_v45 = vunpack.c.h.bf16 %v3195_v3 }
 0x387   : > { %2701 = vst [vmem:[%s5192_s17 + $0x30] sm:$0xff] %v2669_v9 }
 0x388   : > { %v2601_v22 = vpop.f32.mrf.mxu2 }
 0x389   : > { %v2602_v58 = vadd.f32 %v5183_v62, %v2601_v22 }
 0x38a   : > { %v2568_v37 = vpop.f32.mrf.mxu1 }
 0x38b   : > { %v2683_v41 = vadd.f32 %v3167_v55, %v2602_v58  ;;  %v2569_v19 = vadd.f32 %v5183_v62, %v2568_v37  ;;  %v3180_v55 = vunpack.c.h.bf16 %v3202_v63  ;;  %v3203_v37 = vld [vmem:[%s3893_s30 + $0x70] sm:$0xff]  }
 0x38d   : > { %2715 = vst [vmem:[%s5192_s17 + $0xa0] sm:$0xff] %v2683_v41  ;;  %v2670_v29 = vadd.f32 %v3140_v59, %v2569_v19  ;;  %v893_v41 = vpop.f32.mrf.mxu3  ;;  %v3183_v19 = vunpack.c.l.bf16 %v3203_v37 }
 0x38f   : > { %2702 = vst [vmem:[%s5192_s17 + $0x38] sm:$0xff] %v2670_v29 }
 0x390   : > { %v2603_v17 = vpop.f32.mrf.mxu2 }
 0x391   : > { %v2604_v52 = vadd.f32 %v5183_v62, %v2603_v17  ;;  %v3184_v17 = vunpack.c.h.bf16 %v3203_v37 }
 0x392   : > { %v2571_v42 = vpop.f32.mrf.mxu1 }
 0x393   : > { %v2684_v48 = vadd.f32 %v3168_v2, %v2604_v52  ;;  %v2572_v25 = vadd.f32 %v5183_v62, %v2571_v42 }
 0x395   : > { %2716 = vst [vmem:[%s5192_s17 + $0xa8] sm:$0xff] %v2684_v48  ;;  %v2671_v60 = vadd.f32 %v3143_v5, %v2572_v25  ;;  %v3204_v48 = vld [vmem:[%s3893_s30 + $0x78] sm:$0xff]   ;;  %s2728_s30 = scalar_lea.sflag [#allocation6], %s3881_s1 }
 0x396   : > { %v3187_v25 = vunpack.c.l.bf16 %v3204_v48 }
 0x397   : > { %2703 = vst [vmem:[%s5192_s17 + $0x40] sm:$0xff] %v2671_v60 }
 0x398   : > { %v2606_v61 = vpop.f32.mrf.mxu2 }
 0x399   : > { %v2607_v27 = vadd.f32 %v5183_v62, %v2606_v61  ;;  %v3188_v61 = vunpack.c.h.bf16 %v3204_v48 }
 0x39a   : > { %v2573_v8 = vpop.f32.mrf.mxu1 }
 0x39b   : > { %v2685_v43 = vadd.f32 %v3171_v53, %v2607_v27  ;;  %v2574_v35 = vadd.f32 %v5183_v62, %v2573_v8 }
 0x39d   : > { %2717 = vst [vmem:[%s5192_s17 + $0xb0] sm:$0xff] %v2685_v43  ;;  %v2672_v38 = vadd.f32 %v3144_v12, %v2574_v35 }
 0x39f   : > { %2704 = vst [vmem:[%s5192_s17 + $0x48] sm:$0xff] %v2672_v38 }
 0x3a0   : > { %v2608_v54 = vpop.f32.mrf.mxu2 }
 0x3a1   : > { %v2609_v15 = vadd.f32 %v5183_v62, %v2608_v54 }
 0x3a2   : > { %v2576_v23 = vpop.f32.mrf.mxu1 }
 0x3a3   : > { %v2686_v32 = vadd.f32 %v3172_v24, %v2609_v15  ;;  %v2577_v39 = vadd.f32 %v5183_v62, %v2576_v23 }
 0x3a5   : > { %2718 = vst [vmem:[%s5192_s17 + $0xb8] sm:$0xff] %v2686_v32  ;;  %v2673_v33 = vadd.f32 %v3147_v16, %v2577_v39 }
 0x3a7   : > { %2705 = vst [vmem:[%s5192_s17 + $0x50] sm:$0xff] %v2673_v33 }
 0x3a8   : > { %v2611_v13 = vpop.f32.mrf.mxu2 }
 0x3a9   : > { %v2612_v49 = vadd.f32 %v5183_v62, %v2611_v13 }
 0x3aa   : > { %v2578_v18 = vpop.f32.mrf.mxu1 }
 0x3ab   : > { %v2687_v44 = vadd.f32 %v3175_v10, %v2612_v49  ;;  %v2579_v7 = vadd.f32 %v5183_v62, %v2578_v18 }
 0x3ad   : > { %2719 = vst [vmem:[%s5192_s17 + $0xc0] sm:$0xff] %v2687_v44  ;;  %v2674_v31 = vadd.f32 %v3148_v57, %v2579_v7 }
 0x3af   : > { %2706 = vst [vmem:[%s5192_s17 + $0x58] sm:$0xff] %v2674_v31 }
 0x3b0   : > { %v2613_v28 = vpop.f32.mrf.mxu2 }
 0x3b1   : > { %v2614_v1 = vadd.f32 %v5183_v62, %v2613_v28 }
 0x3b2   : > { %v2581_v14 = vpop.f32.mrf.mxu1 }
 0x3b3   : > { %v2688_v40 = vadd.f32 %v3176_v20, %v2614_v1  ;;  %v2582_v36 = vadd.f32 %v5183_v62, %v2581_v14 }
 0x3b5   : > { %2720 = vst [vmem:[%s5192_s17 + $0xc8] sm:$0xff] %v2688_v40  ;;  %v2675_v4 = vadd.f32 %v3151_v34, %v2582_v36 }
 0x3b7   : > { %2707 = vst [vmem:[%s5192_s17 + $0x60] sm:$0xff] %v2675_v4 }
 0x3b8   : > { %v2616_v6 = vpop.f32.mrf.mxu2 }
 0x3b9   : > { %v2617_v47 = vadd.f32 %v5183_v62, %v2616_v6 }
 0x3ba   : > { %v2583_v51 = vpop.f32.mrf.mxu1 }
 0x3bb   : > { %v2689_v56 = vadd.f32 %v3179_v46, %v2617_v47  ;;  %v2584_v21 = vadd.f32 %v5183_v62, %v2583_v51 }
 0x3bd   : > { %2721 = vst [vmem:[%s5192_s17 + $0xd0] sm:$0xff] %v2689_v56  ;;  %v2676_v9 = vadd.f32 %v3152_v45, %v2584_v21 }
 0x3bf   : > { %2708 = vst [vmem:[%s5192_s17 + $0x68] sm:$0xff] %v2676_v9 }
 0x3c0   : > { %v2618_v22 = vpop.f32.mrf.mxu2 }
 0x3c1   : > { %v2619_v58 = vadd.f32 %v5183_v62, %v2618_v22 }
 0x3c3   : > { %v2690_v59 = vadd.f32 %v3180_v55, %v2619_v58 }
 0x3c5   : > { %2722 = vst [vmem:[%s5192_s17 + $0xd8] sm:$0xff] %v2690_v59 }
 0x3c8   : > { %v2621_v29 = vpop.f32.mrf.mxu2 }
 0x3c9   : > { %v2622_v26 = vadd.f32 %v5183_v62, %v2621_v29 }
 0x3cb   : > { %v2691_v2 = vadd.f32 %v3183_v19, %v2622_v26 }
 0x3cd   : > { %2723 = vst [vmem:[%s5192_s17 + $0xe0] sm:$0xff] %v2691_v2 }
 0x3d0   : > { %v2623_v52 = vpop.f32.mrf.mxu2 }
 0x3d1   : > { %v2624_v5 = vadd.f32 %v5183_v62, %v2623_v52 }
 0x3d3   : > { %v2692_v42 = vadd.f32 %v3184_v17, %v2624_v5 }
 0x3d5   : > { %2724 = vst [vmem:[%s5192_s17 + $0xe8] sm:$0xff] %v2692_v42 }
 0x3d8   : > { %v2626_v50 = vpop.f32.mrf.mxu2 }
 0x3d9   : > { %v2627_v60 = vadd.f32 %v5183_v62, %v2626_v50 }
 0x3db   : > { %v2693_v53 = vadd.f32 %v3187_v25, %v2627_v60 }
 0x3dd   : > { %2725 = vst [vmem:[%s5192_s17 + $0xf0] sm:$0xff] %v2693_v53 }
 0x3e0   : > { %v2628_v27 = vpop.f32.mrf.mxu2 }
 0x3e1   : > { %v2629_v12 = vadd.f32 %v5183_v62, %v2628_v27 }
 0x3e3   : > { %v2694_v8 = vadd.f32 %v3188_v61, %v2629_v12 }
 0x3e5   : > { %2726 = vst [vmem:[%s5192_s17 + $0xf8] sm:$0xff] %v2694_v8 }
 0x3e6   : > { %3587 = shalt.err (!%p3584_p12)
}
 0x3e7   : > { %s3665_s1 = smov 128   ;;  %s3666_s23 = smov 8  }
 0x3e8   : > { %3243 = dma.vmem_to_hbm [thread:$0]  (%p3808_p7), %s2741_s7, 4096, %s2743_s19, %s2728_s30, %s3665_s1, %s3665_s1, %s3666_s23  }
 0x3e9 PF: > { %s5450_s28 = sld [smem:[#allocation22_spill]] }
 0x3ea   : > { %s5452_s25 = sld [smem:[#allocation25_spill]] }
 0x3ef   : > { %s2757_s17 = sand.u32 1, %s5450_s28  }
 0x3f0   : > { %p5453_p13 = scmp.ge.s32.totalorder %s5452_s25, 2  ;;  %s2758_s27 = scalar_lea.sflag [#allocation6], %s2757_s17 }
 0x3f2   : > { %p3269_p0 = pnand %p5453_p13, %p3767_p6 }
 0x3f4   : > { %p3270_p3 = pneg %p3269_p0 }
 0x3f6   : > { %3629 = dma.done.wait (%p3270_p3), %s2758_s27, 4096  }
 0x3f7   : > { %3631 = vsyncadd (%p3270_p3), %s2758_s27, 4294963200  ;;  %s31_s18 = sadd.s32 1, %s5452_s25   ;;  %s5454_s24 = sld [smem:[#allocation23_spill]] }
 0x3f8   : > { %p28_p5 = scmp.ge.s32.totalorder %s31_s18, 4   ;;  %s5455_s15 = sld [smem:[#allocation29_spill]] }
 0x3f9   : > { %s5456_s16 = sld [smem:[#allocation24_spill]]  ;;  %s5458_s13 = smov %s3638_s14 }
 0x3fa   : > { %s5457_s17 = sld [smem:[#allocation27_spill]]  ;;  %30 = sbr.rel (!%p28_p5) target bundleno = 15 (0xf), region = 155 }
 0x3fd   : > { %s5459_s14 = smov %s5454_s24 }
 0x3ff   :  { %2764 = vsyncpa [#allocation5], 1 }
 0x400   :  { %2766 = vsyncpa [#allocation5 + $0x1], 1 }
 0x401   :  { %2767 = vsyncpa [#allocation8], 1 }
 0x402   :  { %2769 = vsyncpa [#allocation8 + $0x1], 1 }
 0x403   :  { %2770 = vsyncpa [#allocation11], 1 }
 0x404   :  { %2771 = vsyncpa [#allocation14], 1 }
 0x405   :  { %2772 = vsyncpa [#allocation6], 1 }
 0x406   :  { %2774 = vsyncpa [#allocation6 + $0x1], 1 }

</bundles_post_ra>
